<compile_context>
chip_gen: v7x
topology: tpu7x:2x2x1
jax: 0.10.0
libtpu: 0.0.40
codegen_flags: <defaults>
</compile_context>

<pallas_src>
import math

import jax
import jax.numpy as jnp
from jax import lax
from jax.experimental import pallas as pl
from jax.experimental.pallas import tpu as pltpu

# ---------------------------------------------------------------------------
# Hyperparameters (consistent with LocalPclResnetFC(num_local_features=0, ...),
# whose forward reduces to ResnetFC.do_forward).
# ---------------------------------------------------------------------------
D_IN = 4                                   # (x, y, z, t)
POS_FREQS = 2                              # pos_encoding_freqs
N_ENC_GROUPS = POS_FREQS * 2 + 1           # 5 groups of 4 channels
D_IN_ENC = D_IN * N_ENC_GROUPS             # 20
D_HIDDEN = 32                              # H
D_OUT = 16                                 # G
D_LATENT = 32                              # D (global embedding size)
N_BLOCKS = 3                               # n_blocks
BASE_FREQ = 0.1

P_PACK = 8                                 # points packed per lane-row
HP = P_PACK * D_HIDDEN                     # 256 packed hidden lanes
OP = P_PACK * D_OUT                        # 128 packed output lanes
IP = P_PACK * D_IN                         # 32 packed coordinate lanes
CHUNK_POINTS = 512                         # in-kernel chunk (bounds vreg live ranges)
DEFAULT_TM = 4096                          # points per grid step (multiple of CHUNK)


def _round_up(x, m):
    return ((x + m - 1) // m) * m


def _cdiv(a, b):
    return (a + b - 1) // b


def positional_encode(points, base_frequency, num_powers):
    """Plain-JAX helper (matches torch positional_encode) for the f32 reference."""
    parts = [points]
    for p in range(num_powers):
        omega = base_frequency * (2.0 ** p) * math.pi * 2.0
        parts.append(jnp.sin(points * omega))
        parts.append(jnp.cos(points * omega))
    return jnp.concatenate(parts, axis=-1)


# ---------------------------------------------------------------------------
# Pallas kernel: full ResnetFC forward for one tile of query rows.
# All activations are in packed row-major layout (8 points per lane-row).
# ---------------------------------------------------------------------------
def resnetfc_packed_kernel(pts_ref,      # (TM/8, 32)            f32  8 pts x 4 coords
                           z_ref,        # (N_BLOCKS, 1, 256)    f32  lin_z tiled x8 (+b_in in blk0)
                           w_id_ref,     # (32, 256)             f32  kron(I8, W_in[pts group])
                           w_trig_ref,   # (4, 32, 256)          bf16 kron(I8, W_in[sin/cos groups])
                           w0_ref,       # (N_BLOCKS, 256, 256)  bf16 kron(I8, fc_0.W)
                           b0_ref,       # (N_BLOCKS, 1, 256)    f32
                           w1_ref,       # (N_BLOCKS, 256, 256)  bf16 kron(I8, fc_1.W)
                           b1_ref,       # (N_BLOCKS, 1, 256)    f32
                           w_out_ref,    # (256, 128)            bf16 kron(I8, lin_out.W)
                           b_out_ref,    # (1, 128)              f32
                           out_ref,      # (TM/8, 128)           f32  8 pts x 16 out
                           pen_ref):     # (TM/8, 256)           f32  8 pts x 32 penult
    f32, bf16 = jnp.float32, jnp.bfloat16
    rows = pts_ref.shape[0]
    c_rows = CHUNK_POINTS // P_PACK
    n_chunks = rows // c_rows
    omega0 = BASE_FREQ * 2.0 * math.pi

    def chunk(r0):
        pts = pts_ref[pl.ds(r0, c_rows), :]                       # (c_rows, 32) f32

        # Fourier features; higher frequency via double-angle identities
        # (halves the transcendental work, exact up to f32 rounding).
        s, c = jnp.sin(pts * omega0), jnp.cos(pts * omega0)
        trig = []
        for p in range(POS_FREQS):
            if p > 0:
                s, c = 2.0 * s * c, 1.0 - 2.0 * s * s             # sin/cos(2^p * w0 * x)
            trig += [s, c]

        # lin_in: raw-coordinate group in f32 (precision), trig groups bf16 on MXU.
        x = jnp.dot(pts, w_id_ref[...], preferred_element_type=f32,
                    precision=lax.Precision.HIGHEST)
        for k in range(2 * POS_FREQS):
            x = x + jnp.dot(trig[k].astype(bf16), w_trig_ref[k],
                            preferred_element_type=f32)

        # Residual blocks (d_in == d_out -> identity shortcut); ReLU/adds stay f32,
        # only MXU operands are bf16.  lin_in bias is folded into z_ref[0].
        for blk in range(N_BLOCKS):
            x = x + z_ref[blk]                                    # (1, 256) broadcast
            net = jnp.dot(jnp.maximum(x, 0.0).astype(bf16), w0_ref[blk],
                          preferred_element_type=f32) + b0_ref[blk]
            x = x + jnp.dot(jnp.maximum(net, 0.0).astype(bf16), w1_ref[blk],
                            preferred_element_type=f32) + b1_ref[blk]

        pen_ref[pl.ds(r0, c_rows), :] = x
        out_ref[pl.ds(r0, c_rows), :] = jnp.dot(
            jnp.maximum(x, 0.0).astype(bf16), w_out_ref[...],
            preferred_element_type=f32) + b_out_ref[...]

    if n_chunks == 1:
        chunk(0)
    else:
        def body(i, carry):
            chunk(pl.multiple_of(i * c_rows, c_rows))
            return carry
        lax.fori_loop(0, n_chunks, body, 0)


# ---------------------------------------------------------------------------
# Wrapper
# ---------------------------------------------------------------------------
def _choose_tm(batch, n_points, tm_req):
    tm = max(CHUNK_POINTS, (int(tm_req) // CHUNK_POINTS) * CHUNK_POINTS)
    tm = min(tm, _round_up(n_points, CHUNK_POINTS))
    # v7x megacore: prefer >= 4 grid tiles total so both TensorCores get work.
    while batch * _cdiv(n_points, tm) < 4 and tm > CHUNK_POINTS:
        tm = max(CHUNK_POINTS, (tm // 2 // CHUNK_POINTS) * CHUNK_POINTS)
    return tm


def local_pcl_resnet_fc_forward(points_query, points_abstract, features_global,
                                features_abstract, params, *, tm=DEFAULT_TM):
    """Forward of LocalPclResnetFC with num_local_features=0 (default): the
    points_abstract / features_abstract args are accepted but unused, exactly as in
    the reference module's else-branch."""
    # TODO(synk): local_mode='attention' (PointTransformerBlock) and the
    # num_local_features>0 knn-interpolation path are not implemented (external
    # modules.PointTransformerBlock / geometry.my_knn_torch not provided).
    del points_abstract, features_abstract

    (w_in, b_in, wz, bz, w0, b0, w1, b1, w_out, b_out) = params

    no_batch = points_query.ndim == 2
    if no_batch:
        points_query = points_query[None]
        features_global = features_global[None]

    B, N, _ = points_query.shape
    f32, bf16 = jnp.float32, jnp.bfloat16
    eye = jnp.eye(P_PACK, dtype=f32)

    # --- per-batch lin_z precompute (point independent); fold b_in into block 0 ---
    z_all = jnp.einsum('bd,kdh->bkh', features_global.astype(f32),
                       wz.astype(f32)) + bz[:, 0][None]                   # (B, K, H)
    z_all = z_all.at[:, 0, :].add(b_in[0].astype(f32))
    z_packed = jnp.tile(z_all, (1, 1, P_PACK)).reshape(B, N_BLOCKS, 1, HP)

    # --- block-diagonal kron(I8, W) weights so packed matmuls are exact -----------
    w_id_bd = jnp.kron(eye, w_in[:D_IN].astype(f32))                      # (32, 256) f32
    w_trig_bd = jnp.stack(
        [jnp.kron(eye, w_in[D_IN * (k + 1):D_IN * (k + 2)].astype(f32))
         for k in range(2 * POS_FREQS)]).astype(bf16)                     # (4, 32, 256)
    w0_bd = jnp.stack([jnp.kron(eye, w0[k].astype(f32))
                       for k in range(N_BLOCKS)]).astype(bf16)            # (K, 256, 256)
    w1_bd = jnp.stack([jnp.kron(eye, w1[k].astype(f32))
                       for k in range(N_BLOCKS)]).astype(bf16)
    b0_p = jnp.tile(b0.astype(f32), (1, 1, P_PACK))                       # (K, 1, 256)
    b1_p = jnp.tile(b1.astype(f32), (1, 1, P_PACK))
    w_out_bd = jnp.kron(eye, w_out.astype(f32)).astype(bf16)              # (256, 128)
    b_out_p = jnp.tile(b_out.astype(f32), (1, P_PACK))                    # (1, 128)

    # --- points stay row-major: pad N, then view 8 points per lane-row ------------
    tm = _choose_tm(B, N, tm)
    n_pad = _round_up(N, tm)
    pts = points_query.astype(f32)
    if n_pad != N:
        pts = jnp.pad(pts, ((0, 0), (0, n_pad - N), (0, 0)))
    pts_packed = pts.reshape(B, n_pad // P_PACK, IP)                      # (B, rows, 32)

    rows_per_tile = tm // P_PACK
    grid = (B, n_pad // tm)

    def row_spec(lanes):
        return pl.BlockSpec((None, rows_per_tile, lanes), lambda b, i: (b, i, 0))

    def resident_spec(shape):
        nd = len(shape)
        return pl.BlockSpec(shape, lambda b, i, _nd=nd: (0,) * _nd)

    out_packed, pen_packed = pl.pallas_call(
        resnetfc_packed_kernel,
        out_shape=(jax.ShapeDtypeStruct((B, n_pad // P_PACK, OP), f32),
                   jax.ShapeDtypeStruct((B, n_pad // P_PACK, HP), f32)),
        grid=grid,
        in_specs=[
            row_spec(IP),                                                 # packed points
            pl.BlockSpec((None, N_BLOCKS, 1, HP), lambda b, i: (b, 0, 0, 0)),
            resident_spec((IP, HP)),                                      # lin_in id group
            resident_spec((2 * POS_FREQS, IP, HP)),                       # lin_in trig groups
            resident_spec((N_BLOCKS, HP, HP)),                            # fc_0.W
            resident_spec((N_BLOCKS, 1, HP)),                             # fc_0.b
            resident_spec((N_BLOCKS, HP, HP)),                            # fc_1.W
            resident_spec((N_BLOCKS, 1, HP)),                             # fc_1.b
            resident_spec((HP, OP)),                                      # lin_out.W
            resident_spec((1, OP)),                                       # lin_out.b
        ],
        out_specs=(row_spec(OP), row_spec(HP)),
        compiler_params=pltpu.CompilerParams(
            dimension_semantics=("parallel", "parallel"),
            vmem_limit_bytes=32 * 1024 * 1024),                           # v7x guardrail
    )(pts_packed, z_packed, w_id_bd, w_trig_bd, w0_bd, b0_p, w1_bd, b1_p,
      w_out_bd, b_out_p)

    # Free (bitcast) reshapes back to (B, N, C); slice only if padding was added.
    out = out_packed.reshape(B, n_pad, D_OUT)
    penult = pen_packed.reshape(B, n_pad, D_HIDDEN)
    if n_pad != N:
        out, penult = out[:, :N], penult[:, :N]
    if no_batch:
        out, penult = out[0], penult[0]
    return out, penult


# ---------------------------------------------------------------------------
# Deterministic parameter init (PyTorch Linear-style uniform(+-1/sqrt(fan_in))).
# Weights stored as (in, out) so the math is x @ W (== x @ W_pt.T).
# ---------------------------------------------------------------------------
def init_params(key):
    def lin(k, fi, fo):
        k1, k2 = jax.random.split(k)
        bound = 1.0 / math.sqrt(fi)
        w = jax.random.uniform(k1, (fi, fo), jnp.float32, -bound, bound)
        b = jax.random.uniform(k2, (1, fo), jnp.float32, -bound, bound)
        return w, b

    keys = jax.random.split(key, 2 + 3 * N_BLOCKS)
    w_in, b_in = lin(keys[0], D_IN_ENC, D_HIDDEN)
    w_out, b_out = lin(keys[1], D_HIDDEN, D_OUT)

    wz_l, bz_l, w0_l, b0_l, w1_l, b1_l = [], [], [], [], [], []
    for blk in range(N_BLOCKS):
        kz, k0, k1 = (keys[2 + 3 * blk], keys[3 + 3 * blk], keys[4 + 3 * blk])
        wz, bz = lin(kz, D_LATENT, D_HIDDEN)
        w0, b0 = lin(k0, D_HIDDEN, D_HIDDEN)
        w1, b1 = lin(k1, D_HIDDEN, D_HIDDEN)
        wz_l.append(wz); bz_l.append(bz)
        w0_l.append(w0); b0_l.append(b0)
        w1_l.append(w1); b1_l.append(b1)

    return (w_in, b_in,
            jnp.stack(wz_l), jnp.stack(bz_l),
            jnp.stack(w0_l), jnp.stack(b0_l),
            jnp.stack(w1_l), jnp.stack(b1_l),
            w_out, b_out)


# ---------------------------------------------------------------------------
# References.
#   reference_forward         : pure f32, mirrors the PyTorch module (loose check).
#   reference_forward_matched : mirrors the kernel numerics (bf16 MXU operands with
#                               f32 accumulation, f32 identity group, double-angle
#                               trig) so a tight tolerance is meaningful.
# ---------------------------------------------------------------------------
def reference_forward(points_query, features_global, params):
    (w_in, b_in, wz, bz, w0, b0, w1, b1, w_out, b_out) = params
    pts_enc = positional_encode(points_query, BASE_FREQ, POS_FREQS)
    x = pts_enc @ w_in + b_in[0]
    for blk in range(N_BLOCKS):
        z = features_global @ wz[blk] + bz[blk, 0]
        x = x + z[:, None, :]
        net = jnp.maximum(x, 0.0) @ w0[blk] + b0[blk, 0]
        dx = jnp.maximum(net, 0.0) @ w1[blk] + b1[blk, 0]
        x = x + dx
    penult = x
    out = jnp.maximum(x, 0.0) @ w_out + b_out[0]
    return out, penult


def reference_forward_matched(points_query, features_global, params):
    (w_in, b_in, wz, bz, w0, b0, w1, b1, w_out, b_out) = params
    f32, bf16 = jnp.float32, jnp.bfloat16
    pts = points_query.astype(f32)
    omega0 = BASE_FREQ * 2.0 * math.pi
    s, c = jnp.sin(pts * omega0), jnp.cos(pts * omega0)
    trig = []
    for p in range(POS_FREQS):
        if p > 0:
            s, c = 2.0 * s * c, 1.0 - 2.0 * s * s
        trig += [s, c]
    x = jnp.dot(pts, w_in[:D_IN].astype(f32), preferred_element_type=f32,
                precision=lax.Precision.HIGHEST)
    for k in range(2 * POS_FREQS):
        wg = w_in[D_IN * (k + 1):D_IN * (k + 2)].astype(bf16)
        x = x + jnp.dot(trig[k].astype(bf16), wg, preferred_element_type=f32)
    x = x + b_in[0]
    for blk in range(N_BLOCKS):
        z = features_global @ wz[blk] + bz[blk, 0]
        x = x + z[:, None, :]
        net = jnp.dot(jnp.maximum(x, 0.0).astype(bf16), w0[blk].astype(bf16),
                      preferred_element_type=f32) + b0[blk, 0]
        x = x + jnp.dot(jnp.maximum(net, 0.0).astype(bf16), w1[blk].astype(bf16),
                        preferred_element_type=f32) + b1[blk, 0]
    penult = x
    out = jnp.dot(jnp.maximum(x, 0.0).astype(bf16), w_out.astype(bf16),
                  preferred_element_type=f32) + b_out[0]
    return out, penult


if __name__ == "__main__":
    key = jax.random.PRNGKey(0)
    k_pq, k_pa, k_fg, k_fa, k_par, k_pq2, k_fg2 = jax.random.split(key, 7)

    B, N, M = 2, 300, 16
    points_query = jax.random.normal(k_pq, (B, N, D_IN), jnp.float32)
    points_abstract = jax.random.normal(k_pa, (B, M, 3), jnp.float32)        # unused
    features_global = jax.random.normal(k_fg, (B, D_LATENT), jnp.float32)
    features_abstract = jax.random.normal(k_fa, (B, M, 64), jnp.float32)     # unused

    params = init_params(k_par)

    fwd = jax.jit(local_pcl_resnet_fc_forward)
    out, penult = fwd(points_query, points_abstract, features_global,
                      features_abstract, params)
    jax.block_until_ready((out, penult))

    assert out.shape == (B, N, D_OUT) and penult.shape == (B, N, D_HIDDEN)

    # Tight check against the numerics-matched reference.  (Exact 1e-3 is not
    # attainable because Mosaic vs XLA sin/cos and accumulation order differ by a
    # few ulps, which occasionally flips a bf16 operand rounding.)
    m_out, m_pen = reference_forward_matched(points_query, features_global, params)
    assert jnp.allclose(out, m_out, atol=1e-2, rtol=1e-2)
    assert jnp.allclose(penult, m_pen, atol=1e-2, rtol=1e-2)

    # Loose check against the pure-f32 PyTorch-faithful reference (bf16 hidden
    # activations inside the kernel).
    with jax.default_matmul_precision("highest"):
        ref_out, ref_pen = reference_forward(points_query, features_global, params)
    assert jnp.allclose(out, ref_out, atol=5e-2, rtol=5e-2)
    assert jnp.allclose(penult, ref_pen, atol=5e-2, rtol=5e-2)

    # Second config: multiple row tiles per batch and multi-chunk in-kernel loop.
    N2 = 2048
    pq2 = jax.random.normal(k_pq2, (B, N2, D_IN), jnp.float32)
    fg2 = jax.random.normal(k_fg2, (B, D_LATENT), jnp.float32)
    out2, pen2 = jax.jit(local_pcl_resnet_fc_forward)(
        pq2, points_abstract, fg2, features_abstract, params)
    jax.block_until_ready((out2, pen2))
    m_out2, m_pen2 = reference_forward_matched(pq2, fg2, params)
    assert out2.shape == (B, N2, D_OUT) and pen2.shape == (B, N2, D_HIDDEN)
    assert jnp.allclose(out2, m_out2, atol=1e-2, rtol=1e-2)
    assert jnp.allclose(pen2, m_pen2, atol=1e-2, rtol=1e-2)

    print("KERNEL_OK")
</pallas_src>

<mosaic_0001>
module attributes {stable_mosaic.version = 11 : i64} {
  func.func @resnetfc_packed_kernel(%arg0: i32, %arg1: i32, %arg2: memref<1x64x32xf32, #tpu.memory_space<vmem>>, %arg3: memref<1x3x1x256xf32, #tpu.memory_space<vmem>>, %arg4: memref<32x256xf32, #tpu.memory_space<vmem>>, %arg5: memref<4x32x256xbf16, #tpu.memory_space<vmem>>, %arg6: memref<3x256x256xbf16, #tpu.memory_space<vmem>>, %arg7: memref<3x1x256xf32, #tpu.memory_space<vmem>>, %arg8: memref<3x256x256xbf16, #tpu.memory_space<vmem>>, %arg9: memref<3x1x256xf32, #tpu.memory_space<vmem>>, %arg10: memref<256x128xbf16, #tpu.memory_space<vmem>>, %arg11: memref<1x128xf32, #tpu.memory_space<vmem>>, %arg12: memref<1x64x128xf32, #tpu.memory_space<vmem>>, %arg13: memref<1x64x256xf32, #tpu.memory_space<vmem>>) attributes {dimension_semantics = [#tpu.dimension_semantics<parallel>, #tpu.dimension_semantics<parallel>], iteration_bounds = array<i64: 2, 1>, scalar_prefetch = 0 : i64, scratch_operands = 0 : i64, tpu.core_type = #tpu.core_type<tc>, window_params = [{transform_indices = @transform_0, window_bounds = array<i64: 1, 64, 32>}, {transform_indices = @transform_1, window_bounds = array<i64: 1, 3, 1, 256>}, {pipeline_mode = #tpu.pipeline_mode<synchronous>, transform_indices = @transform_2, window_bounds = array<i64: 32, 256>}, {pipeline_mode = #tpu.pipeline_mode<synchronous>, transform_indices = @transform_3, window_bounds = array<i64: 4, 32, 256>}, {pipeline_mode = #tpu.pipeline_mode<synchronous>, transform_indices = @transform_4, window_bounds = array<i64: 3, 256, 256>}, {pipeline_mode = #tpu.pipeline_mode<synchronous>, transform_indices = @transform_5, window_bounds = array<i64: 3, 1, 256>}, {pipeline_mode = #tpu.pipeline_mode<synchronous>, transform_indices = @transform_6, window_bounds = array<i64: 3, 256, 256>}, {pipeline_mode = #tpu.pipeline_mode<synchronous>, transform_indices = @transform_7, window_bounds = array<i64: 3, 1, 256>}, {pipeline_mode = #tpu.pipeline_mode<synchronous>, transform_indices = @transform_8, window_bounds = array<i64: 256, 128>}, {pipeline_mode = #tpu.pipeline_mode<synchronous>, transform_indices = @transform_9, window_bounds = array<i64: 1, 128>}, {transform_indices = @transform_10, window_bounds = array<i64: 1, 64, 128>}, {transform_indices = @transform_11, window_bounds = array<i64: 1, 64, 256>}]} {
    %c0 = arith.constant 0 : index
    %c0_0 = arith.constant 0 : index
    %c0_1 = arith.constant 0 : index
    %0 = vector.load %arg2[%c0, %c0_0, %c0_1] : memref<1x64x32xf32, #tpu.memory_space<vmem>>, vector<1x64x32xf32>
    %1 = vector.shape_cast %0 : vector<1x64x32xf32> to vector<64x32xf32>
    %cst = arith.constant 0.628318548 : f32
    %2 = vector.broadcast %cst : f32 to vector<64x32xf32>
    %3 = arith.mulf %1, %2 : vector<64x32xf32>
    %4 = math.sin %3 : vector<64x32xf32>
    %cst_2 = arith.constant 0.628318548 : f32
    %5 = vector.broadcast %cst_2 : f32 to vector<64x32xf32>
    %6 = arith.mulf %1, %5 : vector<64x32xf32>
    %7 = math.cos %6 : vector<64x32xf32>
    %cst_3 = arith.constant 2.000000e+00 : f32
    %8 = vector.broadcast %cst_3 : f32 to vector<64x32xf32>
    %9 = arith.mulf %8, %4 : vector<64x32xf32>
    %10 = arith.mulf %9, %7 : vector<64x32xf32>
    %cst_4 = arith.constant 2.000000e+00 : f32
    %11 = vector.broadcast %cst_4 : f32 to vector<64x32xf32>
    %12 = arith.mulf %11, %4 : vector<64x32xf32>
    %13 = arith.mulf %12, %4 : vector<64x32xf32>
    %cst_5 = arith.constant 1.000000e+00 : f32
    %14 = vector.broadcast %cst_5 : f32 to vector<64x32xf32>
    %15 = arith.subf %14, %13 : vector<64x32xf32>
    %c0_6 = arith.constant 0 : index
    %c0_7 = arith.constant 0 : index
    %16 = vector.load %arg4[%c0_6, %c0_7] : memref<32x256xf32, #tpu.memory_space<vmem>>, vector<32x256xf32>
    %cst_8 = arith.constant dense<0.000000e+00> : vector<64x256xf32>
    %17 = tpu.matmul %1, %16, %cst_8 {dimension_numbers = #tpu.dot_dimension_numbers<[1], [0], [0], [1], [0, 0, 1, 1], [], []>, precision = #tpu.contract_precision<fp32>} : vector<64x32xf32>, vector<32x256xf32>, vector<64x256xf32> -> vector<64x256xf32>
    %18 = arith.truncf %4 : vector<64x32xf32> to vector<64x32xbf16>
    %c0_9 = arith.constant 0 : index
    %c0_10 = arith.constant 0 : index
    %c0_11 = arith.constant 0 : index
    %19 = vector.load %arg5[%c0_9, %c0_10, %c0_11] : memref<4x32x256xbf16, #tpu.memory_space<vmem>>, vector<1x32x256xbf16>
    %20 = vector.shape_cast %19 : vector<1x32x256xbf16> to vector<32x256xbf16>
    %cst_12 = arith.constant dense<0.000000e+00> : vector<64x256xf32>
    %21 = tpu.matmul %18, %20, %cst_12 {dimension_numbers = #tpu.dot_dimension_numbers<[1], [0], [0], [1], [0, 0, 1, 1], [], []>} : vector<64x32xbf16>, vector<32x256xbf16>, vector<64x256xf32> -> vector<64x256xf32>
    %22 = arith.addf %17, %21 : vector<64x256xf32>
    %23 = arith.truncf %7 : vector<64x32xf32> to vector<64x32xbf16>
    %c1 = arith.constant 1 : index
    %c0_13 = arith.constant 0 : index
    %c0_14 = arith.constant 0 : index
    %24 = vector.load %arg5[%c1, %c0_13, %c0_14] : memref<4x32x256xbf16, #tpu.memory_space<vmem>>, vector<1x32x256xbf16>
    %25 = vector.shape_cast %24 : vector<1x32x256xbf16> to vector<32x256xbf16>
    %cst_15 = arith.constant dense<0.000000e+00> : vector<64x256xf32>
    %26 = tpu.matmul %23, %25, %cst_15 {dimension_numbers = #tpu.dot_dimension_numbers<[1], [0], [0], [1], [0, 0, 1, 1], [], []>} : vector<64x32xbf16>, vector<32x256xbf16>, vector<64x256xf32> -> vector<64x256xf32>
    %27 = arith.addf %22, %26 : vector<64x256xf32>
    %28 = arith.truncf %10 : vector<64x32xf32> to vector<64x32xbf16>
    %c2 = arith.constant 2 : index
    %c0_16 = arith.constant 0 : index
    %c0_17 = arith.constant 0 : index
    %29 = vector.load %arg5[%c2, %c0_16, %c0_17] : memref<4x32x256xbf16, #tpu.memory_space<vmem>>, vector<1x32x256xbf16>
    %30 = vector.shape_cast %29 : vector<1x32x256xbf16> to vector<32x256xbf16>
    %cst_18 = arith.constant dense<0.000000e+00> : vector<64x256xf32>
    %31 = tpu.matmul %28, %30, %cst_18 {dimension_numbers = #tpu.dot_dimension_numbers<[1], [0], [0], [1], [0, 0, 1, 1], [], []>} : vector<64x32xbf16>, vector<32x256xbf16>, vector<64x256xf32> -> vector<64x256xf32>
    %32 = arith.addf %27, %31 : vector<64x256xf32>
    %33 = arith.truncf %15 : vector<64x32xf32> to vector<64x32xbf16>
    %c3 = arith.constant 3 : index
    %c0_19 = arith.constant 0 : index
    %c0_20 = arith.constant 0 : index
    %34 = vector.load %arg5[%c3, %c0_19, %c0_20] : memref<4x32x256xbf16, #tpu.memory_space<vmem>>, vector<1x32x256xbf16>
    %35 = vector.shape_cast %34 : vector<1x32x256xbf16> to vector<32x256xbf16>
    %cst_21 = arith.constant dense<0.000000e+00> : vector<64x256xf32>
    %36 = tpu.matmul %33, %35, %cst_21 {dimension_numbers = #tpu.dot_dimension_numbers<[1], [0], [0], [1], [0, 0, 1, 1], [], []>} : vector<64x32xbf16>, vector<32x256xbf16>, vector<64x256xf32> -> vector<64x256xf32>
    %37 = arith.addf %32, %36 : vector<64x256xf32>
    %c0_22 = arith.constant 0 : index
    %c0_23 = arith.constant 0 : index
    %c0_24 = arith.constant 0 : index
    %c0_25 = arith.constant 0 : index
    %38 = vector.load %arg3[%c0_22, %c0_23, %c0_24, %c0_25] : memref<1x3x1x256xf32, #tpu.memory_space<vmem>>, vector<1x1x1x256xf32>
    %39 = vector.shape_cast %38 : vector<1x1x1x256xf32> to vector<1x256xf32>
    %40 = vector.broadcast %39 : vector<1x256xf32> to vector<64x256xf32>
    %41 = arith.addf %37, %40 : vector<64x256xf32>
    %cst_26 = arith.constant 0.000000e+00 : f32
    %42 = vector.broadcast %cst_26 : f32 to vector<64x256xf32>
    %43 = arith.maximumf %41, %42 : vector<64x256xf32>
    %44 = arith.truncf %43 : vector<64x256xf32> to vector<64x256xbf16>
    %c0_27 = arith.constant 0 : index
    %c0_28 = arith.constant 0 : index
    %c0_29 = arith.constant 0 : index
    %45 = vector.load %arg6[%c0_27, %c0_28, %c0_29] : memref<3x256x256xbf16, #tpu.memory_space<vmem>>, vector<1x256x256xbf16>
    %46 = vector.shape_cast %45 : vector<1x256x256xbf16> to vector<256x256xbf16>
    %cst_30 = arith.constant dense<0.000000e+00> : vector<64x256xf32>
    %47 = tpu.matmul %44, %46, %cst_30 {dimension_numbers = #tpu.dot_dimension_numbers<[1], [0], [0], [1], [0, 0, 1, 1], [], []>} : vector<64x256xbf16>, vector<256x256xbf16>, vector<64x256xf32> -> vector<64x256xf32>
    %c0_31 = arith.constant 0 : index
    %c0_32 = arith.constant 0 : index
    %c0_33 = arith.constant 0 : index
    %48 = vector.load %arg7[%c0_31, %c0_32, %c0_33] : memref<3x1x256xf32, #tpu.memory_space<vmem>>, vector<1x1x256xf32>
    %49 = vector.shape_cast %48 : vector<1x1x256xf32> to vector<1x256xf32>
    %50 = vector.broadcast %49 : vector<1x256xf32> to vector<64x256xf32>
    %51 = arith.addf %47, %50 : vector<64x256xf32>
    %cst_34 = arith.constant 0.000000e+00 : f32
    %52 = vector.broadcast %cst_34 : f32 to vector<64x256xf32>
    %53 = arith.maximumf %51, %52 : vector<64x256xf32>
    %54 = arith.truncf %53 : vector<64x256xf32> to vector<64x256xbf16>
    %c0_35 = arith.constant 0 : index
    %c0_36 = arith.constant 0 : index
    %c0_37 = arith.constant 0 : index
    %55 = vector.load %arg8[%c0_35, %c0_36, %c0_37] : memref<3x256x256xbf16, #tpu.memory_space<vmem>>, vector<1x256x256xbf16>
    %56 = vector.shape_cast %55 : vector<1x256x256xbf16> to vector<256x256xbf16>
    %cst_38 = arith.constant dense<0.000000e+00> : vector<64x256xf32>
    %57 = tpu.matmul %54, %56, %cst_38 {dimension_numbers = #tpu.dot_dimension_numbers<[1], [0], [0], [1], [0, 0, 1, 1], [], []>} : vector<64x256xbf16>, vector<256x256xbf16>, vector<64x256xf32> -> vector<64x256xf32>
    %58 = arith.addf %41, %57 : vector<64x256xf32>
    %c0_39 = arith.constant 0 : index
    %c0_40 = arith.constant 0 : index
    %c0_41 = arith.constant 0 : index
    %59 = vector.load %arg9[%c0_39, %c0_40, %c0_41] : memref<3x1x256xf32, #tpu.memory_space<vmem>>, vector<1x1x256xf32>
    %60 = vector.shape_cast %59 : vector<1x1x256xf32> to vector<1x256xf32>
    %61 = vector.broadcast %60 : vector<1x256xf32> to vector<64x256xf32>
    %62 = arith.addf %58, %61 : vector<64x256xf32>
    %c0_42 = arith.constant 0 : index
    %c1_43 = arith.constant 1 : index
    %c0_44 = arith.constant 0 : index
    %c0_45 = arith.constant 0 : index
    %63 = vector.load %arg3[%c0_42, %c1_43, %c0_44, %c0_45] : memref<1x3x1x256xf32, #tpu.memory_space<vmem>>, vector<1x1x1x256xf32>
    %64 = vector.shape_cast %63 : vector<1x1x1x256xf32> to vector<1x256xf32>
    %65 = vector.broadcast %64 : vector<1x256xf32> to vector<64x256xf32>
    %66 = arith.addf %62, %65 : vector<64x256xf32>
    %cst_46 = arith.constant 0.000000e+00 : f32
    %67 = vector.broadcast %cst_46 : f32 to vector<64x256xf32>
    %68 = arith.maximumf %66, %67 : vector<64x256xf32>
    %69 = arith.truncf %68 : vector<64x256xf32> to vector<64x256xbf16>
    %c1_47 = arith.constant 1 : index
    %c0_48 = arith.constant 0 : index
    %c0_49 = arith.constant 0 : index
    %70 = vector.load %arg6[%c1_47, %c0_48, %c0_49] : memref<3x256x256xbf16, #tpu.memory_space<vmem>>, vector<1x256x256xbf16>
    %71 = vector.shape_cast %70 : vector<1x256x256xbf16> to vector<256x256xbf16>
    %cst_50 = arith.constant dense<0.000000e+00> : vector<64x256xf32>
    %72 = tpu.matmul %69, %71, %cst_50 {dimension_numbers = #tpu.dot_dimension_numbers<[1], [0], [0], [1], [0, 0, 1, 1], [], []>} : vector<64x256xbf16>, vector<256x256xbf16>, vector<64x256xf32> -> vector<64x256xf32>
    %c1_51 = arith.constant 1 : index
    %c0_52 = arith.constant 0 : index
    %c0_53 = arith.constant 0 : index
    %73 = vector.load %arg7[%c1_51, %c0_52, %c0_53] : memref<3x1x256xf32, #tpu.memory_space<vmem>>, vector<1x1x256xf32>
    %74 = vector.shape_cast %73 : vector<1x1x256xf32> to vector<1x256xf32>
    %75 = vector.broadcast %74 : vector<1x256xf32> to vector<64x256xf32>
    %76 = arith.addf %72, %75 : vector<64x256xf32>
    %cst_54 = arith.constant 0.000000e+00 : f32
    %77 = vector.broadcast %cst_54 : f32 to vector<64x256xf32>
    %78 = arith.maximumf %76, %77 : vector<64x256xf32>
    %79 = arith.truncf %78 : vector<64x256xf32> to vector<64x256xbf16>
    %c1_55 = arith.constant 1 : index
    %c0_56 = arith.constant 0 : index
    %c0_57 = arith.constant 0 : index
    %80 = vector.load %arg8[%c1_55, %c0_56, %c0_57] : memref<3x256x256xbf16, #tpu.memory_space<vmem>>, vector<1x256x256xbf16>
    %81 = vector.shape_cast %80 : vector<1x256x256xbf16> to vector<256x256xbf16>
    %cst_58 = arith.constant dense<0.000000e+00> : vector<64x256xf32>
    %82 = tpu.matmul %79, %81, %cst_58 {dimension_numbers = #tpu.dot_dimension_numbers<[1], [0], [0], [1], [0, 0, 1, 1], [], []>} : vector<64x256xbf16>, vector<256x256xbf16>, vector<64x256xf32> -> vector<64x256xf32>
    %83 = arith.addf %66, %82 : vector<64x256xf32>
    %c1_59 = arith.constant 1 : index
    %c0_60 = arith.constant 0 : index
    %c0_61 = arith.constant 0 : index
    %84 = vector.load %arg9[%c1_59, %c0_60, %c0_61] : memref<3x1x256xf32, #tpu.memory_space<vmem>>, vector<1x1x256xf32>
    %85 = vector.shape_cast %84 : vector<1x1x256xf32> to vector<1x256xf32>
    %86 = vector.broadcast %85 : vector<1x256xf32> to vector<64x256xf32>
    %87 = arith.addf %83, %86 : vector<64x256xf32>
    %c0_62 = arith.constant 0 : index
    %c2_63 = arith.constant 2 : index
    %c0_64 = arith.constant 0 : index
    %c0_65 = arith.constant 0 : index
    %88 = vector.load %arg3[%c0_62, %c2_63, %c0_64, %c0_65] : memref<1x3x1x256xf32, #tpu.memory_space<vmem>>, vector<1x1x1x256xf32>
    %89 = vector.shape_cast %88 : vector<1x1x1x256xf32> to vector<1x256xf32>
    %90 = vector.broadcast %89 : vector<1x256xf32> to vector<64x256xf32>
    %91 = arith.addf %87, %90 : vector<64x256xf32>
    %cst_66 = arith.constant 0.000000e+00 : f32
    %92 = vector.broadcast %cst_66 : f32 to vector<64x256xf32>
    %93 = arith.maximumf %91, %92 : vector<64x256xf32>
    %94 = arith.truncf %93 : vector<64x256xf32> to vector<64x256xbf16>
    %c2_67 = arith.constant 2 : index
    %c0_68 = arith.constant 0 : index
    %c0_69 = arith.constant 0 : index
    %95 = vector.load %arg6[%c2_67, %c0_68, %c0_69] : memref<3x256x256xbf16, #tpu.memory_space<vmem>>, vector<1x256x256xbf16>
    %96 = vector.shape_cast %95 : vector<1x256x256xbf16> to vector<256x256xbf16>
    %cst_70 = arith.constant dense<0.000000e+00> : vector<64x256xf32>
    %97 = tpu.matmul %94, %96, %cst_70 {dimension_numbers = #tpu.dot_dimension_numbers<[1], [0], [0], [1], [0, 0, 1, 1], [], []>} : vector<64x256xbf16>, vector<256x256xbf16>, vector<64x256xf32> -> vector<64x256xf32>
    %c2_71 = arith.constant 2 : index
    %c0_72 = arith.constant 0 : index
    %c0_73 = arith.constant 0 : index
    %98 = vector.load %arg7[%c2_71, %c0_72, %c0_73] : memref<3x1x256xf32, #tpu.memory_space<vmem>>, vector<1x1x256xf32>
    %99 = vector.shape_cast %98 : vector<1x1x256xf32> to vector<1x256xf32>
    %100 = vector.broadcast %99 : vector<1x256xf32> to vector<64x256xf32>
    %101 = arith.addf %97, %100 : vector<64x256xf32>
    %cst_74 = arith.constant 0.000000e+00 : f32
    %102 = vector.broadcast %cst_74 : f32 to vector<64x256xf32>
    %103 = arith.maximumf %101, %102 : vector<64x256xf32>
    %104 = arith.truncf %103 : vector<64x256xf32> to vector<64x256xbf16>
    %c2_75 = arith.constant 2 : index
    %c0_76 = arith.constant 0 : index
    %c0_77 = arith.constant 0 : index
    %105 = vector.load %arg8[%c2_75, %c0_76, %c0_77] : memref<3x256x256xbf16, #tpu.memory_space<vmem>>, vector<1x256x256xbf16>
    %106 = vector.shape_cast %105 : vector<1x256x256xbf16> to vector<256x256xbf16>
    %cst_78 = arith.constant dense<0.000000e+00> : vector<64x256xf32>
    %107 = tpu.matmul %104, %106, %cst_78 {dimension_numbers = #tpu.dot_dimension_numbers<[1], [0], [0], [1], [0, 0, 1, 1], [], []>} : vector<64x256xbf16>, vector<256x256xbf16>, vector<64x256xf32> -> vector<64x256xf32>
    %108 = arith.addf %91, %107 : vector<64x256xf32>
    %c2_79 = arith.constant 2 : index
    %c0_80 = arith.constant 0 : index
    %c0_81 = arith.constant 0 : index
    %109 = vector.load %arg9[%c2_79, %c0_80, %c0_81] : memref<3x1x256xf32, #tpu.memory_space<vmem>>, vector<1x1x256xf32>
    %110 = vector.shape_cast %109 : vector<1x1x256xf32> to vector<1x256xf32>
    %111 = vector.broadcast %110 : vector<1x256xf32> to vector<64x256xf32>
    %112 = arith.addf %108, %111 : vector<64x256xf32>
    %c0_82 = arith.constant 0 : index
    %c0_83 = arith.constant 0 : index
    %c0_84 = arith.constant 0 : index
    %113 = vector.load %arg13[%c0_82, %c0_83, %c0_84] : memref<1x64x256xf32, #tpu.memory_space<vmem>>, vector<1x64x256xf32>
    %114 = vector.shape_cast %113 : vector<1x64x256xf32> to vector<64x256xf32>
    %115 = vector.shape_cast %112 : vector<64x256xf32> to vector<1x64x256xf32>
    tpu.vector_store %arg13[%c0_82, %c0_83, %c0_84], %115 {strides = array<i32>} : memref<1x64x256xf32, #tpu.memory_space<vmem>>, vector<1x64x256xf32>,
    %cst_85 = arith.constant 0.000000e+00 : f32
    %116 = vector.broadcast %cst_85 : f32 to vector<64x256xf32>
    %117 = arith.maximumf %112, %116 : vector<64x256xf32>
    %118 = arith.truncf %117 : vector<64x256xf32> to vector<64x256xbf16>
    %c0_86 = arith.constant 0 : index
    %c0_87 = arith.constant 0 : index
    %119 = vector.load %arg10[%c0_86, %c0_87] : memref<256x128xbf16, #tpu.memory_space<vmem>>, vector<256x128xbf16>
    %cst_88 = arith.constant dense<0.000000e+00> : vector<64x128xf32>
    %120 = tpu.matmul %118, %119, %cst_88 {dimension_numbers = #tpu.dot_dimension_numbers<[1], [0], [0], [1], [0, 0, 1, 1], [], []>} : vector<64x256xbf16>, vector<256x128xbf16>, vector<64x128xf32> -> vector<64x128xf32>
    %c0_89 = arith.constant 0 : index
    %c0_90 = arith.constant 0 : index
    %121 = vector.load %arg11[%c0_89, %c0_90] : memref<1x128xf32, #tpu.memory_space<vmem>>, vector<1x128xf32>
    %122 = vector.broadcast %121 : vector<1x128xf32> to vector<64x128xf32>
    %123 = arith.addf %120, %122 : vector<64x128xf32>
    %c0_91 = arith.constant 0 : index
    %c0_92 = arith.constant 0 : index
    %c0_93 = arith.constant 0 : index
    %124 = vector.load %arg12[%c0_91, %c0_92, %c0_93] : memref<1x64x128xf32, #tpu.memory_space<vmem>>, vector<1x64x128xf32>
    %125 = vector.shape_cast %124 : vector<1x64x128xf32> to vector<64x128xf32>
    %126 = vector.shape_cast %123 : vector<64x128xf32> to vector<1x64x128xf32>
    tpu.vector_store %arg12[%c0_91, %c0_92, %c0_93], %126 {strides = array<i32>} : memref<1x64x128xf32, #tpu.memory_space<vmem>>, vector<1x64x128xf32>,
    return
  }
  func.func @transform_0(%arg0: i32, %arg1: i32) -> (i32, i32, i32) {
    %c0_i32 = arith.constant 0 : i32
    %c0_i32_0 = arith.constant 0 : i32
    return %arg0, %arg1, %c0_i32 : i32, i32, i32
  }
  func.func @transform_1(%arg0: i32, %arg1: i32) -> (i32, i32, i32, i32) {
    %c0_i32 = arith.constant 0 : i32
    %c0_i32_0 = arith.constant 0 : i32
    %c0_i32_1 = arith.constant 0 : i32
    %c0_i32_2 = arith.constant 0 : i32
    return %arg0, %c0_i32, %c0_i32_0, %c0_i32_1 : i32, i32, i32, i32
  }
  func.func @transform_2(%arg0: i32, %arg1: i32) -> (i32, i32) {
    %c0_i32 = arith.constant 0 : i32
    %c0_i32_0 = arith.constant 0 : i32
    %c0_i32_1 = arith.constant 0 : i32
    return %c0_i32, %c0_i32_0 : i32, i32
  }
  func.func @transform_3(%arg0: i32, %arg1: i32) -> (i32, i32, i32) {
    %c0_i32 = arith.constant 0 : i32
    %c0_i32_0 = arith.constant 0 : i32
    %c0_i32_1 = arith.constant 0 : i32
    %c0_i32_2 = arith.constant 0 : i32
    return %c0_i32, %c0_i32_0, %c0_i32_1 : i32, i32, i32
  }
  func.func @transform_4(%arg0: i32, %arg1: i32) -> (i32, i32, i32) {
    %c0_i32 = arith.constant 0 : i32
    %c0_i32_0 = arith.constant 0 : i32
    %c0_i32_1 = arith.constant 0 : i32
    %c0_i32_2 = arith.constant 0 : i32
    return %c0_i32, %c0_i32_0, %c0_i32_1 : i32, i32, i32
  }
  func.func @transform_5(%arg0: i32, %arg1: i32) -> (i32, i32, i32) {
    %c0_i32 = arith.constant 0 : i32
    %c0_i32_0 = arith.constant 0 : i32
    %c0_i32_1 = arith.constant 0 : i32
    %c0_i32_2 = arith.constant 0 : i32
    return %c0_i32, %c0_i32_0, %c0_i32_1 : i32, i32, i32
  }
  func.func @transform_6(%arg0: i32, %arg1: i32) -> (i32, i32, i32) {
    %c0_i32 = arith.constant 0 : i32
    %c0_i32_0 = arith.constant 0 : i32
    %c0_i32_1 = arith.constant 0 : i32
    %c0_i32_2 = arith.constant 0 : i32
    return %c0_i32, %c0_i32_0, %c0_i32_1 : i32, i32, i32
  }
  func.func @transform_7(%arg0: i32, %arg1: i32) -> (i32, i32, i32) {
    %c0_i32 = arith.constant 0 : i32
    %c0_i32_0 = arith.constant 0 : i32
    %c0_i32_1 = arith.constant 0 : i32
    %c0_i32_2 = arith.constant 0 : i32
    return %c0_i32, %c0_i32_0, %c0_i32_1 : i32, i32, i32
  }
  func.func @transform_8(%arg0: i32, %arg1: i32) -> (i32, i32) {
    %c0_i32 = arith.constant 0 : i32
    %c0_i32_0 = arith.constant 0 : i32
    %c0_i32_1 = arith.constant 0 : i32
    return %c0_i32, %c0_i32_0 : i32, i32
  }
  func.func @transform_9(%arg0: i32, %arg1: i32) -> (i32, i32) {
    %c0_i32 = arith.constant 0 : i32
    %c0_i32_0 = arith.constant 0 : i32
    %c0_i32_1 = arith.constant 0 : i32
    return %c0_i32, %c0_i32_0 : i32, i32
  }
  func.func @transform_10(%arg0: i32, %arg1: i32) -> (i32, i32, i32) {
    %c0_i32 = arith.constant 0 : i32
    %c0_i32_0 = arith.constant 0 : i32
    return %arg0, %arg1, %c0_i32 : i32, i32, i32
  }
  func.func @transform_11(%arg0: i32, %arg1: i32) -> (i32, i32, i32) {
    %c0_i32 = arith.constant 0 : i32
    %c0_i32_0 = arith.constant 0 : i32
    return %arg0, %arg1, %c0_i32 : i32, i32, i32
  }
}

</mosaic_0001>

<bundles_post_ra>
// kernel: local_pcl_resnet_fc_forward.1
= control target key start
LH: loop header
LB: loop body
LE: loop exit
PB: predicated region body
PF: predicated region fallthrough
CT: control target
= control target key end

     0   :  { %s7187_s17 = smov 0   ;;  %s7189_s18 = smov 0   ;;  %s9708_s0 = inlined_call_operand.vmem [shape: f32[2,64,32], index: 0, kind: input, shape index: {}]   ;;  %s9709_s1 = inlined_call_operand.vmem [shape: f32[2,3,1,256], index: 1, kind: input, shape index: {}]   ;;  %s9710_s2 = inlined_call_operand.vmem [shape: f32[32,256], index: 2, kind: input, shape index: {}]   ;;  %s9711_s3 = inlined_call_operand.vmem [shape: bf16[4,32,256], index: 3, kind: input, shape index: {}]   ;;  %s9712_s4 = inlined_call_operand.vmem [shape: bf16[3,256,256], index: 4, kind: input, shape index: {}]   ;;  %s9713_s5 = inlined_call_operand.vmem [shape: f32[3,1,256], index: 5, kind: input, shape index: {}]   ;;  %s9714_s6 = inlined_call_operand.vmem [shape: bf16[3,256,256], index: 6, kind: input, shape index: {}]   ;;  %s9715_s7 = inlined_call_operand.vmem [shape: f32[3,1,256], index: 7, kind: input, shape index: {}]   ;;  %s9716_s8 = inlined_call_operand.vmem [shape: bf16[256,128], index: 8, kind: input, shape index: {}]   ;;  %s9717_s9 = inlined_call_operand.vmem [shape: f32[1,128], index: 9, kind: input, shape index: {}]   ;;  %s9718_s10 = inlined_call_operand.vmem [shape: f32[2,64,128], index: 10, kind: output, shape index: {0}]   ;;  %s9719_s11 = inlined_call_operand.vmem [shape: f32[2,64,256], index: 11, kind: output, shape index: {1}]  }
   0x1   :  { %s7191_s19 = smov 0  }
   0x2 LB: > { %s34_s20 = sadd.s32 1, %s7113_s18  ;;  %p5999_p0 = scmp.ge.s32.totalorder %s7117_s19, 1  ;;  %s7117_s19 = sphi %s7191_s19, %s22_s19   ;;  %s7113_s18 = sphi %s7189_s18, %s9838_s18   ;;  %s7109_s17 = sphi %s7187_s17, %s9837_s17  }
   0x3   : > { %p36_p1 = scmp.ge.s32.totalorder %s34_s20, 2  ;;  %p372_p2 = scmp.lt.s32.totalorder %s7117_s19, 3 }
   0x5   : > { %s9840_s20 = smov (%p36_p1, %s34_s20), 0  ;;  %p373_p3 = pnand %p5999_p0, %p372_p2 }
   0x7   : > { %376 = sbr.rel (%p373_p3) target bundleno = 2197 (0x895), region = 60 }
   0xe   : > { %v6731_v0 = vld [vmem:[%s9711_s3 + $0x4] ss:$8 sps:$4 sm:$0xff]   ;;  %p435_p4 = scmp.lt.s32.totalorder %s7109_s17, 1  ;;  %v6733_v1 = vld [vmem:[%s9711_s3] ss:$8 sps:$4 sm:$0xff]   ;;  %v9734_v2 = vmov 0  }
   0xf   : > { %2255 = vmatprep.mubr.bf16.mxu0 %v9734_v2  ;;  %2275 = vmatprep.mubr.bf16.mxu1 %v9734_v2  ;;  %v6734_v3 = vld [vmem:[%s9711_s3 + $0x14] ss:$8 sps:$4 sm:$0xff]   ;;  %v7219_v4 = vld [vmem:[%s9710_s2 + $0x8] sm:$0xff]  ;;  %v6736_v5 = vld [vmem:[%s9711_s3 + $0x10] ss:$8 sps:$4 sm:$0xff]  }
  0x10   : > { %2223 = vmatprep.subr.bf16.mxu0 %v6731_v0  ;;  %6550 = vmatprep.subr.bf16.mxu1 %v6731_v0  ;;  %s9842_s17 = smov (!%p435_p4, %s7109_s17), 1  ;;  %v7229_v6 = vld [vmem:[%s9710_s2 + $0x18] sm:$0xff]  ;;  %v9732_v7 = vand.u32 4294901760, %v7219_v4  ;;  %v9753_v50 = vmov 683565275  }
  0x11   : > { %2224 = vmatpush1.bf16.msra.mxu0 %v6733_v1  ;;  %6552 = vmatpush1.bf16.msra.mxu1 %v6733_v1  ;;  %v9731_v8 = vand.u32 4294901760, %v7229_v6  ;;  %s6459_s14 = sshll.u32 %s9842_s17, 6  ;;  %v9742_v52 = vmov 2475754826   ;;  %v9740_v54 = vmov 2131351028  }
  0x12   : > { %2225 = vmatprep.subr.bf16.mxu0 %v6734_v3  ;;  %6551 = vmatprep.subr.bf16.mxu1 %v6734_v3  ;;  %v7237_v9 = vsub.f32 %v7219_v4, %v9732_v7  ;;  %s7244_s21 = scalar_lea.vmem %s9708_s0, %s6459_s14  ;;  %v9738_v56 = vmov 2102212464   ;;  %v9749_v58 = vmov 920167782   ;;  %v9744_v1 = vmov 1326507024   ;;  %s9689_s28 = scalar_lea.vmem %s9718_s10, %s6459_s14 }
  0x13   : > { %v7249_v10 = vsub.f32 %v7229_v6, %v9731_v8  ;;  %v470_v11 = vld [vmem:[%s7244_s21] sm:$0xff]  ;;  %v471_v12 = vld [vmem:[%s7244_s21 + $0x8] sm:$0xff]  ;;  %s6666_s24 = smul.u32 6, %s9842_s17  ;;  %s6461_s15 = sshll.u32 %s9842_s17, 7 }
  0x14   : > { %v9725_v13 = vand.u32 4294901760, %v7237_v9  ;;  %v7254_v14 = vmul.f32 0.62831855, %v470_v11  ;;  %v7257_v16 = vmul.f32 0.62831855, %v471_v12  ;;  %v474_v20 = vld [vmem:[%s7244_s21 + $0x20] sm:$0xff] }
  0x15   : > { %2226 = vmatpush1.bf16.msra.mxu0 %v6736_v5  ;;  %6553 = vmatpush1.bf16.msra.mxu1 %v6736_v5  ;;  %v9724_v15 = vand.u32 4294901760, %v7249_v10  ;;  %v7274_v29 = vmul.f32 0.62831855, %v474_v20  ;;  %v475_v35 = vld [vmem:[%s7244_s21 + $0x28] sm:$0xff]  ;;  %s8843_s27 = scalar_lea.vmem %s9709_s1, %s6666_s24 }
  0x16   : > { %v2484_v17 = vsub.f32 %v7237_v9, %v9725_v13  ;;  %v486_v18 = vand.u32 2147483647, %v7254_v14  ;;  %v489_v19 = vand.u32 2139095040, %v7254_v14  ;;  %v590_v22 = vand.u32 2147483647, %v7257_v16  ;;  %v7749_v13 = vld [vmem:[%s7244_s21 + $0x30] sm:$0xff] }
  0x17   : > { %v2496_v21 = vsub.f32 %v7249_v10, %v9724_v15  ;;  %v593_v27 = vand.u32 2139095040, %v7257_v16  ;;  %9770 = vst [vmem:[#allocation2_spill] sm:$0xff] %v7274_v29  ;;  %v905_v38 = vand.u32 2139095040, %v7274_v29  ;;  %v7278_v41 = vmul.f32 0.62831855, %v475_v35 }
  0x18   : > { %v2485_v23 = vand.u32 4294901760, %v2484_v17  ;;  %v490_v24 = vshrl.u32 %v489_v19, 23  ;;  %v493_v25 = vand.u32 8388607, %v486_v18  ;;  %v597_v28 = vand.u32 8388607, %v590_v22 }
  0x19   : > { %v2497_v26 = vand.u32 4294901760, %v2496_v21  ;;  %v594_v32 = vshrl.u32 %v593_v27, 23  ;;  %9771 = vst [vmem:[#allocation3_spill] sm:$0xff] %v7278_v41  ;;  %v902_v45 = vand.u32 2147483647, %v7274_v29  ;;  %v7285_v47 = vshrl.u32 %v905_v38, 23 }
  0x1a   : > { %v6006_v30 = vadd.s32 4294967169, %v490_v24  ;;  %v494_v33 = vor.u32 8388608, %v493_v25  ;;  %v598_v37 = vor.u32 8388608, %v597_v28  ;;  %v1006_v48 = vand.u32 2147483647, %v7278_v41 }
  0x1b   : > { %v6510_v31 = vpack.c.bf16 %v2497_v26, %v2485_v23  ;;  %v6010_v36 = vadd.s32 4294967169, %v594_v32  ;;  %vm488_vm13 = vcmp.lt.s32.totalorder %v7254_v14, 0  ;;  %vm7363_vm14 = vcmp.le.f32.partialorder %v486_v18, 0.7853982 }
  0x1c   : > { %v496_v34 = vadd.s32 1, %v6006_v30  ;;  %v7280_v44 = vshll.u32 %v494_v33, 8  ;;  %v7283_v46 = vshll.u32 %v598_v37, 8  ;;  %vm592_vm15 = vcmp.lt.s32.totalorder %v7257_v16, 0 }
  0x1d   : > { %6511 = vmatprep.subr.bf16.mxu0 %v6510_v31  ;;  %v600_v40 = vadd.s32 1, %v6010_v36 }
  0x1e   : > { %vm497_vm0 = vcmp.gt.s32.totalorder %v496_v34, 0 }
  0x1f   : > { %v498_v39 = vsel %vm497_vm0, %v496_v34, 0  ;;  %vm601_vm1 = vcmp.gt.s32.totalorder %v600_v40, 0 }
  0x20   : > { %v499_v42 = vshrl.u32 %v498_v39, 5  ;;  %v500_v43 = vand.u32 31, %v498_v39  ;;  %v602_v17 = vsel %vm601_vm1, %v600_v40, 0 }
  0x21   : > { %v603_v21 = vshrl.u32 %v602_v17, 5  ;;  %v604_v23 = vand.u32 31, %v602_v17 }
  0x22   : > { %v501_v49 = vsub.s32 32, %v500_v43  ;;  %v503_v51 = vshll.u32 %v9753_v50, %v500_v43  ;;  %v506_v53 = vshll.u32 %v9742_v52, %v500_v43  ;;  %v509_v55 = vshll.u32 %v9740_v54, %v500_v43 }
  0x23   : > { %v512_v57 = vshll.u32 %v9738_v56, %v500_v43  ;;  %v515_v59 = vshll.u32 %v9749_v58, %v500_v43  ;;  %vm518_vm2 = vcmp.lt.s32.totalorder %v499_v42, 1  ;;  %vm519_vm3 = vcmp.lt.s32.totalorder %v499_v42, 2 }
  0x24   : > { %v502_v60 = vshrl.u32 %v9753_v50, %v501_v49  ;;  %v504_v61 = vshrl.u32 %v9742_v52, %v501_v49  ;;  %v507_v62 = vshrl.u32 %v9740_v54, %v501_v49  ;;  %v510_v63 = vshrl.u32 %v9738_v56, %v501_v49 }
  0x25   : > { %v513_v0 = vshrl.u32 %v9749_v58, %v501_v49  ;;  %v516_v3 = vshrl.u32 %v9744_v1, %v501_v49  ;;  %vm520_vm4 = vcmp.lt.s32.totalorder %v499_v42, 3  ;;  %vm521_vm5 = vcmp.lt.s32.totalorder %v499_v42, 4 }
  0x26   : > { %v505_v5 = vor.u32 %v504_v61, %v503_v51  ;;  %v508_v11 = vor.u32 %v507_v62, %v506_v53  ;;  %v511_v12 = vor.u32 %v510_v63, %v509_v55  ;;  %v605_v32 = vsub.s32 32, %v604_v23 }
  0x27   : > { %v514_v19 = vor.u32 %v513_v0, %v512_v57  ;;  %v517_v20 = vor.u32 %v516_v3, %v515_v59  ;;  %v607_v36 = vshll.u32 %v9753_v50, %v604_v23  ;;  %v610_v57 = vshll.u32 %v9742_v52, %v604_v23 }
  0x28   : > { %v522_v24 = vsel %vm518_vm2, %v502_v60, %v505_v5  ;;  %v523_v25 = vsel %vm521_vm5, %v511_v12, 2102212464  ;;  %v526_v26 = vsel %vm518_vm2, %v505_v5, %v508_v11  ;;  %v530_v27 = vsel %vm518_vm2, %v508_v11, %v511_v12 }
  0x29   : > { %v524_v28 = vsel %vm520_vm4, %v508_v11, %v523_v25  ;;  %v527_v30 = vsel %vm521_vm5, %v514_v19, 920167782  ;;  %v531_v31 = vsel %vm521_vm5, %v517_v20, 1326507024  ;;  %v606_v40 = vshrl.u32 %v9753_v50, %v605_v32 }
  0x2a   : > { %v525_v33 = vsel %vm519_vm3, %v522_v24, %v524_v28  ;;  %v528_v34 = vsel %vm520_vm4, %v511_v12, %v527_v30  ;;  %v532_v35 = vsel %vm520_vm4, %v514_v19, %v531_v31  ;;  %v608_v55 = vshrl.u32 %v9742_v52, %v605_v32 }
  0x2b   : > { %v529_v37 = vsel %vm519_vm3, %v526_v26, %v528_v34  ;;  %v533_v38 = vsel %vm519_vm3, %v530_v27, %v532_v35  ;;  %v541_v39 = vmul.u32 %v7280_v44, %v525_v33  ;;  %v611_v42 = vshrl.u32 %v9740_v54, %v605_v32 }
  0x2c   : > { %v7313_v43 = vmul.u32.u64.low %v7280_v44, %v533_v38  ;;  %v7314_v49 = vmul.u32.u64.high %v7280_v44, %v533_v38, %v7313_v43  ;;  %v7317_v51 = vmul.u32.u64.low %v7280_v44, %v529_v37  ;;  %v7318_v53 = vmul.u32.u64.high %v7280_v44, %v529_v37, %v7317_v51 }
  0x2d   : > { %v613_v59 = vshll.u32 %v9740_v54, %v604_v23  ;;  %v614_v60 = vshrl.u32 %v9738_v56, %v605_v32  ;;  %v616_v61 = vshll.u32 %v9738_v56, %v604_v23  ;;  %v617_v62 = vshrl.u32 %v9749_v58, %v605_v32 }
  0x2e   : > { %v619_v63 = vshll.u32 %v9749_v58, %v604_v23  ;;  %v609_v0 = vor.u32 %v608_v55, %v607_v36  ;;  %v612_v44 = vor.u32 %v611_v42, %v610_v57  ;;  %v620_v3 = vshrl.u32 %v9744_v1, %v605_v32 }
  0x2f   : > { %vm622_vm6 = vcmp.lt.s32.totalorder %v603_v21, 1  ;;  %vm543_vm7 = vc.u32 %v7314_v49, %v7317_v51  ;;  %v544_v5 = vadd.s32 1, %v7318_v53  ;;  %v615_v11 = vor.u32 %v614_v60, %v613_v59 }
  0x30   : > { %v6022_v12 = vadd.s32 4294967169, %v7285_v47  ;;  %v618_v17 = vor.u32 %v617_v62, %v616_v61  ;;  %v621_v19 = vor.u32 %v620_v3, %v619_v63  ;;  %vm623_vm8 = vcmp.lt.s32.totalorder %v603_v21, 2 }
  0x31   : > { %vm624_vm9 = vcmp.lt.s32.totalorder %v603_v21, 3  ;;  %v545_v20 = vsel %vm543_vm7, %v544_v5, %v7318_v53  ;;  %vm625_vm10 = vcmp.lt.s32.totalorder %v603_v21, 4  ;;  %v626_v23 = vsel %vm622_vm6, %v606_v40, %v609_v0 }
  0x32   : > { %v630_v24 = vsel %vm622_vm6, %v609_v0, %v612_v44  ;;  %v546_v25 = vadd.s32 %v545_v20, %v541_v39  ;;  %v627_v26 = vsel %vm625_vm10, %v615_v11, 2102212464  ;;  %v631_v27 = vsel %vm625_vm10, %v618_v17, 920167782 }
  0x33   : > { %v634_v28 = vsel %vm622_vm6, %v612_v44, %v615_v11  ;;  %v628_v30 = vsel %vm624_vm9, %v612_v44, %v627_v26  ;;  %v632_v31 = vsel %vm624_vm9, %v615_v11, %v631_v27  ;;  %v635_v32 = vsel %vm625_vm10, %v621_v19, 1326507024 }
  0x34   : > { %v912_v47 = vadd.s32 1, %v6022_v12  ;;  %v547_v33 = vadd.s32 536870912, %v546_v25  ;;  %v633_v34 = vsel %vm623_vm8, %v630_v24, %v632_v31  ;;  %v636_v35 = vsel %vm624_vm9, %v618_v17, %v635_v32 }
  0x35   : > { %v1009_v36 = vand.u32 2139095040, %v7278_v41  ;;  %v629_v37 = vsel %vm623_vm8, %v626_v23, %v628_v30  ;;  %v637_v38 = vsel %vm623_vm8, %v634_v28, %v636_v35  ;;  %v909_v57 = vand.u32 8388607, %v902_v45 }
  0x36   : > { %v7343_v39 = vmul.u32.u64.low %v7283_v46, %v633_v34  ;;  %v7344_v40 = vmul.u32.u64.high %v7283_v46, %v633_v34, %v7343_v39  ;;  %v548_v43 = vshrl.u32 %v547_v33, 30  ;;  %vm913_vm11 = vcmp.gt.s32.totalorder %v912_v47, 0 }
  0x37   : > { %v7347_v53 = vmul.u32.u64.low %v7283_v46, %v637_v38  ;;  %v7348_v55 = vmul.u32.u64.high %v7283_v46, %v637_v38, %v7347_v53  ;;  %v914_v42 = vsel %vm913_vm11, %v912_v47, 0  ;;  %v645_v60 = vmul.u32 %v7283_v46, %v629_v37 }
  0x38   : > { %v549_v59 = vshll.u32 %v548_v43, 30  ;;  %v1010_v61 = vshrl.u32 %v1009_v36, 23  ;;  %v648_v21 = vadd.s32 1, %v7344_v40  ;;  %v1013_v62 = vand.u32 8388607, %v1006_v48 }
  0x39   : > { %v572_v0 = vsub.s32 4, %v548_v43  ;;  %vm647_vm12 = vc.u32 %v7348_v55, %v7343_v39  ;;  %v916_v44 = vand.u32 31, %v914_v42  ;;  %v910_v5 = vor.u32 8388608, %v909_v57 }
  0x3a   : > { %v550_v63 = vsub.s32 %v546_v25, %v549_v59  ;;  %v649_v3 = vsel %vm647_vm12, %v648_v21, %v7344_v40  ;;  %v6026_v17 = vadd.s32 4294967169, %v1010_v61  ;;  %v1014_v46 = vor.u32 8388608, %v1013_v62 }
  0x3b   : > { %v650_v12 = vadd.s32 %v649_v3, %v645_v60  ;;  %v573_v20 = vsel %vm488_vm13, %v572_v0, %v548_v43  ;;  %v917_v24 = vsub.s32 32, %v916_v44  ;;  %v7367_v26 = vshll.u32 %v910_v5, 8 }
  0x3c   : > { %v552_v11 = vsub.s32 0, %v550_v63  ;;  %v542_v27 = vadd.s32 %v7317_v51, %v7314_v49  ;;  %v7371_v30 = vshrl.u32 %v914_v42, 5  ;;  %v7373_v31 = vadd.s32 1, %v6026_v17 }
  0x3d   : > { %v651_v23 = vadd.s32 536870912, %v650_v12  ;;  %v7377_v32 = vsel %vm7363_vm14, 0, %v573_v20  ;;  %v7380_v47 = vadd.s32 %v7343_v39, %v7348_v55  ;;  %v7382_v33 = vshll.u32 %v1014_v46, 8 }
  0x3e   : > { %v6007_v19 = vmin.u32 %v552_v11, %v550_v63  ;;  %v919_v35 = vshll.u32 %v9753_v50, %v916_v44  ;;  %v925_v49 = vshll.u32 %v9740_v54, %v916_v44  ;;  %v926_v51 = vshrl.u32 %v9738_v56, %v917_v24 }
  0x3f   : > { %v652_v18 = vshrl.u32 %v651_v23, 30  ;;  %v918_v37 = vshrl.u32 %v9753_v50, %v917_v24  ;;  %v920_v38 = vshrl.u32 %v9742_v52, %v917_v24  ;;  %v922_v39 = vshll.u32 %v9742_v52, %v916_v44 }
  0x40   : > { %v554_v28 = vclz %v6007_v19  ;;  %v923_v40 = vshrl.u32 %v9740_v54, %v917_v24  ;;  %v928_v43 = vshll.u32 %v9738_v56, %v916_v44  ;;  %v929_v53 = vshrl.u32 %v9749_v58, %v917_v24 }
  0x41   : > { %v653_v36 = vshll.u32 %v652_v18, 30  ;;  %v931_v42 = vshll.u32 %v9749_v58, %v916_v44  ;;  %v932_v59 = vshrl.u32 %v9744_v1, %v917_v24  ;;  %v927_v62 = vor.u32 %v926_v51, %v925_v49 }
  0x42   : > { %v6008_v34 = vadd.s32 4294967294, %v554_v28  ;;  %v676_v3 = vsub.s32 4, %v652_v18  ;;  %v921_v5 = vor.u32 %v920_v38, %v919_v35  ;;  %vm937_vm1 = vcmp.lt.s32.totalorder %v7371_v30, 4 }
  0x43   : > { %v7394_v57 = vsub.s32 %v650_v12, %v653_v36  ;;  %v924_v46 = vor.u32 %v923_v40, %v922_v39  ;;  %v939_v12 = vsel %vm937_vm1, %v927_v62, 2102212464  ;;  %v930_v19 = vor.u32 %v929_v53, %v928_v43 }
  0x44   : > { %vm6009_vm0 = vcmp.lt.s32.totalorder %v6008_v34, 0  ;;  %v933_v20 = vor.u32 %v932_v59, %v931_v42  ;;  %vm934_vm2 = vcmp.lt.s32.totalorder %v7371_v30, 1  ;;  %v579_v24 = vadd.s32 3, %v7377_v32 }
  0x45   : > { %v557_v55 = vsel %vm6009_vm0, 0, %v6008_v34  ;;  %v656_v0 = vsub.s32 0, %v7394_v57  ;;  %vm7407_vm3 = vcmp.le.f32.partialorder %v590_v22, 0.7853982  ;;  %vm936_vm4 = vcmp.lt.s32.totalorder %v7371_v30, 3 }
  0x46   : > { %v558_v60 = vsub.s32 32, %v557_v55  ;;  %v559_v61 = vshll.u32 %v550_v63, %v557_v55  ;;  %v562_v21 = vsub.s32 4294967266, %v557_v55  ;;  %vm935_vm5 = vcmp.lt.s32.totalorder %v7371_v30, 2 }
  0x47   : > { %v6011_v44 = vmin.u32 %v656_v0, %v7394_v57  ;;  %v938_v34 = vsel %vm934_vm2, %v918_v37, %v921_v5  ;;  %v940_v35 = vsel %vm936_vm4, %v924_v46, %v939_v12  ;;  %v677_v36 = vsel %vm592_vm15, %v676_v3, %v652_v18 }
  0x48   : > { %v560_v11 = vshrl.u32 %v542_v27, %v558_v60  ;;  %v563_v17 = vadd.s32 127, %v562_v21  ;;  %v942_v22 = vsel %vm934_vm2, %v921_v5, %v924_v46  ;;  %v943_v39 = vsel %vm937_vm1, %v930_v19, 920167782 }
  0x49   : > { %v658_v27 = vclz %v6011_v44  ;;  %v946_v40 = vsel %vm934_vm2, %v924_v46, %v927_v62  ;;  %v947_v37 = vsel %vm937_vm1, %v933_v20, 1326507024  ;;  %v941_v53 = vsel %vm935_vm5, %v938_v34, %v940_v35 }
  0x4a   : > { %v561_v63 = vor.u32 %v560_v11, %v559_v61  ;;  %v564_v23 = vshll.u32 %v563_v17, 23  ;;  %v944_v18 = vsel %vm936_vm4, %v927_v62, %v943_v39  ;;  %v948_v55 = vsel %vm936_vm4, %v930_v19, %v947_v37  ;;  %v7447_v17 = vld [vmem:[%s9710_s2] sm:$0xff] }
  0x4b   : > { %v6012_v38 = vadd.s32 4294967294, %v658_v27  ;;  %v945_v42 = vsel %vm935_vm5, %v942_v22, %v944_v18  ;;  %v949_v59 = vsel %vm935_vm5, %v946_v40, %v948_v55  ;;  %vm1017_vm7 = vcmp.gt.s32.totalorder %v7373_v31, 0 }
  0x4c   : > { %v565_v49 = vor.u32 4788187, %v564_v23  ;;  %v568_v51 = vcvt.s32.f32 %v561_v63  ;;  %v7439_v21 = vmul.u32.u64.low %v7367_v26, %v949_v59  ;;  %v7440_v0 = vmul.u32.u64.high %v7367_v26, %v949_v59, %v7439_v21 }
  0x4d   : > { %vm6013_vm6 = vcmp.lt.s32.totalorder %v6012_v38, 0  ;;  %v1018_v11 = vsel %vm1017_vm7, %v7373_v31, 0  ;;  %v7450_v46 = vand.u32 3, %v7377_v32  ;;  %v7461_v23 = vand.u32 3, %v579_v24 }
  0x4e   : > { %v566_v43 = vand.u32 2147483647, %v565_v49  ;;  %v661_v61 = vsel %vm6013_vm6, 0, %v6012_v38  ;;  %v7453_v12 = vmul.u32.u64.low %v7367_v26, %v945_v42  ;;  %v7454_v44 = vmul.u32.u64.high %v7367_v26, %v945_v42, %v7453_v12 }
  0x4f   : > { %v662_v3 = vsub.s32 32, %v661_v61  ;;  %v663_v62 = vshll.u32 %v7394_v57, %v661_v61  ;;  %v666_v5 = vsub.s32 4294967266, %v661_v61  ;;  %v679_v57 = vsel %vm7407_vm3, 0, %v677_v36 }
  0x50   : > { %v569_v60 = vmul.f32 %v568_v51, %v566_v43  ;;  %v1020_v31 = vand.u32 31, %v1018_v11  ;;  %v957_v27 = vmul.u32 %v7367_v26, %v941_v53  ;;  %vm959_vm8 = vc.u32 %v7440_v0, %v7453_v12  ;;  %v7475_v26 = vld [vmem:[%s9710_s2 + $0x10] sm:$0xff] }
  0x51   : > { %v664_v19 = vshrl.u32 %v7380_v47, %v662_v3  ;;  %v667_v20 = vadd.s32 127, %v666_v5  ;;  %v683_v49 = vadd.s32 3, %v679_v57  ;;  %v960_v51 = vadd.s32 1, %v7454_v44 }
  0x52   : > { %v570_v30 = vxor.u32 2147483648, %v569_v60  ;;  %v1021_v35 = vsub.s32 32, %v1020_v31  ;;  %v9729_v36 = vand.u32 4294901760, %v7447_v17  ;;  %v7470_v38 = vand.u32 3, %v679_v57 }
  0x53   : > { %v665_v34 = vor.u32 %v664_v19, %v663_v62  ;;  %v668_v47 = vshll.u32 %v667_v20, 23  ;;  %vm585_vm9 = vcmp.eq.s32.totalorder %v7461_v23, 2  ;;  %vm1416_vm10 = vcmp.eq.s32.totalorder %v7450_v46, 2 }
  0x54   : > { %v571_v63 = vsel %vm488_vm13, %v570_v30, %v569_v60  ;;  %v961_v25 = vsel %vm959_vm8, %v960_v51, %v7454_v44  ;;  %v7482_v39 = vshrl.u32 %v1018_v11, 5  ;;  %v1023_v40 = vshll.u32 %v9753_v50, %v1020_v31 }
  0x55   : > { %v574_v32 = vsel %vm7363_vm14, %v7254_v14, %v571_v63  ;;  %v669_v24 = vor.u32 4788187, %v668_v47  ;;  %v672_v22 = vcvt.s32.f32 %v665_v34  ;;  %v1026_v37 = vshll.u32 %v9742_v52, %v1020_v31 }
  0x56   : > { %7059 = vcosq.f32 %v574_v32  ;;  %vm582_vm11 = vcmp.eq.s32.totalorder %v7461_v23, 0  ;;  %vm1413_vm12 = vcmp.eq.s32.totalorder %v7450_v46, 0  ;;  %v962_v53 = vadd.s32 %v961_v25, %v957_v27 }
  0x57   : > { %7061 = vsinq.f32 %v574_v32  ;;  %v670_v43 = vand.u32 2147483647, %v669_v24  ;;  %v1024_v18 = vshrl.u32 %v9742_v52, %v1021_v35  ;;  %v1032_v55 = vshll.u32 %v9738_v56, %v1020_v31 }
  0x58   : > { %vm581_vm13 = vcmp.lt.s32.totalorder %v7461_v23, 2  ;;  %vm1412_vm14 = vcmp.lt.s32.totalorder %v7450_v46, 2  ;;  %v1027_v42 = vshrl.u32 %v9740_v54, %v1021_v35  ;;  %v1029_v59 = vshll.u32 %v9740_v54, %v1020_v31 }
  0x59   : > { %v1033_v60 = vshrl.u32 %v9749_v58, %v1021_v35  ;;  %v1035_v61 = vshll.u32 %v9749_v58, %v1020_v31  ;;  %vm578_vm0 = vweird.f32 %v7254_v14  ;;  %v673_v21 = vmul.f32 %v672_v22, %v670_v43  ;;  %v7581_v14 = vld [vmem:[%s9710_s2 + $0x28] sm:$0xff] }
  0x5a   : > { %v963_v3 = vadd.s32 536870912, %v962_v53  ;;  %v1030_v62 = vshrl.u32 %v9738_v56, %v1021_v35  ;;  %v1036_v5 = vshrl.u32 %v9744_v1, %v1021_v35  ;;  %v7499_v11 = vand.u32 3, %v683_v49 }
  0x5b   : > { %v1022_v30 = vshrl.u32 %v9753_v50, %v1021_v35  ;;  %v1034_v44 = vor.u32 %v1033_v60, %v1032_v55  ;;  %v9728_v19 = vand.u32 4294901760, %v7475_v26  ;;  %v674_v20 = vxor.u32 2147483648, %v673_v21 }
  0x5c   : > { %v7503_v57 = vshrl.u32 %v963_v3, 30  ;;  %v1037_v63 = vor.u32 %v1036_v5, %v1035_v61  ;;  %vm1041_vm1 = vcmp.lt.s32.totalorder %v7482_v39, 4  ;;  %v7507_v31 = vadd.s32 %v7453_v12, %v7440_v0 }
  0x5d   : > { %v1025_v27 = vor.u32 %v1024_v18, %v1023_v40  ;;  %v1028_v32 = vor.u32 %v1027_v42, %v1026_v37  ;;  %vm1038_vm2 = vcmp.lt.s32.totalorder %v7482_v39, 1  ;;  %v675_v34 = vsel %vm592_vm15, %v674_v20, %v673_v21 }
  0x5e   : > { %v965_v47 = vshll.u32 %v7503_v57, 30  ;;  %v1031_v35 = vor.u32 %v1030_v62, %v1029_v59  ;;  %vm1039_vm4 = vcmp.lt.s32.totalorder %v7482_v39, 2  ;;  %v678_v51 = vsel %vm7407_vm3, %v7257_v16, %v675_v34 }
  0x5f   : > { %vm1040_vm5 = vcmp.lt.s32.totalorder %v7482_v39, 3  ;;  %v1042_v0 = vsel %vm1038_vm2, %v1022_v30, %v1025_v27  ;;  %v1047_v12 = vsel %vm1041_vm1, %v1034_v44, 920167782  ;;  %7063 = vcosq.f32 %v678_v51 }
  0x60   : > { %v7060_v49 = vpop.eup %7059  ;;  %v7522_v25 = vsub.s32 %v962_v53, %v965_v47  ;;  %v1051_v40 = vsel %vm1041_vm1, %v1037_v63, 1326507024  ;;  %7065 = vsinq.f32 %v678_v51  ;;  %v1043_v28 = vsel %vm1041_vm1, %v1031_v35, 2102212464 }
  0x61   : > { %v7062_v24 = vpop.eup %7061  ;;  %v586_v22 = vxor.u32 2147483648, %v7060_v49  ;;  %v1046_v43 = vsel %vm1038_vm2, %v1025_v27, %v1028_v32  ;;  %vm689_vm15 = vcmp.eq.s32.totalorder %v7499_v11, 2  ;;  %vm1519_vm3 = vcmp.eq.s32.totalorder %v7470_v38, 2 }
  0x62   : > { %v583_v37 = vxor.u32 2147483648, %v7062_v24  ;;  %v968_v55 = vsub.s32 0, %v7522_v25  ;;  %v1050_v42 = vsel %vm1038_vm2, %v1028_v32, %v1031_v35  ;;  %vm686_vm6 = vcmp.eq.s32.totalorder %v7499_v11, 0 }
  0x63   : > { %v587_v18 = vsel %vm585_vm9, %v586_v22, %v7062_v24  ;;  %v1418_v53 = vsel %vm1416_vm10, %v586_v22, %v7062_v24  ;;  %vm1516_vm7 = vcmp.eq.s32.totalorder %v7470_v38, 0  ;;  %v1048_v61 = vsel %vm1040_vm5, %v1031_v35, %v1047_v12  ;;  %v7593_v12 = vld [vmem:[%s9710_s2 + $0x38] sm:$0xff] }
  0x64   : > { %v584_v59 = vsel %vm582_vm11, %v7060_v49, %v583_v37  ;;  %v1415_v60 = vsel %vm1413_vm12, %v7060_v49, %v583_v37  ;;  %v1052_v21 = vsel %vm1040_vm5, %v1034_v44, %v1051_v40  ;;  %vm685_vm8 = vcmp.lt.s32.totalorder %v7499_v11, 2 }
  0x65   : > { %v588_v3 = vsel %vm581_vm13, %v584_v59, %v587_v18  ;;  %v1419_v62 = vsel %vm1412_vm14, %v1415_v60, %v1418_v53  ;;  %vm1515_vm9 = vcmp.lt.s32.totalorder %v7470_v38, 2  ;;  %v6023_v5 = vmin.u32 %v968_v55, %v7522_v25 }
  0x66   : > { %v1044_v30 = vsel %vm1040_vm5, %v1028_v32, %v1043_v28  ;;  %v7560_v20 = vsel %vm578_vm0, nan, %v588_v3  ;;  %vm682_vm10 = vweird.f32 %v7257_v16  ;;  %v7565_v23 = vsel %vm578_vm0, nan, %v1419_v62 }
  0x67   : > { %v1053_v46 = vsel %vm1039_vm4, %v1050_v42, %v1052_v21  ;;  %v7572_v44 = vsub.f32 %v7447_v17, %v9729_v36  ;;  %v2142_v63 = vmul.f32 2.0, %v7560_v20  ;;  %v970_v27 = vclz %v6023_v5 }
  0x68   : > { %v988_v32 = vsub.s32 4, %v7503_v57  ;;  %v1049_v34 = vsel %vm1039_vm4, %v1046_v43, %v1048_v61  ;;  %v1045_v47 = vsel %vm1039_vm4, %v1042_v0, %v1044_v30  ;;  %vm2210_vm11 = vcmask 261120  }
  0x69   : > { %v7586_v35 = vmul.u32.u64.low %v7382_v33, %v1053_v46  ;;  %v7587_v49 = vmul.u32.u64.high %v7382_v33, %v1053_v46, %v7586_v35  ;;  %v9723_v51 = vand.u32 4294901760, %v7572_v44  ;;  %v7596_v24 = vmul.f32 %v2142_v63, %v7565_v23  ;;  %v7064_v18 = vpop.eup %7063 }
  0x6a   : > { %v7599_v22 = vmul.f32 %v2142_v63, %v7560_v20  ;;  %v6024_v39 = vadd.s32 4294967294, %v970_v27  ;;  %v7604_v0 = vsub.f32 %v7475_v26, %v9728_v19  ;;  %v9727_v43 = vand.u32 4294901760, %v7581_v14  ;;  %v7066_v59 = vpop.eup %7065 }
  0x6b   : > { %9776 = vst [vmem:[#allocation4_spill] sm:$0xff] %v7596_v24  ;;  %v7607_v40 = vmul.u32.u64.low %v7382_v33, %v1049_v34  ;;  %v7608_v37 = vmul.u32.u64.high %v7382_v33, %v1049_v34, %v7607_v40  ;;  %v2490_v28 = vsub.f32 %v7572_v44, %v9723_v51  ;;  %v9726_v42 = vand.u32 4294901760, %v7593_v12 }
  0x6c   : > { %v2166_v53 = vsub.f32 1.0, %v7599_v22  ;;  %vm6025_vm12 = vcmp.lt.s32.totalorder %v6024_v39, 0  ;;  %v9722_v55 = vand.u32 4294901760, %v7604_v0  ;;  %v690_v60 = vxor.u32 2147483648, %v7064_v18 }
  0x6d   : > { %v973_v61 = vsel %vm6025_vm12, 0, %v6024_v39  ;;  %v1061_v21 = vmul.u32 %v7382_v33, %v1045_v47  ;;  %vm1063_vm13 = vc.u32 %v7587_v49, %v7607_v40  ;;  %v687_v3 = vxor.u32 2147483648, %v7066_v59 }
  0x6e   : > { %v974_v62 = vsub.s32 32, %v973_v61  ;;  %v975_v5 = vshll.u32 %v7522_v25, %v973_v61  ;;  %v978_v30 = vsub.s32 4294967266, %v973_v61  ;;  %v691_v46 = vsel %vm689_vm15, %v690_v60, %v7066_v59 }
  0x6f   : > { %v1521_v63 = vsel %vm1519_vm3, %v690_v60, %v7066_v59  ;;  %v1064_v27 = vadd.s32 1, %v7608_v37  ;;  %v2491_v34 = vand.u32 4294901760, %v2490_v28  ;;  %v688_v33 = vsel %vm686_vm6, %v7064_v18, %v687_v3 }
  0x70   : > { %v1518_v47 = vsel %vm1516_vm7, %v7064_v18, %v687_v3  ;;  %v976_v35 = vshrl.u32 %v7507_v31, %v974_v62  ;;  %v979_v25 = vadd.s32 127, %v978_v30  ;;  %v692_v22 = vsel %vm685_vm8, %v688_v33, %v691_v46  ;;  %v7650_v62 = vld [vmem:[%s7244_s21 + $0x10] sm:$0xff] }
  0x71   : > { %v1522_v39 = vsel %vm1515_vm9, %v1518_v47, %v1521_v63  ;;  %v1065_v59 = vsel %vm1063_vm13, %v1064_v27, %v7608_v37  ;;  %v2502_v28 = vsub.f32 %v7604_v0, %v9722_v55  ;;  %v693_v60 = vsel %vm682_vm10, nan, %v692_v22 }
  0x72   : > { %v7644_v18 = vsel %vm682_vm10, nan, %v1522_v39  ;;  %v977_v31 = vor.u32 %v976_v35, %v975_v5  ;;  %v980_v61 = vshll.u32 %v979_v25, 23  ;;  %v2143_v11 = vmul.f32 2.0, %v693_v60 }
  0x73   : > { %v2182_v3 = vpack.c.bf16 %v693_v60, %v7560_v20  ;;  %v1066_v37 = vadd.s32 %v1065_v59, %v1061_v21  ;;  %v2503_v63 = vand.u32 4294901760, %v2502_v28  ;;  %v7655_v16 = vsub.f32 %v7581_v14, %v9727_v43 }
  0x74   : > { %v981_v30 = vor.u32 4788187, %v980_v61  ;;  %v984_v46 = vcvt.s32.f32 %v977_v31  ;;  %v7658_v5 = vmul.f32 %v2143_v11, %v7644_v18  ;;  %v2159_v27 = vmul.f32 %v2143_v11, %v693_v60 }
  0x75   : > { %6074 = vmatmul.mubr.msk.bf16.vlgmr.msra.gmra.mrb[0].mxu0 %vm2210_vm11, %v2182_v3  ;;  %v1067_v20 = vadd.s32 536870912, %v1066_v37  ;;  %v7664_v21 = vsub.f32 %v7593_v12, %v9726_v42  ;;  %v6512_v47 = vpack.c.bf16 %v2503_v63, %v2491_v34  ;;  %v9721_v35 = vand.u32 4294901760, %v7655_v16 }
  0x76   : > { %9777 = vst [vmem:[#allocation5_spill] sm:$0xff] %v7658_v5  ;;  %v982_v33 = vand.u32 2147483647, %v981_v30  ;;  %2265 = vmatprep.mubr.bf16.mxu0 %v9734_v2  ;;  %v7669_v25 = vmul.f32 0.62831855, %v7650_v62  ;;  %v2167_v22 = vsub.f32 1.0, %v2159_v27  ;;  %vm994_vm13 = vweird.f32 %v7274_v29 }
  0x77   : > { %v1068_v59 = vshrl.u32 %v1067_v20, 30  ;;  %v9720_v28 = vand.u32 4294901760, %v7664_v21  ;;  %vm904_vm14 = vcmp.lt.s32.totalorder %v7274_v29, 0  ;;  %6513 = vmatpush1.bf16.msra.mxu0 %v6512_v47  ;;  %v2508_v34 = vsub.f32 %v7655_v16, %v9721_v35 }
  0x78   : > { %v985_v60 = vmul.f32 %v984_v46, %v982_v33  ;;  %v7678_v31 = vpack.c.bf16 %v2167_v22, %v2166_v53  ;;  %v989_v30 = vsel %vm904_vm14, %v988_v32, %v7503_v57  ;;  %v7689_v33 = vld [vmem:[%s7244_s21 + $0x18] sm:$0xff]  ;;  %v697_v53 = vand.u32 2139095040, %v7669_v25 }
  0x79   : > { %v1069_v61 = vshll.u32 %v1068_v59, 30  ;;  %v1092_v11 = vsub.s32 4, %v1068_v59  ;;  %v2520_v3 = vsub.f32 %v7664_v21, %v9720_v28  ;;  %v2509_v46 = vand.u32 4294901760, %v2508_v34 }
  0x7a   : > { %9778 = vst [vmem:[#allocation6_spill] sm:$0xff] %v7678_v31  ;;  %v986_v63 = vxor.u32 2147483648, %v985_v60  ;;  %vm7694_vm0 = vcmp.le.f32.partialorder %v902_v45, 0.7853982  ;;  %vm1008_vm1 = vcmp.lt.s32.totalorder %v7278_v41, 0  ;;  %v698_v45 = vshrl.u32 %v697_v53, 23 }
  0x7b   : > { %v1070_v27 = vsub.s32 %v1066_v37, %v1069_v61  ;;  %v2521_v20 = vand.u32 4294901760, %v2520_v3  ;;  %v9733_v22 = vand.u32 2147483647, %v7669_v25  ;;  %v7702_v57 = vsel %vm7694_vm0, 0, %v989_v30 }
  0x7c   : > { %v1093_v37 = vsel %vm1008_vm1, %v1092_v11, %v1068_v59  ;;  %v7707_v61 = vmul.f32 0.62831855, %v7689_v33  ;;  %v987_v3 = vsel %vm904_vm14, %v986_v63, %v985_v60  ;;  %vm7713_vm2 = vcmp.le.f32.partialorder %v1006_v48, 0.7853982 }
  0x7d   : > { %v1072_v32 = vsub.s32 0, %v1070_v27  ;;  %v6514_v34 = vpack.c.bf16 %v2521_v20, %v2509_v46  ;;  %v995_v38 = vadd.s32 3, %v7702_v57  ;;  %v7720_v59 = vsel %vm7713_vm2, 0, %v1093_v37 }
  0x7e   : > { %v6014_v11 = vadd.s32 4294967169, %v698_v45  ;;  %v701_v46 = vand.u32 8388607, %v9733_v22  ;;  %v990_v48 = vsel %vm7694_vm0, %v7274_v29, %v987_v3  ;;  %v801_v63 = vand.u32 2139095040, %v7707_v61 }
  0x7f   : > { %v6027_v30 = vmin.u32 %v1072_v32, %v1070_v27  ;;  %6515 = vmatprep.subr.bf16.mxu0 %v6514_v34  ;;  %v1099_v32 = vadd.s32 3, %v7720_v59  ;;  %v7729_v34 = vand.u32 3, %v995_v38  ;;  %v1062_v37 = vadd.s32 %v7607_v40, %v7587_v49 }
  0x80   : > { %v704_v60 = vadd.s32 1, %v6014_v11  ;;  %v702_v45 = vor.u32 8388608, %v701_v46  ;;  %7067 = vcosq.f32 %v990_v48  ;;  %v9730_v28 = vand.u32 2147483647, %v7707_v61 }
  0x81   : > { %v1074_v20 = vclz %v6027_v30  ;;  %7069 = vsinq.f32 %v990_v48  ;;  %v802_v11 = vshrl.u32 %v801_v63, 23  ;;  %v7734_v38 = vand.u32 3, %v1099_v32 }
  0x82   : > { %vm705_vm4 = vcmp.gt.s32.totalorder %v704_v60, 0  ;;  %v7738_v46 = vshll.u32 %v702_v45, 8  ;;  %v7743_v63 = vand.u32 8388607, %v9730_v28  ;;  %vm1001_vm15 = vcmp.eq.s32.totalorder %v7729_v34, 2 }
  0x83   : > { %v6028_v53 = vadd.s32 4294967294, %v1074_v20  ;;  %v706_v30 = vsel %vm705_vm4, %v704_v60, 0  ;;  %vm998_vm3 = vcmp.eq.s32.totalorder %v7729_v34, 0  ;;  %vm997_vm12 = vcmp.lt.s32.totalorder %v7729_v34, 2 }
  0x84   : > { %v708_v3 = vand.u32 31, %v706_v30  ;;  %v707_v43 = vshrl.u32 %v706_v30, 5  ;;  %vm1105_vm14 = vcmp.eq.s32.totalorder %v7734_v38, 2  ;;  %vm1098_vm4 = vweird.f32 %v7278_v41 }
  0x85   : > { %vm6029_vm5 = vcmp.lt.s32.totalorder %v6028_v53, 0 }
  0x86   : > { %v1077_v47 = vsel %vm6029_vm5, 0, %v6028_v53  ;;  %v709_v51 = vsub.s32 32, %v708_v3  ;;  %v711_v49 = vshll.u32 %v9753_v50, %v708_v3  ;;  %v714_v40 = vshll.u32 %v9742_v52, %v708_v3 }
  0x87   : > { %v1078_v35 = vsub.s32 32, %v1077_v47  ;;  %v1079_v20 = vshll.u32 %v1070_v27, %v1077_v47  ;;  %v1082_v55 = vsub.s32 4294967266, %v1077_v47  ;;  %v717_v48 = vshll.u32 %v9740_v54, %v708_v3 }
  0x88   : > { %v712_v27 = vshrl.u32 %v9742_v52, %v709_v51  ;;  %v715_v53 = vshrl.u32 %v9740_v54, %v709_v51  ;;  %v720_v32 = vshll.u32 %v9738_v56, %v708_v3  ;;  %v6018_v47 = vadd.s32 4294967169, %v802_v11 }
  0x89   : > { %v1080_v60 = vshrl.u32 %v1062_v37, %v1078_v35  ;;  %v1083_v15 = vadd.s32 127, %v1082_v55  ;;  %v718_v55 = vshrl.u32 %v9738_v56, %v709_v51  ;;  %v710_v35 = vshrl.u32 %v9753_v50, %v709_v51 }
  0x8a   : > { %v713_v37 = vor.u32 %v712_v27, %v711_v49  ;;  %v716_v19 = vor.u32 %v715_v53, %v714_v40  ;;  %v721_v36 = vshrl.u32 %v9749_v58, %v709_v51  ;;  %v7756_v11 = vmul.f32 0.62831855, %v7749_v13 }
  0x8b   : > { %v1081_v42 = vor.u32 %v1080_v60, %v1079_v20  ;;  %v1084_v45 = vshll.u32 %v1083_v15, 23  ;;  %v719_v7 = vor.u32 %v718_v55, %v717_v48  ;;  %v723_v15 = vshll.u32 %v9749_v58, %v708_v3  ;;  %v7760_v60 = vpop.eup %7067 }
  0x8c   : > { %v722_v22 = vor.u32 %v721_v36, %v720_v32  ;;  %v724_v30 = vshrl.u32 %v9744_v1, %v709_v51  ;;  %v808_v20 = vadd.s32 1, %v6018_v47  ;;  %9783 = vst [vmem:[#allocation7_spill] sm:$0xff] %v7760_v60  ;;  %vm726_vm6 = vcmp.lt.s32.totalorder %v707_v43, 1  ;;  %v7763_v40 = vpop.eup %7069 }
  0x8d   : > { %v1085_v28 = vor.u32 4788187, %v1084_v45  ;;  %v1088_v8 = vcvt.s32.f32 %v1081_v42  ;;  %vm727_vm7 = vcmp.lt.s32.totalorder %v707_v43, 2  ;;  %vm728_vm8 = vcmp.lt.s32.totalorder %v707_v43, 3 }
  0x8e   : > { %v725_v42 = vor.u32 %v724_v30, %v723_v15  ;;  %vm729_vm9 = vcmp.lt.s32.totalorder %v707_v43, 4  ;;  %v730_v48 = vsel %vm726_vm6, %v710_v35, %v713_v37  ;;  %v734_v27 = vsel %vm726_vm6, %v713_v37, %v716_v19 }
  0x8f   : > { %v1086_v49 = vand.u32 2147483647, %v1085_v28  ;;  %v731_v53 = vsel %vm729_vm9, %v719_v7, 2102212464  ;;  %v735_v3 = vsel %vm729_vm9, %v722_v22, 920167782  ;;  %v738_v32 = vsel %vm726_vm6, %v716_v19, %v719_v7 }
  0x90   : > { %v732_v51 = vsel %vm728_vm8, %v716_v19, %v731_v53  ;;  %v736_v47 = vsel %vm728_vm8, %v719_v7, %v735_v3  ;;  %v739_v45 = vsel %vm729_vm9, %v725_v42, 1326507024  ;;  %vm809_vm10 = vcmp.gt.s32.totalorder %v808_v20, 0 }
  0x91   : > { %v1089_v36 = vmul.f32 %v1088_v8, %v1086_v49  ;;  %v9736_v28 = vxor.u32 2147483648, %v7760_v60  ;;  %v737_v2 = vsel %vm727_vm7, %v734_v27, %v736_v47  ;;  %v740_v15 = vsel %vm728_vm8, %v722_v22, %v739_v45 }
  0x92   : > { %v733_v35 = vsel %vm727_vm7, %v730_v48, %v732_v51  ;;  %v741_v8 = vsel %vm727_vm7, %v738_v32, %v740_v15  ;;  %v7773_v37 = vmul.u32.u64.low %v7738_v46, %v737_v2  ;;  %v7774_v30 = vmul.u32.u64.high %v7738_v46, %v737_v2, %v7773_v37 }
  0x93   : > { %v1090_v55 = vxor.u32 2147483648, %v1089_v36  ;;  %v7780_v19 = vmul.u32.u64.low %v7738_v46, %v741_v8  ;;  %v7781_v49 = vmul.u32.u64.high %v7738_v46, %v741_v8, %v7780_v19  ;;  %v810_v42 = vsel %vm809_vm10, %v808_v20, 0 }
  0x94   : > { %v9737_v22 = vxor.u32 2147483648, %v7763_v40  ;;  %v806_v2 = vor.u32 8388608, %v7743_v63  ;;  %v812_v48 = vand.u32 31, %v810_v42  ;;  %v1003_v27 = vsel %vm1001_vm15, %v9736_v28, %v7763_v40 }
  0x95   : > { %v1091_v7 = vsel %vm1008_vm1, %v1090_v55, %v1089_v36  ;;  %v749_v20 = vmul.u32 %v7738_v46, %v733_v35  ;;  %v9748_v36 = vand.u32 2147483647, %v7756_v11  ;;  %v752_v53 = vadd.s32 1, %v7774_v30 }
  0x96   : > { %v1094_v43 = vsel %vm7713_vm2, %v7278_v41, %v1091_v7  ;;  %v813_v3 = vsub.s32 32, %v812_v48  ;;  %v815_v39 = vshll.u32 %v9753_v50, %v812_v48  ;;  %vm751_vm0 = vc.u32 %v7781_v49, %v7773_v37 }
  0x97   : > { %7071 = vcosq.f32 %v1094_v43  ;;  %v811_v63 = vshrl.u32 %v810_v42, 5  ;;  %v818_v32 = vshll.u32 %v9742_v52, %v812_v48  ;;  %v821_v46 = vshll.u32 %v9740_v54, %v812_v48 }
  0x98   : > { %7073 = vsinq.f32 %v1094_v43  ;;  %v1000_v51 = vsel %vm998_vm3, %v7760_v60, %v9737_v22  ;;  %vm1102_vm1 = vcmp.eq.s32.totalorder %v7734_v38, 0  ;;  %v753_v47 = vsel %vm751_vm0, %v752_v53, %v7774_v30 }
  0x99   : > { %v816_v45 = vshrl.u32 %v9742_v52, %v813_v3  ;;  %v819_v55 = vshrl.u32 %v9740_v54, %v813_v3  ;;  %vm1101_vm2 = vcmp.lt.s32.totalorder %v7734_v38, 2  ;;  %v754_v15 = vadd.s32 %v753_v47, %v749_v20 }
  0x9a   : > { %v822_v35 = vshrl.u32 %v9738_v56, %v813_v3  ;;  %v824_v8 = vshll.u32 %v9738_v56, %v812_v48  ;;  %v825_v7 = vshrl.u32 %v9749_v58, %v813_v3  ;;  %v827_v43 = vshll.u32 %v9749_v58, %v812_v48 }
  0x9b   : > { %v817_v19 = vor.u32 %v816_v45, %v815_v39  ;;  %v820_v42 = vor.u32 %v819_v55, %v818_v32  ;;  %v828_v30 = vshrl.u32 %v9744_v1, %v813_v3  ;;  %v755_v53 = vadd.s32 536870912, %v754_v15 }
  0x9c   : > { %v823_v28 = vor.u32 %v822_v35, %v821_v46  ;;  %v826_v22 = vor.u32 %v825_v7, %v824_v8  ;;  %vm830_vm5 = vcmp.lt.s32.totalorder %v811_v63, 1  ;;  %v814_v20 = vshrl.u32 %v9753_v50, %v813_v3 }
  0x9d   : > { %v829_v47 = vor.u32 %v828_v30, %v827_v43  ;;  %vm832_vm15 = vcmp.lt.s32.totalorder %v811_v63, 3  ;;  %vm833_vm3 = vcmp.lt.s32.totalorder %v811_v63, 4  ;;  %v756_v56 = vshrl.u32 %v755_v53, 30 }
  0x9e   : > { %vm831_vm6 = vcmp.lt.s32.totalorder %v811_v63, 2  ;;  %v835_v54 = vsel %vm833_vm3, %v823_v28, 2102212464  ;;  %v846_v52 = vshll.u32 %v806_v2, 8  ;;  %v838_v39 = vsel %vm830_vm5, %v817_v19, %v820_v42 }
  0x9f   : > { %v839_v32 = vsel %vm833_vm3, %v826_v22, 920167782  ;;  %v842_v48 = vsel %vm830_vm5, %v820_v42, %v823_v28  ;;  %v843_v45 = vsel %vm833_vm3, %v829_v47, 1326507024  ;;  %v1004_v46 = vsel %vm997_vm12, %v1000_v51, %v1003_v27 }
  0xa0   : > { %v757_v35 = vshll.u32 %v756_v56, 30  ;;  %v840_v3 = vsel %vm832_vm15, %v823_v28, %v839_v32  ;;  %v1113_v8 = vand.u32 2139095040, %v7756_v11  ;;  %v834_v43 = vsel %vm830_vm5, %v814_v20, %v817_v19 }
  0xa1   : > { %v7823_v55 = vpop.eup %7071  ;;  %v836_v30 = vsel %vm832_vm15, %v820_v42, %v835_v54  ;;  %v844_v53 = vsel %vm832_vm15, %v826_v22, %v843_v45  ;;  %v841_v34 = vsel %vm831_vm6, %v838_v39, %v840_v3  ;;  %v7840_v28 = vsel %vm994_vm13, nan, %v1004_v46 }
  0xa2   : > { %9784 = vst [vmem:[#allocation8_spill] sm:$0xff] %v7823_v55  ;;  %v7829_v7 = vpop.eup %7073  ;;  %v9746_v2 = vxor.u32 2147483648, %v7823_v55  ;;  %v758_v1 = vsub.s32 %v754_v15, %v757_v35  ;;  %v845_v27 = vsel %vm831_vm6, %v842_v48, %v844_v53  ;;  %9786 = vst [vmem:[#allocation10_spill] sm:$0xff] %v7840_v28  ;;  %v780_v42 = vsub.s32 4, %v756_v56 }
  0xa3   : > { %9785 = vst [vmem:[#allocation9_spill] sm:$0xff] %v7829_v7  ;;  %v9747_v47 = vxor.u32 2147483648, %v7829_v7  ;;  %v7847_v54 = vmul.u32.u64.low %v846_v52, %v845_v27  ;;  %v7848_v19 = vmul.u32.u64.high %v846_v52, %v845_v27, %v7847_v54  ;;  %v1114_v20 = vshrl.u32 %v1113_v8, 23 }
  0xa4   : > { %v1107_v51 = vsel %vm1105_vm14, %v9746_v2, %v7829_v7  ;;  %v760_v15 = vsub.s32 0, %v758_v1  ;;  %v837_v32 = vsel %vm831_vm6, %v834_v43, %v836_v30  ;;  %v1117_v8 = vand.u32 8388607, %v9748_v36 }
  0xa5   : > { %v1104_v22 = vsel %vm1102_vm1, %v7823_v55, %v9747_v47  ;;  %v7858_v48 = vmul.u32.u64.low %v846_v52, %v841_v34  ;;  %v7859_v45 = vmul.u32.u64.high %v846_v52, %v841_v34, %v7858_v48  ;;  %v6030_v3 = vadd.s32 4294967169, %v1114_v20 }
  0xa6   : > { %v1108_v39 = vsel %vm1101_vm2, %v1104_v22, %v1107_v51  ;;  %v6015_v35 = vmin.u32 %v760_v15, %v758_v1  ;;  %vm696_vm7 = vcmp.lt.s32.totalorder %v7669_v25, 0  ;;  %v853_v63 = vmul.u32 %v846_v52, %v837_v32  ;;  %v7883_v52 = vld [vmem:[%s7244_s21 + $0x38] sm:$0xff] }
  0xa7   : > { %v7863_v46 = vsel %vm1098_vm4, nan, %v1108_v39  ;;  %vm855_vm8 = vc.u32 %v7848_v19, %v7858_v48  ;;  %v781_v43 = vsel %vm696_vm7, %v780_v42, %v756_v56  ;;  %v856_v30 = vadd.s32 1, %v7859_v45 }
  0xa8   : > { %9787 = vst [vmem:[#allocation11_spill] sm:$0xff] %v7863_v46  ;;  %v2184_v53 = vpack.c.bf16 %v7863_v46, %v7840_v28  ;;  %v762_v38 = vclz %v6015_v35  ;;  %v1120_v34 = vadd.s32 1, %v6030_v3  ;;  %v9788_v27 = vmov 0  }
  0xa9   : > { %v9789_v51 = vand.u32 2147483647, %v7669_v25  ;;  %v9792_v15 = vand.u32 4294901760, %v7219_v4  ;;  %v9793_v20 = vand.u32 4294901760, %v7229_v6  ;;  %v750_v56 = vadd.s32 %v7773_v37, %v7781_v49 }
  0xaa   : > { %6076 = vmatmul.mubr.msk.bf16.vlgmr.msra.gmra.mrb[0].mxu1 %vm2210_vm11, %v2184_v53  ;;  %v6016_v22 = vadd.s32 4294967294, %v762_v38  ;;  %v857_v42 = vsel %vm855_vm8, %v856_v30, %v7859_v45  ;;  %v1118_v32 = vor.u32 8388608, %v1117_v8  ;;  %vm1121_vm10 = vcmp.gt.s32.totalorder %v1120_v34, 0 }
  0xab   : > { %2285 = vmatprep.mubr.bf16.mxu1 %v9788_v27  ;;  %vm7878_vm9 = vcmp.le.f32.partialorder %v9789_v51, 0.7853982  ;;  %v7889_v39 = vpack.c.bf16 %v9793_v20, %v9792_v15  ;;  %v858_v3 = vadd.s32 %v857_v42, %v853_v63  ;;  %v1122_v53 = vsel %vm1121_vm10, %v1120_v34, 0 }
  0xac   : > { %vm6017_vm12 = vcmp.lt.s32.totalorder %v6016_v22, 0  ;;  %v7896_v35 = vsel %vm7878_vm9, 0, %v781_v43  ;;  %v7900_v6 = vmul.f32 0.62831855, %v7883_v52  ;;  %v1124_v38 = vand.u32 31, %v1122_v53 }
  0xad   : > { %6503 = vmatprep.subr.bf16.mxu1 %v7889_v39  ;;  %v765_v4 = vsel %vm6017_vm12, 0, %v6016_v22  ;;  %v859_v45 = vadd.s32 536870912, %v858_v3  ;;  %v7903_v8 = vadd.s32 3, %v7896_v35  ;;  %v7906_v30 = vadd.s32 %v7858_v48, %v7848_v19 }
  0xae   : > { %v766_v51 = vsub.s32 32, %v765_v4  ;;  %v767_v37 = vshll.u32 %v758_v1, %v765_v4  ;;  %v770_v49 = vsub.s32 4294967266, %v765_v4  ;;  %v1125_v43 = vsub.s32 32, %v1124_v38 }
  0xaf   : > { %v7908_v63 = vshll.u32 %v1118_v32, 8  ;;  %v860_v22 = vshrl.u32 %v859_v45, 30  ;;  %v1127_v20 = vshll.u32 %v9753_v50, %v1124_v38  ;;  %v9794_v42 = vmov 2475754826  }
  0xb0   : > { %v768_v34 = vshrl.u32 %v750_v56, %v766_v51  ;;  %v771_v15 = vadd.s32 127, %v770_v49  ;;  %v1128_v2 = vshrl.u32 %v9794_v42, %v1125_v43  ;;  %v1130_v1 = vshll.u32 %v9794_v42, %v1124_v38 }
  0xb1   : > { %v9795_v4 = vmov 2131351028   ;;  %v9796_v36 = vmov 2102212464   ;;  %v861_v19 = vshll.u32 %v860_v22, 30  ;;  %v1123_v48 = vshrl.u32 %v1122_v53, 5 }
  0xb2   : > { %v1131_v47 = vshrl.u32 %v9795_v4, %v1125_v43  ;;  %v1136_v58 = vshll.u32 %v9796_v36, %v1124_v38  ;;  %v769_v31 = vor.u32 %v768_v34, %v767_v37  ;;  %v772_v46 = vshll.u32 %v771_v15, 23 }
  0xb3   : > { %vm800_vm14 = vcmp.lt.s32.totalorder %v7707_v61, 0  ;;  %v1133_v56 = vshll.u32 %v9795_v4, %v1124_v38  ;;  %v1134_v32 = vshrl.u32 %v9796_v36, %v1125_v43  ;;  %v9797_v51 = vmov 920167782  }
  0xb4   : > { %v1137_v49 = vshrl.u32 %v9797_v51, %v1125_v43  ;;  %v1217_v45 = vand.u32 2139095040, %v7900_v6  ;;  %v773_v50 = vor.u32 4788187, %v772_v46  ;;  %v776_v28 = vcvt.s32.f32 %v769_v31 }
  0xb5   : > { %v7920_v24 = vsub.s32 %v858_v3, %v861_v19  ;;  %v1129_v5 = vor.u32 %v1128_v2, %v1127_v20  ;;  %v1132_v41 = vor.u32 %v1131_v47, %v1130_v1  ;;  %v1139_v34 = vshll.u32 %v9797_v51, %v1124_v38 }
  0xb6   : > { %v1138_v37 = vor.u32 %v1137_v49, %v1136_v58  ;;  %v9798_v53 = vmov 1326507024   ;;  %v774_v29 = vand.u32 2147483647, %v773_v50  ;;  %v9799_v55 = vand.u32 2147483647, %v7707_v61 }
  0xb7   : > { %v1140_v15 = vshrl.u32 %v9798_v53, %v1125_v43  ;;  %v864_v60 = vsub.s32 0, %v7920_v24  ;;  %v9802_v46 = vmov 683565275   ;;  %vm1142_vm1 = vcmp.lt.s32.totalorder %v1123_v48, 1 }
  0xb8   : > { %vm7926_vm0 = vcmp.le.f32.partialorder %v9799_v55, 0.7853982  ;;  %v1126_v31 = vshrl.u32 %v9802_v46, %v1125_v43  ;;  %v1135_v3 = vor.u32 %v1134_v32, %v1133_v56  ;;  %vm1145_vm2 = vcmp.lt.s32.totalorder %v1123_v48, 4 }
  0xb9   : > { %v1141_v2 = vor.u32 %v1140_v15, %v1139_v34  ;;  %v777_v47 = vmul.f32 %v776_v28, %v774_v29  ;;  %v6019_v38 = vmin.u32 %v864_v60, %v7920_v24  ;;  %v884_v50 = vsub.s32 4, %v860_v22 }
  0xba   : > { %vm1144_vm5 = vcmp.lt.s32.totalorder %v1123_v48, 3  ;;  %vm1143_vm15 = vcmp.lt.s32.totalorder %v1123_v48, 2  ;;  %v1147_v55 = vsel %vm1145_vm2, %v1135_v3, 2102212464  ;;  %v1150_v20 = vsel %vm1142_vm1, %v1129_v5, %v1132_v41 }
  0xbb   : > { %v1151_v1 = vsel %vm1145_vm2, %v1138_v37, 920167782  ;;  %v778_v19 = vxor.u32 2147483648, %v777_v47  ;;  %v866_v43 = vclz %v6019_v38  ;;  %v1146_v56 = vsel %vm1142_vm1, %v1126_v31, %v1129_v5 }
  0xbc   : > { %v1218_v32 = vshrl.u32 %v1217_v45, 23  ;;  %v1148_v49 = vsel %vm1144_vm5, %v1132_v41, %v1147_v55  ;;  %v1152_v29 = vsel %vm1144_vm5, %v1135_v3, %v1151_v1  ;;  %v1154_v60 = vsel %vm1142_vm1, %v1132_v41, %v1135_v3 }
  0xbd   : > { %v1155_v28 = vsel %vm1145_vm2, %v1141_v2, 1326507024  ;;  %v779_v34 = vsel %vm696_vm7, %v778_v19, %v777_v47  ;;  %v6020_v15 = vadd.s32 4294967294, %v866_v43  ;;  %v885_v58 = vsel %vm800_vm14, %v884_v50, %v860_v22 }
  0xbe   : > { %v1153_v38 = vsel %vm1143_vm15, %v1150_v20, %v1152_v29  ;;  %v1156_v5 = vsel %vm1144_vm5, %v1138_v37, %v1155_v28  ;;  %v9803_v55 = vand.u32 2147483647, %v7900_v6  ;;  %v782_v3 = vsel %vm7878_vm9, %v7669_v25, %v779_v34  ;;  %v7962_v37 = vld [vmem:[%s9710_s2 + $0x20] sm:$0xff] }
  0xbf   : > { %v7949_v45 = vmul.u32.u64.low %v7908_v63, %v1153_v38  ;;  %v7950_v31 = vmul.u32.u64.high %v7908_v63, %v1153_v38, %v7949_v45  ;;  %vm6021_vm3 = vcmp.lt.s32.totalorder %v6020_v15, 0  ;;  %v1149_v2 = vsel %vm1143_vm15, %v1146_v56, %v1148_v49  ;;  %v7976_v56 = vld [vmem:[%s9710_s2 + $0x30] sm:$0xff] }
  0xc0   : > { %v1221_v41 = vand.u32 8388607, %v9803_v55  ;;  %v1157_v22 = vsel %vm1143_vm15, %v1154_v60, %v1156_v5  ;;  %v869_v47 = vsel %vm6021_vm3, 0, %v6020_v15  ;;  %v7966_v50 = vsel %vm7926_vm0, 0, %v885_v58 }
  0xc1   : > { %v7969_v20 = vmul.u32.u64.low %v7908_v63, %v1157_v22  ;;  %v7970_v1 = vmul.u32.u64.high %v7908_v63, %v1157_v22, %v7969_v20  ;;  %v870_v54 = vsub.s32 32, %v869_v47  ;;  %v871_v19 = vshll.u32 %v7920_v24, %v869_v47 }
  0xc2   : > { %v874_v43 = vsub.s32 4294967266, %v869_v47  ;;  %v6034_v48 = vadd.s32 4294967169, %v1218_v32  ;;  %7075 = vcosq.f32 %v782_v3  ;;  %v1165_v49 = vmul.u32 %v7908_v63, %v1149_v2 }
  0xc3   : > { %v1168_v58 = vadd.s32 1, %v7950_v31  ;;  %v9768_v29 = vand.u32 4294901760, %v7962_v37  ;;  %v872_v60 = vshrl.u32 %v7906_v30, %v870_v54  ;;  %v9804_v24 = vand.u32 4294901760, %v7447_v17 }
  0xc4   : > { %v875_v28 = vadd.s32 127, %v874_v43  ;;  %v1224_v34 = vadd.s32 1, %v6034_v48  ;;  %v9805_v32 = vand.u32 4294901760, %v7475_v26  ;;  %v7989_v38 = vand.u32 3, %v7903_v8 }
  0xc5   : > { %v891_v5 = vadd.s32 3, %v7966_v50  ;;  %vm1167_vm6 = vc.u32 %v7970_v1, %v7949_v45  ;;  %v9767_v63 = vand.u32 4294901760, %v7976_v56  ;;  %v873_v55 = vor.u32 %v872_v60, %v871_v19 }
  0xc6   : > { %v7986_v15 = vpack.c.bf16 %v9805_v32, %v9804_v24  ;;  %v876_v2 = vshll.u32 %v875_v28, 23  ;;  %v1169_v30 = vsel %vm1167_vm6, %v1168_v58, %v7950_v31  ;;  %vm1225_vm7 = vcmp.gt.s32.totalorder %v1224_v34, 0 }
  0xc7   : > { %7077 = vsinq.f32 %v782_v3  ;;  %v1170_v17 = vadd.s32 %v1169_v30, %v1165_v49  ;;  %v1226_v26 = vsel %vm1225_vm7, %v1224_v34, 0  ;;  %v7999_v8 = vsub.f32 %v7962_v37, %v9768_v29 }
  0xc8   : > { %6505 = vmatpush1.bf16.msra.mxu1 %v7986_v15  ;;  %v877_v22 = vor.u32 4788187, %v876_v2  ;;  %v880_v47 = vcvt.s32.f32 %v873_v55  ;;  %v1222_v20 = vor.u32 8388608, %v1221_v41  ;;  %v1228_v54 = vand.u32 31, %v1226_v26 }
  0xc9   : > { %v1171_v43 = vadd.s32 536870912, %v1170_v17  ;;  %v9806_v19 = vand.u32 4294901760, %v7581_v14  ;;  %v9807_v31 = vand.u32 4294901760, %v7593_v12  ;;  %v8010_v49 = vsub.f32 %v7976_v56, %v9767_v63 }
  0xca   : > { %v878_v58 = vand.u32 2147483647, %v877_v22  ;;  %v1229_v3 = vsub.s32 32, %v1228_v54  ;;  %vm793_vm8 = vcmp.eq.s32.totalorder %v7989_v38, 2  ;;  %v8013_v60 = vand.u32 3, %v891_v5 }
  0xcb   : > { %v8005_v48 = vpack.c.bf16 %v9807_v31, %v9806_v19  ;;  %v8015_v41 = vshrl.u32 %v1171_v43, 30  ;;  %v9769_v28 = vand.u32 4294901760, %v7999_v8  ;;  %v1231_v12 = vshll.u32 %v9802_v46, %v1228_v54 }
  0xcc   : > { %v881_v14 = vmul.f32 %v880_v47, %v878_v58  ;;  %v1232_v34 = vshrl.u32 %v9794_v42, %v1229_v3  ;;  %v8021_v24 = vshll.u32 %v1222_v20, 8  ;;  %v8023_v32 = vpop.eup %7075  ;;  %vm790_vm9 = vcmp.eq.s32.totalorder %v7989_v38, 0 }
  0xcd   : > { %6507 = vmatprep.subr.bf16.mxu1 %v8005_v48  ;;  %v8027_v5 = vadd.s32 %v7949_v45, %v7970_v1  ;;  %v1173_v55 = vshll.u32 %v8015_v41, 30  ;;  %v1234_v2 = vshll.u32 %v9794_v42, %v1228_v54  ;;  %v1235_v30 = vshrl.u32 %v9795_v4, %v1229_v3 }
  0xce   : > { %v882_v22 = vxor.u32 2147483648, %v881_v14  ;;  %v1237_v47 = vshll.u32 %v9795_v4, %v1228_v54  ;;  %v1238_v43 = vshrl.u32 %v9796_v36, %v1229_v3  ;;  %v2525_v20 = vand.u32 4294901760, %v8010_v49 }
  0xcf   : > { %v8035_v19 = vsub.s32 %v1170_v17, %v1173_v55  ;;  %v1227_v31 = vshrl.u32 %v1226_v26, 5  ;;  %v1240_v58 = vshll.u32 %v9796_v36, %v1228_v54  ;;  %v2514_v45 = vsub.f32 %v7999_v8, %v9769_v28 }
  0xd0   : > { %v794_v42 = vxor.u32 2147483648, %v8023_v32  ;;  %v883_v1 = vsel %vm800_vm14, %v882_v22, %v881_v14  ;;  %v1230_v4 = vshrl.u32 %v9802_v46, %v1229_v3  ;;  %v1233_v63 = vor.u32 %v1232_v34, %v1231_v12 }
  0xd1   : > { %v8045_v29 = vpop.eup %7077  ;;  %vm789_vm10 = vcmp.lt.s32.totalorder %v7989_v38, 2  ;;  %v886_v36 = vsel %vm7926_vm0, %v7707_v61, %v883_v1  ;;  %v1176_v17 = vsub.s32 0, %v8035_v19  ;;  %v1236_v26 = vor.u32 %v1235_v30, %v1234_v2 }
  0xd2   : > { %v1241_v55 = vshrl.u32 %v9797_v51, %v1229_v3  ;;  %7079 = vcosq.f32 %v886_v36  ;;  %v1239_v28 = vor.u32 %v1238_v43, %v1237_v47  ;;  %v1243_v14 = vshll.u32 %v9797_v51, %v1228_v54 }
  0xd3   : > { %v1244_v46 = vshrl.u32 %v9798_v53, %v1229_v3  ;;  %7081 = vsinq.f32 %v886_v36  ;;  %v6031_v12 = vmin.u32 %v1176_v17, %v8035_v19  ;;  %vm1246_vm12 = vcmp.lt.s32.totalorder %v1227_v31, 1 }
  0xd4   : > { %v1242_v34 = vor.u32 %v1241_v55, %v1240_v58  ;;  %v791_v22 = vxor.u32 2147483648, %v8045_v29  ;;  %vm897_vm14 = vcmp.eq.s32.totalorder %v8013_v60, 2  ;;  %vm1248_vm0 = vcmp.lt.s32.totalorder %v1227_v31, 3 }
  0xd5   : > { %v1245_v7 = vor.u32 %v1244_v46, %v1243_v14  ;;  %vm1249_vm1 = vcmp.lt.s32.totalorder %v1227_v31, 4  ;;  %vm786_vm2 = vweird.f32 %v7669_v25  ;;  %v795_v51 = vsel %vm793_vm8, %v794_v42, %v8045_v29 }
  0xd6   : > { %vm894_vm5 = vcmp.eq.s32.totalorder %v8013_v60, 0  ;;  %v1178_v53 = vclz %v6031_v12  ;;  %vm1247_vm15 = vcmp.lt.s32.totalorder %v1227_v31, 2  ;;  %v2526_v54 = vsub.f32 %v8010_v49, %v2525_v20 }
  0xd7   : > { %v1250_v3 = vsel %vm1246_vm12, %v1230_v4, %v1233_v63  ;;  %v1251_v2 = vsel %vm1249_vm1, %v1239_v28, 2102212464  ;;  %v1254_v30 = vsel %vm1246_vm12, %v1233_v63, %v1236_v26  ;;  %v1255_v47 = vsel %vm1249_vm1, %v1242_v34, 920167782 }
  0xd8   : > { %v6032_v43 = vadd.s32 4294967294, %v1178_v53  ;;  %v1252_v58 = vsel %vm1248_vm0, %v1236_v26, %v1251_v2  ;;  %v1256_v1 = vsel %vm1248_vm0, %v1239_v28, %v1255_v47  ;;  %v1258_v36 = vsel %vm1246_vm12, %v1236_v26, %v1239_v28 }
  0xd9   : > { %v792_v17 = vsel %vm790_vm9, %v8023_v32, %v791_v22  ;;  %v1257_v4 = vsel %vm1247_vm15, %v1254_v30, %v1256_v1  ;;  %v1259_v55 = vsel %vm1249_vm1, %v1245_v7, 1326507024  ;;  %v2515_v63 = vand.u32 4294901760, %v2514_v45  ;;  %v6739_v30 = vld [vmem:[%s9711_s3 + $0x24] ss:$8 sps:$4 sm:$0xff]  }
  0xda   : > { %vm6033_vm3 = vcmp.lt.s32.totalorder %v6032_v43, 0  ;;  %v1260_v14 = vsel %vm1248_vm0, %v1242_v34, %v1259_v55  ;;  %v8084_v46 = vmul.u32.u64.low %v8021_v24, %v1257_v4  ;;  %v8085_v12 = vmul.u32.u64.high %v8021_v24, %v1257_v4, %v8084_v46 }
  0xdb   : > { %v1181_v28 = vsel %vm6033_vm3, 0, %v6032_v43  ;;  %v1253_v26 = vsel %vm1247_vm15, %v1250_v3, %v1252_v58  ;;  %v1261_v53 = vsel %vm1247_vm15, %v1258_v36, %v1260_v14  ;;  %v2527_v2 = vand.u32 4294901760, %v2526_v54 }
  0xdc   : > { %v1182_v7 = vsub.s32 32, %v1181_v28  ;;  %v1183_v45 = vshll.u32 %v8035_v19, %v1181_v28  ;;  %v1186_v47 = vsub.s32 4294967266, %v1181_v28  ;;  %v9808_v34 = vand.u32 4294901760, %v7962_v37  ;;  %v8100_v43 = vpop.eup %7079 }
  0xdd   : > { %v9809_v1 = vand.u32 4294901760, %v7976_v56  ;;  %v796_v31 = vsel %vm789_vm10, %v792_v17, %v795_v51  ;;  %v8105_v54 = vmul.u32.u64.low %v8021_v24, %v1261_v53  ;;  %v8106_v3 = vmul.u32.u64.high %v8021_v24, %v1261_v53, %v8105_v54  ;;  %v8108_v36 = vpop.eup %7081 }
  0xde   : > { %v6516_v58 = vpack.c.bf16 %v2527_v2, %v2515_v63  ;;  %v898_v19 = vxor.u32 2147483648, %v8100_v43  ;;  %v1184_v37 = vshrl.u32 %v8027_v5, %v1182_v7  ;;  %v1187_v55 = vadd.s32 127, %v1186_v47 }
  0xdf   : > { %v8098_v4 = vpack.c.bf16 %v9809_v1, %v9808_v34  ;;  %v1272_v56 = vadd.s32 1, %v8085_v12  ;;  %vm893_vm6 = vcmp.lt.s32.totalorder %v8013_v60, 2  ;;  %v895_v38 = vxor.u32 2147483648, %v8108_v36 }
  0xe0   : > { %v1269_v51 = vmul.u32 %v8021_v24, %v1253_v26  ;;  %6517 = vmatpush1.bf16.msra.mxu0 %v6516_v58  ;;  %v6518_v17 = vpack.c.bf16 %v7249_v10, %v7237_v9  ;;  %vm890_vm7 = vweird.f32 %v7707_v61  ;;  %v899_v5 = vsel %vm897_vm14, %v898_v19, %v8108_v36 }
  0xe1   : > { %6509 = vmatpush1.bf16.msra.mxu1 %v8098_v4  ;;  %v1185_v63 = vor.u32 %v1184_v37, %v1183_v45  ;;  %v1188_v14 = vshll.u32 %v1187_v55, 23  ;;  %v8127_v28 = vsel %vm786_vm2, nan, %v796_v31  ;;  %v896_v24 = vsel %vm894_vm5, %v8100_v43, %v895_v38  ;;  %v7091_v37 = vld [vmem:[%s7244_s21] sm:$0xff] }
  0xe2   : > { %3247 = vmatprep.subr.bf16.mxu1 %v6739_v30  ;;  %vm1271_vm8 = vc.u32 %v8106_v3, %v8084_v46  ;;  %6519 = vmatprep.subr.bf16.mxu0 %v6518_v17  ;;  %v900_v26 = vsel %vm893_vm6, %v896_v24, %v899_v5  ;;  %vm1112_vm9 = vcmp.lt.s32.totalorder %v7756_v11, 0  ;;  %v7126_v54 = vmov 0.0  }
  0xe3   : > { %v1189_v53 = vor.u32 4788187, %v1188_v14  ;;  %v1192_v2 = vcvt.s32.f32 %v1185_v63  ;;  %v1273_v30 = vsel %vm1271_vm8, %v1272_v56, %v8085_v12  ;;  %v8139_v7 = vsel %vm890_vm7, nan, %v900_v26 }
  0xe4   : > { %v1274_v45 = vadd.s32 %v1273_v30, %v1269_v51  ;;  %v2183_v47 = vpack.c.bf16 %v8139_v7, %v8127_v28  ;;  %v8151_v55 = vsel %vm2210_vm11, %v7091_v37, 0  ;;  %v9810_v56 = vand.u32 2147483647, %v7756_v11  ;;  %v7092_v30 = vld [vmem:[%s7244_s21 + $0x8] sm:$0xff] }
  0xe5   : > { %v1190_v60 = vand.u32 2147483647, %v1189_v53  ;;  %v1196_v5 = vsub.s32 4, %v8015_v41  ;;  %v6520_v14 = vpack.c.bf16 %v7604_v0, %v7572_v44  ;;  %v8165_v24 = vand.u32 4294901760, %v8151_v55 }
  0xe6   : > { %v1275_v34 = vadd.s32 536870912, %v1274_v45  ;;  %6075 = vmatmul.mubr.msk.bf16.gmra.mrb[4].mxu0 %vm2210_vm11, %v2183_v47  ;;  %vm8155_vm10 = vcmp.le.f32.partialorder %v9810_v56, 0.7853982  ;;  %v6522_v26 = vpack.c.bf16 %v7664_v21, %v7655_v16  ;;  %v8174_v47 = vsel %vm2210_vm11, %v7092_v30, 0  ;;  %v7093_v30 = vld [vmem:[%s7244_s21 + $0x20] sm:$0xff] }
  0xe7   : > { %v1193_v1 = vmul.f32 %v1192_v2, %v1190_v60  ;;  %2585 = vmatprep.mubr.f32.mxu0 %v7126_v54  ;;  %v8189_v37 = vsel %vm2210_vm11, %v7650_v62, 0  ;;  %v1270_v51 = vadd.s32 %v8084_v46, %v8106_v3  ;;  %vm1202_vm8 = vweird.f32 %v7756_v11 }
  0xe8   : > { %v8145_v31 = vshrl.u32 %v1275_v34, 30  ;;  %v6524_v34 = vpack.c.bf16 %v8010_v49, %v7999_v8 }
  0xe9   : > { %v1194_v12 = vxor.u32 2147483648, %v1193_v1 }
  0xea   : > { %v1277_v58 = vshll.u32 %v8145_v31, 30 }
  0xeb   : > { %v1195_v17 = vsel %vm1112_vm9, %v1194_v12, %v1193_v1  ;;  %v8184_v1 = vand.u32 4294901760, %v8174_v47  ;;  %v1617_v12 = vand.u32 3, %v7896_v35  ;;  %v8197_v35 = vand.u32 4294901760, %v8189_v37 }
  0xec   : > { %v1278_v63 = vsub.s32 %v1274_v45, %v1277_v58  ;;  %v1198_v53 = vsel %vm8155_vm10, %v7756_v11, %v1195_v17  ;;  %v1197_v45 = vsel %vm1112_vm9, %v1196_v5, %v8015_v41  ;;  %v1720_v17 = vand.u32 3, %v7966_v50 }
  0xed   : > { %7083 = vcosq.f32 %v1198_v53  ;;  %v1199_v41 = vsel %vm8155_vm10, 0, %v1197_v45  ;;  %vm1619_vm12 = vcmp.eq.s32.totalorder %v1617_v12, 0  ;;  %vm1622_vm14 = vcmp.eq.s32.totalorder %v1617_v12, 2 }
  0xee   : > { %v1280_v2 = vsub.s32 0, %v1278_v63  ;;  %2587 = vmatmul.mubr.f32.vlgmr.msra.gmra.mrb[8].mxu0 %v8165_v24  ;;  %7085 = vsinq.f32 %v1198_v53  ;;  %v1621_v62 = vsel %vm1619_vm12, %v8023_v32, %v791_v22  ;;  %v8207_v5 = vsel %vm2210_vm11, %v7689_v33, 0 }
  0xef   : > { %6521 = vmatpush1.bf16.msra.mxu0 %v6520_v14  ;;  %2592 = vmatprep.mubr.f32.mxu0 %v7126_v54  ;;  %v1624_v50 = vsel %vm1622_vm14, %v794_v42, %v8045_v29  ;;  %v1203_v14 = vadd.s32 3, %v1199_v41  ;;  %vm1618_vm1 = vcmp.lt.s32.totalorder %v1617_v12, 2  ;;  %vm1722_vm5 = vcmp.eq.s32.totalorder %v1720_v17, 0 }
  0xf0   : > { %v6035_v60 = vmin.u32 %v1280_v2, %v1278_v63  ;;  %6523 = vmatprep.subr.bf16.mxu0 %v6522_v26  ;;  %v8215_v46 = vand.u32 4294901760, %v8207_v5  ;;  %v8219_v29 = vsel %vm2210_vm11, %v7093_v30, 0  ;;  %v1625_v32 = vsel %vm1618_vm1, %v1621_v62, %v1624_v50 }
  0xf1   : > { %v1204_v45 = vand.u32 3, %v1203_v14  ;;  %vm1721_vm15 = vcmp.lt.s32.totalorder %v1720_v17, 2  ;;  %vm1725_vm3 = vcmp.eq.s32.totalorder %v1720_v17, 2  ;;  %v8232_v62 = vand.u32 4294901760, %v8219_v29 }
  0xf2   : > { %v1282_v58 = vclz %v6035_v60  ;;  %2594 = vmatmul.mubr.f32.gmra.mrb[10].mxu0 %v8184_v1  ;;  %v1724_v60 = vsel %vm1722_vm5, %v8100_v43, %v895_v38  ;;  %v1727_v50 = vsel %vm1725_vm3, %v898_v19, %v8108_v36  ;;  %vm1216_vm10 = vcmp.lt.s32.totalorder %v7900_v6, 0 }
  0xf3   : > { %2599 = vmatprep.mubr.f32.mxu0 %v7126_v54  ;;  %6525 = vmatpush1.bf16.msra.mxu0 %v6524_v34  ;;  %vm1206_vm6 = vcmp.eq.s32.totalorder %v1204_v45, 0  ;;  %vm1205_vm9 = vcmp.lt.s32.totalorder %v1204_v45, 2 }
  0xf4   : > { %v6036_v56 = vadd.s32 4294967294, %v1282_v58  ;;  %6527 = vmatprep.subr.bf16.mxu0 %v7889_v39 }
  0xf6   : > { %vm6037_vm0 = vcmp.lt.s32.totalorder %v6036_v56, 0  ;;  %2601 = vmatmul.mubr.f32.gmra.mrb[12].mxu0 %v8197_v35 }
  0xf7   : > { %v1285_v26 = vsel %vm6037_vm0, 0, %v6036_v56  ;;  %2606 = vmatprep.mubr.f32.mxu0 %v7126_v54  ;;  %v7084_v42 = vpop.eup %7083  ;;  %v1300_v56 = vsub.s32 4, %v8145_v31 }
  0xf8   : > { %v1286_v53 = vsub.s32 32, %v1285_v26  ;;  %v1287_v22 = vshll.u32 %v1278_v63, %v1285_v26  ;;  %v1290_v2 = vsub.s32 4294967266, %v1285_v26  ;;  %v8224_v63 = vsel %vm786_vm2, nan, %v1625_v32  ;;  %v7086_v34 = vpop.eup %7085 }
  0xf9   : > { %v1210_v38 = vxor.u32 2147483648, %v7084_v42  ;;  %vm1209_vm2 = vcmp.eq.s32.totalorder %v1204_v45, 2  ;;  %v9813_v32 = vand.u32 2147483647, %v7900_v6 }
  0xfa   : > { %v1288_v33 = vshrl.u32 %v1270_v51, %v1286_v53  ;;  %v1291_v3 = vadd.s32 127, %v1290_v2  ;;  %2608 = vmatmul.mubr.f32.gmra.mrb[14].mxu0 %v8215_v46  ;;  %v7094_v51 = vld [vmem:[%s7244_s21 + $0x28] sm:$0xff]  ;;  %v1728_v53 = vsel %vm1721_vm15, %v1724_v60, %v1727_v50  ;;  %v2029_v2 = vand.u32 3, %v1199_v41  ;;  %s9632_s21 = scalar_lea.vmem %s9719_s11, %s6461_s15 }
  0xfb   : > { %2613 = vmatprep.mubr.f32.mxu0 %v7126_v54  ;;  %v8236_v25 = vsel %vm2210_vm11, %v7094_v51, 0  ;;  %v8244_v17 = vsel %vm890_vm7, nan, %v1728_v53  ;;  %v1211_v19 = vsel %vm1209_vm2, %v1210_v38, %v7086_v34  ;;  %v1301_v41 = vsel %vm1216_vm10, %v1300_v56, %v8145_v31 }
  0xfc   : > { %v1289_v12 = vor.u32 %v1288_v33, %v1287_v22  ;;  %v1292_v58 = vshll.u32 %v1291_v3, 23  ;;  %v1207_v22 = vxor.u32 2147483648, %v7086_v34  ;;  %v3207_v43 = vpack.c.bf16 %v8244_v17, %v8224_v63 }
  0xfd   : > { %v8252_v36 = vand.u32 4294901760, %v8236_v25  ;;  %v8259_v3 = vsel %vm2210_vm11, %v7749_v13, 0  ;;  %vm2030_vm7 = vcmp.lt.s32.totalorder %v2029_v2, 2  ;;  %vm2031_vm12 = vcmp.eq.s32.totalorder %v2029_v2, 0 }
  0xfe   : > { %v1293_v14 = vor.u32 4788187, %v1292_v58  ;;  %v1296_v26 = vcvt.s32.f32 %v1289_v12  ;;  %2615 = vmatmul.mubr.f32.gmra.mrb[16].mxu0 %v8232_v62  ;;  %v1208_v30 = vsel %vm1206_vm6, %v7084_v42, %v1207_v22  ;;  %vm2034_vm14 = vcmp.eq.s32.totalorder %v2029_v2, 2 }
  0xff   : > { %2620 = vmatprep.mubr.f32.mxu0 %v7126_v54  ;;  %vm1215_vm0 = vcmp.le.f32.partialorder %v9813_v32, 0.7853982  ;;  %v2033_v12 = vsel %vm2031_vm12, %v7084_v42, %v1207_v22  ;;  %v2036_v58 = vsel %vm2034_vm14, %v1210_v38, %v7086_v34  ;;  %v8266_v31 = vand.u32 4294901760, %v8259_v3 }
 0x100   : > { %v1294_v33 = vand.u32 2147483647, %v1293_v14  ;;  %v1303_v51 = vsel %vm1215_vm0, 0, %v1301_v41  ;;  %v8270_v13 = vsel %vm2210_vm11, %v7883_v52, 0  ;;  %v2037_v56 = vsel %vm2030_vm7, %v2033_v12, %v2036_v58 }
 0x101   : > { %v1212_v50 = vsel %vm1205_vm9, %v1208_v30, %v1211_v19  ;;  %v2144_v42 = vmul.f32 2.0, %v8127_v28  ;;  %v1307_v38 = vadd.s32 3, %v1303_v51  ;;  %v2145_v52 = vmul.f32 2.0, %v8139_v7 }
 0x102   : > { %v1297_v61 = vmul.f32 %v1296_v26, %v1294_v33  ;;  %2622 = vmatmul.mubr.f32.gmra.mrb[18].mxu0 %v8252_v36  ;;  %v8277_v26 = vsel %vm1202_vm8, nan, %v2037_v56  ;;  %v1213_v53 = vsel %vm1202_vm8, nan, %v1212_v50  ;;  %v8290_v22 = vand.u32 4294901760, %v8270_v13 }
 0x103   : > { %2627 = vmatprep.mubr.f32.mxu0 %v7126_v54  ;;  %v8285_v45 = vmul.f32 %v2144_v42, %v8224_v63  ;;  %v9814_v2 = vand.u32 4294901760, %v7999_v8  ;;  %v8299_v19 = vmul.f32 %v2145_v52, %v8244_v17  ;;  %v2160_v41 = vmul.f32 %v2144_v42, %v8127_v28 }
 0x104   : > { %v1298_v60 = vxor.u32 2147483648, %v1297_v61  ;;  %v2161_v30 = vmul.f32 %v2145_v52, %v8139_v7  ;;  %v8312_v32 = vsub.f32 %v8151_v55, %v8165_v24  ;;  %v2132_v28 = vand.u32 3, %v1303_v51 }
 0x105   : > { %v8296_v33 = vpack.c.bf16 %v2525_v20, %v9814_v2  ;;  %v3337_v11 = vpack.c.bf16 %v8299_v19, %v8285_v45  ;;  %v2168_v49 = vsub.f32 1.0, %v2160_v41  ;;  %v8321_v7 = vsub.f32 %v8174_v47, %v8184_v1  ;;  %v9836_v45 = vld [vmem:[#allocation6_spill] sm:$0xff] }
 0x106   : > { %v1299_v14 = vsel %vm1216_vm10, %v1298_v60, %v1297_v61  ;;  %2629 = vmatmul.mubr.f32.gmra.mrb[20].mxu0 %v8266_v31  ;;  %v2148_v61 = vmul.f32 2.0, %v1213_v53  ;;  %v2169_v20 = vsub.f32 1.0, %v2161_v30  ;;  %v1308_v60 = vand.u32 3, %v1307_v38 }
 0x107   : > { %v1302_v34 = vsel %vm1215_vm0, %v7900_v6, %v1299_v14  ;;  %2634 = vmatprep.mubr.f32.mxu0 %v7126_v54  ;;  %v9815_v58 = vand.u32 4294901760, %v7237_v9  ;;  %v9816_v55 = vand.u32 4294901760, %v7249_v10  ;;  %vm2137_vm5 = vcmp.eq.s32.totalorder %v2132_v28, 2 }
 0x108   : > { %7087 = vcosq.f32 %v1302_v34  ;;  %v8308_v8 = vmul.f32 %v2148_v61, %v8277_v26  ;;  %v8314_v12 = vpack.c.bf16 %v2169_v20, %v2168_v49  ;;  %vm1313_vm1 = vcmp.eq.s32.totalorder %v1308_v60, 2 }
 0x109   : > { %7089 = vsinq.f32 %v1302_v34  ;;  %v6534_v56 = vpack.c.bf16 %v9816_v55, %v9815_v58  ;;  %vm1310_vm15 = vcmp.eq.s32.totalorder %v1308_v60, 0  ;;  %vm2134_vm3 = vcmp.eq.s32.totalorder %v2132_v28, 0 }
 0x10a   : > { %2636 = vmatmul.mubr.f32.gmra.mrb[22].mxu0 %v8290_v22  ;;  %vm1309_vm2 = vcmp.lt.s32.totalorder %v1308_v60, 2  ;;  %vm2133_vm6 = vcmp.lt.s32.totalorder %v2132_v28, 2  ;;  %vm1306_vm8 = vweird.f32 %v7900_v6  ;;  %v8334_v10 = vsub.f32 %v8189_v37, %v8197_v35 }
 0x10b   : > { %2722 = vmatprep.mubr.f32.mxu0 %v7126_v54  ;;  %v2395_v38 = vand.u32 4294901760, %v8312_v32  ;;  %v2164_v30 = vmul.f32 %v2148_v61, %v1213_v53  ;;  %v8343_v37 = vsub.f32 %v8207_v5, %v8215_v46  ;;  %v2406_v61 = vand.u32 4294901760, %v8321_v7 }
 0x10d   : > { %v2396_v58 = vsub.f32 %v8312_v32, %v2395_v38  ;;  %v2172_v5 = vsub.f32 1.0, %v2164_v30  ;;  %v8389_v30 = vsub.f32 %v8259_v3, %v8266_v31  ;;  %v8401_v3 = vsub.f32 %v8270_v13, %v8290_v22 }
 0x10e   : > { %2725 = vmatmul.mubr.f32.vlgmr.msra.gmra.mrb[8].mxu0 %v8312_v32  ;;  %v9818_v13 = vand.u32 4294901760, %v7604_v0 }
 0x10f   : > { %6529 = vmatpush1.bf16.msra.mxu0 %v7986_v15  ;;  %2730 = vmatprep.mubr.f32.mxu0 %v7126_v54 }
 0x110   : > { %6531 = vmatprep.subr.bf16.mxu0 %v8005_v48 }
 0x112   : > { %v7088_v51 = vpop.eup %7087  ;;  %2733 = vmatmul.mubr.f32.gmra.mrb[10].mxu0 %v8321_v7 }
 0x113   : > { %v7090_v50 = vpop.eup %7089  ;;  %v1314_v14 = vxor.u32 2147483648, %v7088_v51  ;;  %2738 = vmatprep.mubr.f32.mxu0 %v7126_v54  ;;  %6533 = vmatpush1.bf16.msra.mxu0 %v8098_v4 }
 0x114   : > { %v1311_v42 = vxor.u32 2147483648, %v7090_v50  ;;  %6535 = vmatprep.subr.bf16.mxu0 %v6534_v56  ;;  %v8360_v56 = vsub.f32 %v8219_v29, %v8232_v62  ;;  %v8375_v29 = vsub.f32 %v8236_v25, %v8252_v36  ;;  %v6740_v25 = vld [vmem:[%s9711_s3 + $0x30] ss:$8 sps:$4 sm:$0xff]  }
 0x115   : > { %v1315_v9 = vsel %vm1313_vm1, %v1314_v14, %v7090_v50  ;;  %v2139_v47 = vsel %vm2137_vm5, %v1314_v14, %v7090_v50  ;;  %v2397_v14 = vand.u32 4294901760, %v2396_v58 }
 0x116   : > { %v1312_v34 = vsel %vm1310_vm15, %v7088_v51, %v1311_v42  ;;  %v2136_v52 = vsel %vm2134_vm3, %v7088_v51, %v1311_v42  ;;  %2741 = vmatmul.mubr.f32.gmra.mrb[12].mxu0 %v8334_v10  ;;  %v2407_v42 = vsub.f32 %v8321_v7, %v2406_v61  ;;  %v6742_v7 = vld [vmem:[%s9711_s3 + $0x34] ss:$8 sps:$4 sm:$0xff]  }
 0x117   : > { %v1316_v2 = vsel %vm1309_vm2, %v1312_v34, %v1315_v9  ;;  %v2140_v41 = vsel %vm2133_vm6, %v2136_v52, %v2139_v47  ;;  %2746 = vmatprep.mubr.f32.mxu0 %v7126_v54  ;;  %v2417_v9 = vand.u32 4294901760, %v8334_v10  ;;  %v6737_v34 = vld [vmem:[%s9711_s3 + $0x20] ss:$8 sps:$4 sm:$0xff]  }
 0x118   : > { %v1317_v49 = vsel %vm1306_vm8, nan, %v1316_v2  ;;  %v8339_v6 = vsel %vm1306_vm8, nan, %v2140_v41  ;;  %v2408_v52 = vand.u32 4294901760, %v2407_v42  ;;  %v2428_v41 = vand.u32 4294901760, %v8343_v37 }
 0x119   : > { %v2185_v20 = vpack.c.bf16 %v1317_v49, %v1213_v53  ;;  %v3209_v60 = vpack.c.bf16 %v8339_v6, %v8277_v26  ;;  %v2149_v28 = vmul.f32 2.0, %v1317_v49  ;;  %v2418_v2 = vsub.f32 %v8334_v10, %v2417_v9  ;;  %v6745_v10 = vld [vmem:[%s9711_s3 + $0x44] ss:$8 sps:$4 sm:$0xff]  }
 0x11a   : > { %2749 = vmatmul.mubr.f32.gmra.mrb[14].mxu0 %v8343_v37  ;;  %v9820_v42 = vand.u32 4294901760, %v7664_v21 }
 0x11b   : > { %6077 = vmatmul.mubr.msk.bf16.gmra.mrb[4].mxu1 %vm2210_vm11, %v2185_v20  ;;  %v8354_v53 = vmul.f32 %v2149_v28, %v8339_v6  ;;  %v2165_v55 = vmul.f32 %v2149_v28, %v1317_v49  ;;  %2754 = vmatprep.mubr.f32.mxu0 %v7126_v54  ;;  %v2419_v49 = vand.u32 4294901760, %v2418_v2  ;;  %v2429_v20 = vsub.f32 %v8343_v37, %v2428_v41  ;;  %v9823_v2 = vld [vmem:[#allocation7_spill] sm:$0xff]  ;;  %v6752_v6 = vld [vmem:[%s9711_s3 + $0x70] ss:$8 sps:$4 sm:$0xff]  }
 0x11c   : > { %2392 = vmatprep.mubr.f32.mxu1 %v7126_v54  ;;  %v2439_v28 = vand.u32 4294901760, %v8360_v56  ;;  %v2450_v37 = vand.u32 4294901760, %v8375_v29 }
 0x11d   : > { %v3339_v51 = vpack.c.bf16 %v8354_v53, %v8308_v8  ;;  %v2173_v50 = vsub.f32 1.0, %v2165_v55  ;;  %v2430_v58 = vand.u32 4294901760, %v2429_v20  ;;  %v6763_v53 = vld [vmem:[%s9712_s4 + $0x24] ss:$8 sps:$4 sm:$0xff]  }
 0x11e   : > { %2757 = vmatmul.mubr.f32.gmra.mrb[16].mxu0 %v8360_v56  ;;  %v2440_v55 = vsub.f32 %v8360_v56, %v2439_v28 }
 0x11f   : > { %v8367_v47 = vpack.c.bf16 %v2173_v50, %v2172_v5  ;;  %2762 = vmatprep.mubr.f32.mxu0 %v7126_v54  ;;  %v9817_v5 = vand.u32 4294901760, %v7572_v44 }
 0x120   : > { %v2441_v56 = vand.u32 4294901760, %v2440_v55 }
 0x121   : > { %v6536_v50 = vpack.c.bf16 %v9818_v13, %v9817_v5 }
 0x122   : > { %2765 = vmatmul.mubr.f32.gmra.mrb[18].mxu0 %v8375_v29 }
 0x123   : > { %2398 = vmatmul.mubr.f32.vlgmr.msra.gmra.mrb[8].mxu1 %v2397_v14  ;;  %2770 = vmatprep.mubr.f32.mxu0 %v7126_v54  ;;  %v9819_v14 = vand.u32 4294901760, %v7655_v16  ;;  %v2472_v16 = vand.u32 4294901760, %v8401_v3 }
 0x124   : > { %2403 = vmatprep.mubr.f32.mxu1 %v7126_v54  ;;  %3248 = vmatpush1.bf16.msra.mxu1 %v6737_v34 }
 0x125   : > { %3249 = vmatprep.subr.bf16.mxu1 %v6742_v7  ;;  %v6538_v34 = vpack.c.bf16 %v9820_v42, %v9819_v14  ;;  %v2451_v7 = vsub.f32 %v8375_v29, %v2450_v37  ;;  %v2473_v32 = vsub.f32 %v8401_v3, %v2472_v16  ;;  %v9822_v29 = vxor.u32 2147483648, %v7763_v40 }
 0x126   : > { %2773 = vmatmul.mubr.f32.gmra.mrb[20].mxu0 %v8389_v30 }
 0x127   : > { %2409 = vmatmul.mubr.f32.gmra.mrb[10].mxu1 %v2408_v52  ;;  %2778 = vmatprep.mubr.f32.mxu0 %v7126_v54  ;;  %v2461_v52 = vand.u32 4294901760, %v8389_v30  ;;  %v2452_v44 = vand.u32 4294901760, %v2451_v7 }
 0x128   : > { %2414 = vmatprep.mubr.f32.mxu1 %v7126_v54  ;;  %3250 = vmatpush1.bf16.msra.mxu1 %v6740_v25 }
 0x129   : > { %3377 = vmatprep.subr.bf16.mxu1 %v6745_v10  ;;  %v2462_v0 = vsub.f32 %v8389_v30, %v2461_v52  ;;  %v9825_v30 = vld [vmem:[#allocation9_spill] sm:$0xff] }
 0x12a   : > { %2781 = vmatmul.mubr.f32.gmra.mrb[22].mxu0 %v8401_v3  ;;  %v9826_v10 = vxor.u32 2147483648, %v9825_v30 }
 0x12b   : > { %2420 = vmatmul.mubr.f32.gmra.mrb[12].mxu1 %v2419_v49  ;;  %2859 = vmatprep.mubr.f32.mxu0 %v7126_v54  ;;  %v2463_v21 = vand.u32 4294901760, %v2462_v0  ;;  %v9827_v49 = vld [vmem:[#allocation8_spill] sm:$0xff] }
 0x12c   : > { %2425 = vmatprep.mubr.f32.mxu1 %v7126_v54 }
 0x12e   : > { %2863 = vmatmul.mubr.f32.vlgmr.msra.gmra.mrb[8].mxu0 %v2395_v38  ;;  %v2474_v38 = vand.u32 4294901760, %v2473_v32 }
 0x12f   : > { %2431 = vmatmul.mubr.f32.gmra.mrb[14].mxu1 %v2430_v58  ;;  %6537 = vmatpush1.bf16.msra.mxu0 %v6536_v50 }
 0x130   : > { %2436 = vmatprep.mubr.f32.mxu1 %v7126_v54  ;;  %2868 = vmatprep.mubr.f32.mxu0 %v7126_v54 }
 0x131   : > { %6539 = vmatprep.subr.bf16.mxu0 %v6538_v34 }
 0x132   : > { %2872 = vmatmul.mubr.f32.gmra.mrb[10].mxu0 %v2406_v61  ;;  %v6743_v61 = vld [vmem:[%s9711_s3 + $0x40] ss:$8 sps:$4 sm:$0xff]  }
 0x133   : > { %2442 = vmatmul.mubr.f32.gmra.mrb[16].mxu1 %v2441_v56  ;;  %2877 = vmatprep.mubr.f32.mxu0 %v7126_v54  ;;  %v9835_v56 = vld [vmem:[#allocation11_spill] sm:$0xff] }
 0x134   : > { %2447 = vmatprep.mubr.f32.mxu1 %v7126_v54  ;;  %6541 = vmatpush1.bf16.msra.mxu0 %v8296_v33  ;;  %v1823_v33 = vand.u32 3, %v7702_v57  ;;  %v9821_v57 = vpack.c.bf16 %v7644_v18, %v7565_v23  ;;  %v6751_v23 = vld [vmem:[%s9711_s3 + $0x64] ss:$8 sps:$4 sm:$0xff]   ;;  %v9824_v18 = vxor.u32 2147483648, %v9823_v2  ;;  %v2147_v7 = vmul.f32 2.0, %v9835_v56 }
 0x135   : > { %6543 = vmatprep.subr.bf16.mxu0 %v7889_v39  ;;  %v1926_v39 = vand.u32 3, %v7720_v59  ;;  %v6746_v59 = vld [vmem:[%s9711_s3 + $0x50] ss:$8 sps:$4 sm:$0xff]  }
 0x136   : > { %2881 = vmatmul.mubr.f32.gmra.mrb[12].mxu0 %v2417_v9  ;;  %v6748_v9 = vld [vmem:[%s9711_s3 + $0x54] ss:$8 sps:$4 sm:$0xff]   ;;  %vm1825_vm9 = vcmp.eq.s32.totalorder %v1823_v33, 0  ;;  %vm1828_vm10 = vcmp.eq.s32.totalorder %v1823_v33, 2  ;;  %vm1824_vm14 = vcmp.lt.s32.totalorder %v1823_v33, 2  ;;  %v2163_v19 = vmul.f32 %v2147_v7, %v9835_v56 }
 0x137   : > { %2453 = vmatmul.mubr.f32.gmra.mrb[18].mxu1 %v2452_v44  ;;  %2886 = vmatprep.mubr.f32.mxu0 %v7126_v54  ;;  %vm1928_vm7 = vcmp.eq.s32.totalorder %v1926_v39, 0  ;;  %vm1931_vm12 = vcmp.eq.s32.totalorder %v1926_v39, 2  ;;  %v1830_v25 = vsel %vm1828_vm10, %v9824_v18, %v7763_v40  ;;  %vm1927_vm0 = vcmp.lt.s32.totalorder %v1926_v39, 2  ;;  %v6767_v33 = vld [vmem:[%s9712_s4 + $0x40] ss:$8 sps:$4 sm:$0xff]  }
 0x138   : > { %2458 = vmatprep.mubr.f32.mxu1 %v7126_v54  ;;  %v1930_v20 = vsel %vm1928_vm7, %v9827_v49, %v9826_v10  ;;  %v2171_v8 = vsub.f32 1.0, %v2163_v19  ;;  %v6769_v39 = vld [vmem:[%s9712_s4 + $0x44] ss:$8 sps:$4 sm:$0xff]   ;;  %v6782_v18 = vld [vmem:[%s9712_s4 + $0x90] ss:$8 sps:$4 sm:$0xff]  }
 0x139   : > { %v6785_v10 = vld [vmem:[%s9712_s4 + $0xa0] ss:$8 sps:$4 sm:$0xff]   ;;  %v6808_v56 = vld [vmem:[%s9714_s6 + $0x14] ss:$8 sps:$4 sm:$0xff]   ;;  %v6800_v19 = vld [vmem:[%s9712_s4 + $0xf0] ss:$8 sps:$4 sm:$0xff]  }
 0x13a   : > { %2890 = vmatmul.mubr.f32.gmra.mrb[14].mxu0 %v2428_v41  ;;  %v1827_v41 = vsel %vm1825_vm9, %v9823_v2, %v9822_v29  ;;  %v6776_v29 = vld [vmem:[%s9712_s4 + $0x70] ss:$8 sps:$4 sm:$0xff]   ;;  %v6778_v2 = vld [vmem:[%s9712_s4 + $0x74] ss:$8 sps:$4 sm:$0xff]  }
 0x13b   : > { %2464 = vmatmul.mubr.f32.gmra.mrb[20].mxu1 %v2463_v21  ;;  %2895 = vmatprep.mubr.f32.mxu0 %v7126_v54  ;;  %v1831_v58 = vsel %vm1824_vm14, %v1827_v41, %v1830_v25  ;;  %v6779_v41 = vld [vmem:[%s9712_s4 + $0x80] ss:$8 sps:$4 sm:$0xff]   ;;  %v6784_v25 = vld [vmem:[%s9712_s4 + $0x94] ss:$8 sps:$4 sm:$0xff]  }
 0x13c   : > { %2469 = vmatprep.mubr.f32.mxu1 %v7126_v54  ;;  %v1832_v5 = vsel %vm994_vm13, nan, %v1831_v58  ;;  %v6788_v58 = vld [vmem:[%s9712_s4 + $0xb0] ss:$8 sps:$4 sm:$0xff]  }
 0x13e   : > { %2899 = vmatmul.mubr.f32.gmra.mrb[16].mxu0 %v2439_v28  ;;  %v9828_v28 = vxor.u32 2147483648, %v9827_v49  ;;  %v6787_v49 = vld [vmem:[%s9712_s4 + $0xa4] ss:$8 sps:$4 sm:$0xff]  }
 0x13f   : > { %2475 = vmatmul.mubr.f32.gmra.mrb[22].mxu1 %v2474_v38  ;;  %2904 = vmatprep.mubr.f32.mxu0 %v7126_v54 }
 0x140   : > { %3279 = vmatprep.mubr.bf16.mxu1 %v9788_v27  ;;  %v1933_v3 = vsel %vm1931_vm12, %v9828_v28, %v9825_v30 }
 0x141   : > { %v1934_v55 = vsel %vm1927_vm0, %v1930_v20, %v1933_v3 }
 0x142   : > { %2908 = vmatmul.mubr.f32.gmra.mrb[18].mxu0 %v2450_v37  ;;  %v1935_v50 = vsel %vm1098_vm4, nan, %v1934_v55  ;;  %v6790_v55 = vld [vmem:[%s9712_s4 + $0xb4] ss:$8 sps:$4 sm:$0xff]   ;;  %v6793_v37 = vld [vmem:[%s9712_s4 + $0xc4] ss:$8 sps:$4 sm:$0xff]  }
 0x143   : > { %6086 = vmatmul.mubr.msk.bf16.vlgmr.msra.gmra.mrb[24].mxu1 %vm2210_vm11, %v9821_v57  ;;  %2913 = vmatprep.mubr.f32.mxu0 %v7126_v54  ;;  %v3208_v17 = vpack.c.bf16 %v1935_v50, %v1832_v5  ;;  %v2155_v44 = vmul.f32 %v2147_v7, %v1935_v50  ;;  %v6773_v57 = vld [vmem:[%s9712_s4 + $0x60] ss:$8 sps:$4 sm:$0xff]   ;;  %v6796_v50 = vld [vmem:[%s9712_s4 + $0xd4] ss:$8 sps:$4 sm:$0xff]  }
 0x144   : > { %3289 = vmatprep.mubr.bf16.mxu1 %v9788_v27  ;;  %3378 = vmatpush1.bf16.msra.mxu1 %v6743_v61  ;;  %v6770_v61 = vld [vmem:[%s9712_s4 + $0x50] ss:$8 sps:$4 sm:$0xff]  }
 0x145   : > { %3379 = vmatprep.subr.bf16.mxu1 %v6748_v9  ;;  %v6772_v9 = vld [vmem:[%s9712_s4 + $0x54] ss:$8 sps:$4 sm:$0xff]  }
 0x146   : > { %2917 = vmatmul.mubr.f32.gmra.mrb[20].mxu0 %v2461_v52 }
 0x147   : > { %2922 = vmatprep.mubr.f32.mxu0 %v7126_v54 }
 0x148   : > { %3380 = vmatpush1.bf16.msra.mxu1 %v6746_v59  ;;  %v8473_v40 = vpop.f32.mrb[0].mxu0  ;;  %v6775_v59 = vld [vmem:[%s9712_s4 + $0x64] ss:$8 sps:$4 sm:$0xff]  }
 0x149   : > { %3507 = vmatprep.subr.bf16.mxu1 %v6751_v23  ;;  %v8481_v14 = vpop.f32.mrb[1].mxu0  ;;  %v6781_v23 = vld [vmem:[%s9712_s4 + $0x84] ss:$8 sps:$4 sm:$0xff]  }
 0x14a   : > { %2926 = vmatmul.mubr.f32.gmra.mrb[22].mxu0 %v2472_v16  ;;  %v8483_v42 = vpop.f32.mrb[2].mxu0 }
 0x14b   : > { %6087 = vmatmul.mubr.msk.bf16.gmra.mrb[28].mxu1 %vm2210_vm11, %v3207_v43  ;;  %3020 = vmatprep.mubr.f32.mxu0 %v7126_v54  ;;  %v8485_v63 = vpop.f32.mrb[3].mxu0  ;;  %v9832_v43 = vld [vmem:[#allocation4_spill] sm:$0xff] }
 0x14c   : > { %3299 = vmatprep.mubr.bf16.mxu1 %v9788_v27 }
 0x14e   : > { %3022 = vmatmul.mubr.f32.vlgmr.msra.gmra.mrb[8].mxu0 %v8165_v24 }
 0x14f   : > { %6545 = vmatpush1.bf16.msra.mxu0 %v7986_v15  ;;  %3027 = vmatprep.mubr.f32.mxu0 %v7126_v54  ;;  %v6749_v15 = vld [vmem:[%s9711_s3 + $0x60] ss:$8 sps:$4 sm:$0xff]  }
 0x150   : > { %6547 = vmatprep.subr.bf16.mxu0 %v8005_v48  ;;  %v6754_v48 = vld [vmem:[%s9711_s3 + $0x74] ss:$8 sps:$4 sm:$0xff]  }
 0x152   : > { %3029 = vmatmul.mubr.f32.gmra.mrb[10].mxu0 %v8184_v1 }
 0x153   : > { %6088 = vmatmul.mubr.msk.bf16.gmra.mrb[32].mxu1 %vm2210_vm11, %v3208_v17  ;;  %3034 = vmatprep.mubr.f32.mxu0 %v7126_v54 }
 0x154   : > { %3309 = vmatprep.mubr.bf16.mxu1 %v9788_v27  ;;  %6549 = vmatpush1.bf16.msra.mxu0 %v8098_v4  ;;  %v9831_v4 = vld [vmem:[#allocation5_spill] sm:$0xff] }
 0x155   : > { %v9833_v26 = vpack.c.bf16 %v9831_v4, %v9832_v43  ;;  %v6794_v4 = vld [vmem:[%s9712_s4 + $0xd0] ss:$8 sps:$4 sm:$0xff]  }
 0x156   : > { %3036 = vmatmul.mubr.f32.gmra.mrb[12].mxu0 %v8197_v35 }
 0x157   : > { %3041 = vmatprep.mubr.f32.mxu0 %v7126_v54 }
 0x15a   : > { %3043 = vmatmul.mubr.f32.gmra.mrb[14].mxu0 %v8215_v46 }
 0x15b   : > { %6089 = vmatmul.mubr.msk.bf16.gmra.mrb[36].mxu1 %vm2210_vm11, %v3209_v60  ;;  %3048 = vmatprep.mubr.f32.mxu0 %v7126_v54  ;;  %v9834_v60 = vld [vmem:[#allocation10_spill] sm:$0xff] }
 0x15c   : > { %3409 = vmatprep.mubr.bf16.mxu1 %v9788_v27  ;;  %v2146_v34 = vmul.f32 2.0, %v9834_v60 }
 0x15e   : > { %3050 = vmatmul.mubr.f32.gmra.mrb[16].mxu0 %v8232_v62  ;;  %v2154_v52 = vmul.f32 %v2146_v34, %v1832_v5  ;;  %v6791_v5 = vld [vmem:[%s9712_s4 + $0xc0] ss:$8 sps:$4 sm:$0xff]  }
 0x15f   : > { %3055 = vmatprep.mubr.f32.mxu0 %v7126_v54 }
 0x160   : > { %v3338_v0 = vpack.c.bf16 %v2155_v44, %v2154_v52  ;;  %v6802_v52 = vld [vmem:[%s9712_s4 + $0xf4] ss:$8 sps:$4 sm:$0xff]  }
 0x162   : > { %3057 = vmatmul.mubr.f32.gmra.mrb[18].mxu0 %v8252_v36 }
 0x163   : > { %6098 = vmatmul.mubr.msk.bf16.vlgmr.msra.gmra.mrb[40].mxu1 %vm2210_vm11, %v9833_v26  ;;  %3062 = vmatprep.mubr.f32.mxu0 %v7126_v54  ;;  %v6799_v26 = vld [vmem:[%s9712_s4 + $0xe4] ss:$8 sps:$4 sm:$0xff]  }
 0x164   : > { %3419 = vmatprep.mubr.bf16.mxu1 %v9788_v27  ;;  %3508 = vmatpush1.bf16.msra.mxu1 %v6749_v15 }
 0x165   : > { %3509 = vmatprep.subr.bf16.mxu1 %v6754_v48 }
 0x166   : > { %3064 = vmatmul.mubr.f32.gmra.mrb[20].mxu0 %v8266_v31 }
 0x167   : > { %3069 = vmatprep.mubr.f32.mxu0 %v7126_v54 }
 0x168   : > { %3510 = vmatpush1.bf16.msra.mxu1 %v6752_v6 }
 0x16a   : > { %3071 = vmatmul.mubr.f32.gmra.mrb[22].mxu0 %v8290_v22 }
 0x16b   : > { %6099 = vmatmul.mubr.msk.bf16.gmra.mrb[44].mxu1 %vm2210_vm11, %v3337_v11  ;;  %3149 = vmatprep.mubr.f32.mxu0 %v7126_v54 }
 0x16c   : > { %3429 = vmatprep.mubr.bf16.mxu1 %v9788_v27 }
 0x16e   : > { %3151 = vmatmul.mubr.f32.vlgmr.msra.gmra.mrb[8].mxu0 %v8165_v24 }
 0x16f   : > { %3156 = vmatprep.mubr.f32.mxu0 %v7126_v54 }
 0x172   : > { %3158 = vmatmul.mubr.f32.gmra.mrb[10].mxu0 %v8184_v1 }
 0x173   : > { %6100 = vmatmul.mubr.msk.bf16.gmra.mrb[48].mxu1 %vm2210_vm11, %v3338_v0  ;;  %3163 = vmatprep.mubr.f32.mxu0 %v7126_v54 }
 0x174   : > { %3439 = vmatprep.mubr.bf16.mxu1 %v9788_v27 }
 0x176   : > { %3165 = vmatmul.mubr.f32.gmra.mrb[12].mxu0 %v8197_v35 }
 0x177   : > { %3170 = vmatprep.mubr.f32.mxu0 %v7126_v54 }
 0x17a   : > { %3172 = vmatmul.mubr.f32.gmra.mrb[14].mxu0 %v8215_v46 }
 0x17b   : > { %6101 = vmatmul.mubr.msk.bf16.gmra.mrb[52].mxu1 %vm2210_vm11, %v3339_v51  ;;  %3177 = vmatprep.mubr.f32.mxu0 %v7126_v54  ;;  %v6764_v51 = vld [vmem:[%s9712_s4 + $0x30] ss:$8 sps:$4 sm:$0xff]  }
 0x17c   : > { %3539 = vmatprep.mubr.bf16.mxu1 %v9788_v27 }
 0x17d   : > { %v8551_v24 = vpop.f32.mrb[0].mxu1 }
 0x17e   : > { %3179 = vmatmul.mubr.f32.gmra.mrb[16].mxu0 %v8232_v62  ;;  %v8553_v1 = vpop.f32.mrb[1].mxu1  ;;  %v2162_v62 = vmul.f32 %v2146_v34, %v9834_v60  ;;  %v6805_v60 = vld [vmem:[%s9714_s6 + $0x4] ss:$8 sps:$4 sm:$0xff]  }
 0x17f   : > { %3184 = vmatprep.mubr.f32.mxu0 %v7126_v54  ;;  %v8555_v35 = vpop.f32.mrb[2].mxu1  ;;  %4141 = vmatprep.subr.bf16.mxu0 %v6805_v60  ;;  %v6841_v60 = vld [vmem:[%s9714_s6 + $0xc4] ss:$8 sps:$4 sm:$0xff]  }
 0x180   : > { %v8560_v46 = vpop.f32.mrb[3].mxu1  ;;  %v2170_v11 = vsub.f32 1.0, %v2162_v62 }
 0x182   : > { %3186 = vmatmul.mubr.f32.gmra.mrb[18].mxu0 %v8252_v36  ;;  %v3468_v36 = vpack.c.bf16 %v2171_v8, %v2170_v11  ;;  %v6809_v8 = vld [vmem:[%s9714_s6 + $0x20] ss:$8 sps:$4 sm:$0xff]  }
 0x183   : > { %6110 = vmatmul.mubr.msk.bf16.vlgmr.msra.gmra.mrb[40].mxu1 %vm2210_vm11, %v9836_v45  ;;  %3191 = vmatprep.mubr.f32.mxu0 %v7126_v54  ;;  %v6811_v45 = vld [vmem:[%s9714_s6 + $0x24] ss:$8 sps:$4 sm:$0xff]  }
 0x184   : > { %3549 = vmatprep.mubr.bf16.mxu1 %v9788_v27 }
 0x186   : > { %3193 = vmatmul.mubr.f32.gmra.mrb[20].mxu0 %v8266_v31  ;;  %v6757_v31 = vld [vmem:[%s9712_s4 + $0x4] ss:$8 sps:$4 sm:$0xff]  }
 0x187   : > { %3198 = vmatprep.mubr.f32.mxu0 %v7126_v54  ;;  %v6755_v54 = vld [vmem:[%s9712_s4] ss:$8 sps:$4 sm:$0xff]   ;;  %3852 = vmatprep.subr.bf16.mxu1 %v6757_v31  ;;  %v6814_v31 = vld [vmem:[%s9714_s6 + $0x34] ss:$8 sps:$4 sm:$0xff]  }
 0x188   : > { %3853 = vmatpush1.bf16.msra.mxu1 %v6755_v54 }
 0x18a   : > { %3200 = vmatmul.mubr.f32.gmra.mrb[22].mxu0 %v8290_v22  ;;  %v6758_v22 = vld [vmem:[%s9712_s4 + $0x10] ss:$8 sps:$4 sm:$0xff]  }
 0x18b   : > { %6111 = vmatmul.mubr.msk.bf16.gmra.mrb[44].mxu1 %vm2210_vm11, %v8314_v12  ;;  %v6761_v12 = vld [vmem:[%s9712_s4 + $0x20] ss:$8 sps:$4 sm:$0xff]  }
 0x18c   : > { %3559 = vmatprep.mubr.bf16.mxu1 %v9788_v27 }
 0x193   : > { %6112 = vmatmul.mubr.msk.bf16.gmra.mrb[48].mxu1 %vm2210_vm11, %v3468_v36 }
 0x194   : > { %3569 = vmatprep.mubr.bf16.mxu1 %v9788_v27  ;;  %v6760_v27 = vld [vmem:[%s9712_s4 + $0x14] ss:$8 sps:$4 sm:$0xff]  }
 0x195   : > { %3854 = vmatprep.subr.bf16.mxu1 %v6760_v27 }
 0x196   : > { %3855 = vmatpush1.bf16.msra.mxu1 %v6758_v22 }
 0x197   : > { %3856 = vmatprep.subr.bf16.mxu1 %v6763_v53 }
 0x19a   : > { %3857 = vmatpush1.bf16.msra.mxu1 %v6761_v12  ;;  %v6812_v12 = vld [vmem:[%s9714_s6 + $0x30] ss:$8 sps:$4 sm:$0xff]  }
 0x19b   : > { %6113 = vmatmul.mubr.msk.bf16.gmra.mrb[52].mxu1 %vm2210_vm11, %v8367_v47  ;;  %v6766_v47 = vld [vmem:[%s9712_s4 + $0x34] ss:$8 sps:$4 sm:$0xff]  }
 0x19c   : > { %3858 = vmatprep.subr.bf16.mxu1 %v6766_v47  ;;  %v6817_v47 = vld [vmem:[%s9714_s6 + $0x44] ss:$8 sps:$4 sm:$0xff]  }
 0x19e   : > { %3859 = vmatpush1.bf16.msra.mxu1 %v6764_v51 }
 0x19f   : > { %3860 = vmatprep.subr.bf16.mxu1 %v6769_v39 }
 0x1a2   : > { %3861 = vmatpush1.bf16.msra.mxu1 %v6767_v33  ;;  %v6820_v33 = vld [vmem:[%s9714_s6 + $0x54] ss:$8 sps:$4 sm:$0xff]  }
 0x1a3   : > { %3862 = vmatprep.subr.bf16.mxu1 %v6772_v9 }
 0x1a6   : > { %3863 = vmatpush1.bf16.msra.mxu1 %v6770_v61  ;;  %v6818_v61 = vld [vmem:[%s9714_s6 + $0x50] ss:$8 sps:$4 sm:$0xff]  }
 0x1a7   : > { %3864 = vmatprep.subr.bf16.mxu1 %v6775_v59 }
 0x1aa   : > { %3865 = vmatpush1.bf16.msra.mxu1 %v6773_v57  ;;  %v6823_v57 = vld [vmem:[%s9714_s6 + $0x64] ss:$8 sps:$4 sm:$0xff]  }
 0x1ab   : > { %3866 = vmatprep.subr.bf16.mxu1 %v6778_v2 }
 0x1ae   : > { %3867 = vmatpush1.bf16.msra.mxu1 %v6776_v29  ;;  %v6821_v29 = vld [vmem:[%s9714_s6 + $0x60] ss:$8 sps:$4 sm:$0xff]  }
 0x1af   : > { %3868 = vmatprep.subr.bf16.mxu1 %v6781_v23  ;;  %v6826_v23 = vld [vmem:[%s9714_s6 + $0x74] ss:$8 sps:$4 sm:$0xff]  }
 0x1b2   : > { %3869 = vmatpush1.bf16.msra.mxu1 %v6779_v41 }
 0x1b3   : > { %3870 = vmatprep.subr.bf16.mxu1 %v6784_v25 }
 0x1b6   : > { %3871 = vmatpush1.bf16.msra.mxu1 %v6782_v18 }
 0x1b7   : > { %3872 = vmatprep.subr.bf16.mxu1 %v6787_v49  ;;  %v6829_v49 = vld [vmem:[%s9714_s6 + $0x84] ss:$8 sps:$4 sm:$0xff]  }
 0x1b9   : > { %v8600_v16 = vpop.f32.mrb[4].mxu0 }
 0x1ba   : > { %v8602_v21 = vpop.f32.mrb[5].mxu0  ;;  %3873 = vmatpush1.bf16.msra.mxu1 %v6785_v10 }
 0x1bb   : > { %v8604_v32 = vpop.f32.mrb[6].mxu0  ;;  %3874 = vmatprep.subr.bf16.mxu1 %v6790_v55 }
 0x1bc   : > { %v8606_v38 = vpop.f32.mrb[7].mxu0 }
 0x1be   : > { %3875 = vmatpush1.bf16.msra.mxu1 %v6788_v58  ;;  %v6832_v58 = vld [vmem:[%s9714_s6 + $0x94] ss:$8 sps:$4 sm:$0xff]  }
 0x1bf   : > { %3876 = vmatprep.subr.bf16.mxu1 %v6793_v37  ;;  %v6830_v37 = vld [vmem:[%s9714_s6 + $0x90] ss:$8 sps:$4 sm:$0xff]  }
 0x1c2   : > { %3877 = vmatpush1.bf16.msra.mxu1 %v6791_v5 }
 0x1c3   : > { %3878 = vmatprep.subr.bf16.mxu1 %v6796_v50 }
 0x1c6   : > { %3879 = vmatpush1.bf16.msra.mxu1 %v6794_v4  ;;  %v6833_v4 = vld [vmem:[%s9714_s6 + $0xa0] ss:$8 sps:$4 sm:$0xff]  }
 0x1c7   : > { %3880 = vmatprep.subr.bf16.mxu1 %v6799_v26 }
 0x1ee   : > { %v8644_v30 = vpop.f32.mrb[4].mxu1 }
 0x1ef   : > { %v8652_v20 = vpop.f32.mrb[5].mxu1 }
 0x1f0   : > { %v8654_v28 = vpop.f32.mrb[6].mxu1 }
 0x1f1   : > { %v8656_v3 = vpop.f32.mrb[7].mxu1 }
 0x1f6   : > { %v2399_v13 = vpop.f32.mrb[8].mxu1 }
 0x1f7   : > { %v8674_v17 = vadd.f32 %v2399_v13, %v8473_v40  ;;  %v2401_v15 = vpop.f32.mrb[9].mxu1  ;;  %v6835_v13 = vld [vmem:[%s9714_s6 + $0xa4] ss:$8 sps:$4 sm:$0xff]  }
 0x1f8   : > { %v8677_v48 = vadd.f32 %v2401_v15, %v8481_v14  ;;  %v6803_v14 = vld [vmem:[%s9714_s6] ss:$8 sps:$4 sm:$0xff]  }
 0x1f9   : > { %4142 = vmatpush1.bf16.msra.mxu0 %v6803_v14 }
 0x1fa   : > { %v2410_v43 = vpop.f32.mrb[10].mxu1  ;;  %4143 = vmatprep.subr.bf16.mxu0 %v6808_v56 }
 0x1fb   : > { %v8686_v6 = vadd.f32 %v2410_v43, %v8483_v42  ;;  %v2412_v40 = vpop.f32.mrb[11].mxu1  ;;  %v6797_v42 = vld [vmem:[%s9712_s4 + $0xe0] ss:$8 sps:$4 sm:$0xff]   ;;  %v6838_v43 = vld [vmem:[%s9714_s6 + $0xb4] ss:$8 sps:$4 sm:$0xff]  }
 0x1fc   : > { %v8695_v34 = vadd.f32 %v2412_v40, %v8485_v63  ;;  %v6806_v63 = vld [vmem:[%s9714_s6 + $0x10] ss:$8 sps:$4 sm:$0xff]   ;;  %3881 = vmatpush1.bf16.msra.mxu1 %v6797_v42 }
 0x1fd   : > { %3882 = vmatprep.subr.bf16.mxu1 %v6802_v52  ;;  %4144 = vmatpush1.bf16.msra.mxu0 %v6806_v63  ;;  %v6836_v40 = vld [vmem:[%s9714_s6 + $0xb0] ss:$8 sps:$4 sm:$0xff]   ;;  %v6844_v52 = vld [vmem:[%s9714_s6 + $0xd4] ss:$8 sps:$4 sm:$0xff]  }
 0x1fe   : > { %v2421_v7 = vpop.f32.mrb[12].mxu1  ;;  %4145 = vmatprep.subr.bf16.mxu0 %v6811_v45 }
 0x1ff   : > { %v8710_v44 = vadd.f32 %v2421_v7, %v8600_v16  ;;  %v2423_v0 = vpop.f32.mrb[13].mxu1  ;;  %v6839_v7 = vld [vmem:[%s9714_s6 + $0xc0] ss:$8 sps:$4 sm:$0xff]  }
 0x200   : > { %v8716_v62 = vadd.f32 %v2423_v0, %v8602_v21  ;;  %3883 = vmatpush1.bf16.msra.mxu1 %v6800_v19  ;;  %v6842_v0 = vld [vmem:[%s9714_s6 + $0xd0] ss:$8 sps:$4 sm:$0xff]  }
 0x201   : > { %4146 = vmatpush1.bf16.msra.mxu0 %v6809_v8 }
 0x202   : > { %v2432_v11 = vpop.f32.mrb[14].mxu1  ;;  %4147 = vmatprep.subr.bf16.mxu0 %v6814_v31 }
 0x203   : > { %v8725_v36 = vadd.f32 %v2432_v11, %v8604_v32  ;;  %v2434_v54 = vpop.f32.mrb[15].mxu1  ;;  %v6815_v32 = vld [vmem:[%s9714_s6 + $0x40] ss:$8 sps:$4 sm:$0xff]  }
 0x204   : > { %v8731_v22 = vadd.f32 %v2434_v54, %v8606_v38 }
 0x205   : > { %4148 = vmatpush1.bf16.msra.mxu0 %v6812_v12 }
 0x206   : > { %v2443_v27 = vpop.f32.mrb[16].mxu1  ;;  %4149 = vmatprep.subr.bf16.mxu0 %v6817_v47 }
 0x207   : > { %v8737_v53 = vadd.f32 %v2443_v27, %v8551_v24  ;;  %v2445_v51 = vpop.f32.mrb[17].mxu1 }
 0x208   : > { %v8743_v16 = vadd.f32 %v2445_v51, %v8553_v1 }
 0x209   : > { %4150 = vmatpush1.bf16.msra.mxu0 %v6815_v32 }
 0x20a   : > { %v2454_v21 = vpop.f32.mrb[18].mxu1  ;;  %4151 = vmatprep.subr.bf16.mxu0 %v6820_v33 }
 0x20b   : > { %v8749_v38 = vadd.f32 %v2454_v21, %v8555_v35  ;;  %v2456_v24 = vpop.f32.mrb[19].mxu1 }
 0x20c   : > { %v8755_v39 = vadd.f32 %v2456_v24, %v8560_v46 }
 0x20d   : > { %4152 = vmatpush1.bf16.msra.mxu0 %v6818_v61 }
 0x20e   : > { %v2465_v1 = vpop.f32.mrb[20].mxu1  ;;  %4153 = vmatprep.subr.bf16.mxu0 %v6823_v57 }
 0x20f   : > { %v8761_v9 = vadd.f32 %v2465_v1, %v8644_v30  ;;  %v2467_v35 = vpop.f32.mrb[21].mxu1  ;;  %v6824_v30 = vld [vmem:[%s9714_s6 + $0x70] ss:$8 sps:$4 sm:$0xff]   ;;  %v3598_v1 = vlaneseq }
 0x210   : > { %v8767_v59 = vadd.f32 %v2467_v35, %v8652_v20 }
 0x211   : > { %4154 = vmatpush1.bf16.msra.mxu0 %v6821_v29 }
 0x212   : > { %v2476_v46 = vpop.f32.mrb[22].mxu1  ;;  %4155 = vmatprep.subr.bf16.mxu0 %v6826_v23 }
 0x213   : > { %v8773_v2 = vadd.f32 %v2476_v46, %v8654_v28  ;;  %v2478_v41 = vpop.f32.mrb[23].mxu1 }
 0x214   : > { %v8779_v18 = vadd.f32 %v2478_v41, %v8656_v3  ;;  %v6827_v3 = vld [vmem:[%s9714_s6 + $0x80] ss:$8 sps:$4 sm:$0xff]  }
 0x215   : > { %4156 = vmatpush1.bf16.msra.mxu0 %v6824_v30 }
 0x216   : > { %v3281_v25 = vpop.f32.mrb[24].mxu1  ;;  %4157 = vmatprep.subr.bf16.mxu0 %v6829_v49  ;;  %v3596_v49 = vld [vmem:[%s8843_s27] sm:$0x3] }
 0x217   : > { %v3283_v10 = vpop.f32.mrb[25].mxu1 }
 0x218   : > { %v3285_v20 = vpop.f32.mrb[26].mxu1 }
 0x219   : > { %v3287_v28 = vpop.f32.mrb[27].mxu1  ;;  %4158 = vmatpush1.bf16.msra.mxu0 %v6827_v3 }
 0x21a   : > { %4159 = vmatprep.subr.bf16.mxu0 %v6832_v58 }
 0x21d   : > { %4160 = vmatpush1.bf16.msra.mxu0 %v6830_v37 }
 0x21e   : > { %v3291_v55 = vpop.f32.mrb[28].mxu1  ;;  %4161 = vmatprep.subr.bf16.mxu0 %v6835_v13 }
 0x21f   : > { %v3293_v5 = vpop.f32.mrb[29].mxu1 }
 0x220   : > { %v3295_v50 = vpop.f32.mrb[30].mxu1 }
 0x221   : > { %v3297_v15 = vpop.f32.mrb[31].mxu1  ;;  %4162 = vmatpush1.bf16.msra.mxu0 %v6833_v4 }
 0x222   : > { %4163 = vmatprep.subr.bf16.mxu0 %v6838_v43 }
 0x225   : > { %4164 = vmatpush1.bf16.msra.mxu0 %v6836_v40 }
 0x226   : > { %v3301_v26 = vpop.f32.mrb[32].mxu1  ;;  %4165 = vmatprep.subr.bf16.mxu0 %v6841_v60 }
 0x227   : > { %v3303_v14 = vpop.f32.mrb[33].mxu1 }
 0x228   : > { %v8811_v56 = vpop.f32.mrb[34].mxu1 }
 0x229   : > { %v8813_v42 = vpop.f32.mrb[35].mxu1  ;;  %4166 = vmatpush1.bf16.msra.mxu0 %v6839_v7 }
 0x22a   : > { %4167 = vmatprep.subr.bf16.mxu0 %v6844_v52 }
 0x22d   : > { %4168 = vmatpush1.bf16.msra.mxu0 %v6842_v0 }
 0x22e   : > { %v8821_v63 = vpop.f32.mrb[36].mxu1 }
 0x22f   : > { %v8826_v45 = vpop.f32.mrb[37].mxu1 }
 0x230   : > { %v8828_v19 = vpop.f32.mrb[38].mxu1 }
 0x231   : > { %v8830_v11 = vpop.f32.mrb[39].mxu1 }
 0x241   : > { %v3152_v8 = vpop.f32.mrb[8].mxu0 }
 0x242   : > { %v6554_v54 = vadd.f32 %v3152_v8, %v8674_v17  ;;  %v3154_v31 = vpop.f32.mrb[9].mxu0 }
 0x243   : > { %v6555_v27 = vadd.f32 %v3154_v31, %v8677_v48  ;;  %v3599_v48 = vshrl.u32 %v3598_v1, 7 }
 0x244   : > { %v3320_v12 = vadd.f32 %v6554_v54, %v3281_v25 }
 0x245   : > { %v3321_v51 = vadd.f32 %v6555_v27, %v3283_v10  ;;  %v3159_v47 = vpop.f32.mrb[10].mxu0  ;;  %v8846_v30 = vsub.s32 1, %v3599_v48 }
 0x246   : > { %v6556_v21 = vadd.f32 %v3159_v47, %v8686_v6  ;;  %v3161_v32 = vpop.f32.mrb[11].mxu0 }
 0x247   : > { %v6557_v24 = vadd.f32 %v3161_v32, %v8695_v34  ;;  %v8854_v37 = vrot.slane %v3596_v49, %v8846_v30 }
 0x248   : > { %v3322_v33 = vadd.f32 %v6556_v21, %v3285_v20  ;;  %v8849_v20 = vsub.s32 0, %v3599_v48 }
 0x249   : > { %v3323_v61 = vadd.f32 %v6557_v24, %v3287_v28  ;;  %v3166_v35 = vpop.f32.mrb[12].mxu0 }
 0x24a   : > { %v6558_v57 = vadd.f32 %v3166_v35, %v8710_v44  ;;  %v3168_v46 = vpop.f32.mrb[13].mxu0 }
 0x24b   : > { %v6559_v17 = vadd.f32 %v3168_v46, %v8716_v62 }
 0x24c   : > { %v3324_v29 = vadd.f32 %v6558_v57, %v3291_v55 }
 0x24d   : > { %v3325_v41 = vadd.f32 %v6559_v17, %v3293_v5  ;;  %v3173_v23 = vpop.f32.mrb[14].mxu0 }
 0x24e   : > { %v6560_v25 = vadd.f32 %v3173_v23, %v8725_v36  ;;  %v3175_v6 = vpop.f32.mrb[15].mxu0 }
 0x24f   : > { %v6561_v34 = vadd.f32 %v3175_v6, %v8731_v22 }
 0x250   : > { %v3326_v44 = vadd.f32 %v6560_v25, %v3295_v50 }
 0x251   : > { %v3327_v10 = vadd.f32 %v6561_v34, %v3297_v15  ;;  %v3180_v62 = vpop.f32.mrb[16].mxu0  ;;  %v8857_v15 = vrot.slane %v3596_v49, %v8849_v20 }
 0x252   : > { %v6562_v28 = vadd.f32 %v3180_v62, %v8737_v53  ;;  %v3182_v36 = vpop.f32.mrb[17].mxu0 }
 0x253   : > { %v6563_v3 = vadd.f32 %v3182_v36, %v8743_v16 }
 0x254   : > { %v3328_v58 = vadd.f32 %v6562_v28, %v3301_v26 }
 0x255   : > { %v3329_v5 = vadd.f32 %v6563_v3, %v3303_v14  ;;  %v3187_v22 = vpop.f32.mrb[18].mxu0 }
 0x256   : > { %v3541_v55 = vpop.f32.mrb[40].mxu1  ;;  %v6564_v4 = vadd.f32 %v3187_v22, %v8749_v38  ;;  %v3189_v43 = vpop.f32.mrb[19].mxu0 }
 0x257   : > { %v3543_v13 = vpop.f32.mrb[41].mxu1  ;;  %v6570_v50 = vadd.f32 %v3541_v55, %v3320_v12  ;;  %v6565_v60 = vadd.f32 %v3189_v43, %v8755_v39 }
 0x258   : > { %v3545_v40 = vpop.f32.mrb[42].mxu1  ;;  %v6571_v53 = vadd.f32 %v3543_v13, %v3321_v51  ;;  %v3330_v7 = vadd.f32 %v6564_v4, %v8811_v56 }
 0x259   : > { %v3547_v16 = vpop.f32.mrb[43].mxu1  ;;  %v6572_v26 = vadd.f32 %v3545_v40, %v3322_v33  ;;  %v3331_v0 = vadd.f32 %v6565_v60, %v8813_v42  ;;  %v3194_v8 = vpop.f32.mrb[20].mxu0  ;;  %v8867_v54 = vadd.f32 %v6570_v50, %v8857_v15 }
 0x25a   : > { %v8863_v52 = vadd.f32 %v6571_v53, %v8854_v37  ;;  %v6573_v14 = vadd.f32 %v3547_v16, %v3323_v61  ;;  %v6566_v31 = vadd.f32 %v3194_v8, %v8761_v9  ;;  %v3196_v39 = vpop.f32.mrb[21].mxu0 }
 0x25b   : > { %v8870_v38 = vadd.f32 %v6572_v26, %v8857_v15  ;;  %v6567_v56 = vadd.f32 %v3196_v39, %v8767_v59  ;;  %v3624_v9 = vmax.f32 %v8867_v54, 0.0 }
 0x25c   : > { %v8874_v27 = vadd.f32 %v6573_v14, %v8854_v37  ;;  %v3332_v51 = vadd.f32 %v6566_v31, %v8821_v63  ;;  %v3625_v47 = vmax.f32 %v8863_v52, 0.0 }
 0x25d   : > { %v3626_v12 = vmax.f32 %v8870_v38, 0.0  ;;  %v3333_v32 = vadd.f32 %v6567_v56, %v8826_v45  ;;  %v3201_v24 = vpop.f32.mrb[22].mxu0 }
 0x25e   : > { %v3551_v42 = vpop.f32.mrb[44].mxu1  ;;  %v3627_v21 = vmax.f32 %v8874_v27, 0.0  ;;  %v6568_v61 = vadd.f32 %v3201_v24, %v8773_v2  ;;  %v3203_v35 = vpop.f32.mrb[23].mxu0 }
 0x25f   : > { %v3553_v33 = vpop.f32.mrb[45].mxu1  ;;  %v6574_v1 = vadd.f32 %v3551_v42, %v3324_v29  ;;  %v6569_v63 = vadd.f32 %v3203_v35, %v8779_v18  ;;  %v3640_v48 = vpack.c.bf16 %v3626_v12, %v3624_v9 }
 0x260   : > { %v3555_v59 = vpop.f32.mrb[46].mxu1  ;;  %v6575_v57 = vadd.f32 %v3553_v33, %v3325_v41  ;;  %v3641_v46 = vpack.c.bf16 %v3627_v21, %v3625_v47  ;;  %v3334_v25 = vadd.f32 %v6568_v61, %v8828_v19 }
 0x261   : > { %v3557_v17 = vpop.f32.mrb[47].mxu1  ;;  %v6576_v23 = vadd.f32 %v3555_v59, %v3326_v44  ;;  %v3335_v29 = vadd.f32 %v6569_v63, %v8830_v11  ;;  %v8891_v2 = vadd.f32 %v6574_v1, %v8857_v15  ;;  %v6850_v59 = vld [vmem:[%s9714_s6 + $0xf4] ss:$8 sps:$4 sm:$0xff]   ;;  %v6853_v63 = vld [vmem:[%s9712_s4 + $0x104] ss:$8 sps:$4 sm:$0xff]  }
 0x262   : > { %v8887_v45 = vadd.f32 %v6575_v57, %v8854_v37  ;;  %v6577_v6 = vadd.f32 %v3557_v17, %v3327_v10  ;;  %3884 = vmatprep.mubr.bf16.mxu1 %v3641_v46  ;;  %v6848_v57 = vld [vmem:[%s9714_s6 + $0xf0] ss:$8 sps:$4 sm:$0xff]   ;;  %v6851_v46 = vld [vmem:[%s9712_s4 + $0x100] ss:$8 sps:$4 sm:$0xff]   ;;  %v6856_v17 = vld [vmem:[%s9712_s4 + $0x114] ss:$8 sps:$4 sm:$0xff]   ;;  %4517 = vmatprep.subr.bf16.mxu1 %v6853_v63 }
 0x263   : > { %v8894_v41 = vadd.f32 %v6576_v23, %v8857_v15  ;;  %3885 = vmatmul.mubr.bf16.vlgmr.msra.gmra.mrb[56].mxu1 %v3640_v48  ;;  %v3628_v11 = vmax.f32 %v8891_v2, 0.0  ;;  %v6854_v48 = vld [vmem:[%s9712_s4 + $0x110] ss:$8 sps:$4 sm:$0xff]   ;;  %v6859_v23 = vld [vmem:[%s9712_s4 + $0x124] ss:$8 sps:$4 sm:$0xff]  }
 0x264   : > { %v8897_v18 = vadd.f32 %v6577_v6, %v8854_v37  ;;  %v3629_v44 = vmax.f32 %v8887_v45, 0.0  ;;  %4518 = vmatpush1.bf16.msra.mxu1 %v6851_v46  ;;  %v6862_v6 = vld [vmem:[%s9712_s4 + $0x134] ss:$8 sps:$4 sm:$0xff]  }
 0x265   : > { %v3630_v34 = vmax.f32 %v8894_v41, 0.0  ;;  %4519 = vmatprep.subr.bf16.mxu1 %v6856_v17 }
 0x266   : > { %v3561_v19 = vpop.f32.mrb[48].mxu1  ;;  %v3631_v10 = vmax.f32 %v8897_v18, 0.0 }
 0x267   : > { %v3563_v62 = vpop.f32.mrb[49].mxu1  ;;  %v6578_v49 = vadd.f32 %v3561_v19, %v3328_v58  ;;  %v3642_v13 = vpack.c.bf16 %v3630_v34, %v3628_v11  ;;  %v6865_v34 = vld [vmem:[%s9712_s4 + $0x144] ss:$8 sps:$4 sm:$0xff]   ;;  %v6863_v19 = vld [vmem:[%s9712_s4 + $0x140] ss:$8 sps:$4 sm:$0xff]  }
 0x268   : > { %v3565_v28 = vpop.f32.mrb[50].mxu1  ;;  %v6579_v36 = vadd.f32 %v3563_v62, %v3329_v5  ;;  %v3643_v3 = vpack.c.bf16 %v3631_v10, %v3629_v44  ;;  %4520 = vmatpush1.bf16.msra.mxu1 %v6854_v48  ;;  %v6868_v44 = vld [vmem:[%s9712_s4 + $0x154] ss:$8 sps:$4 sm:$0xff]   ;;  %v6866_v10 = vld [vmem:[%s9712_s4 + $0x150] ss:$8 sps:$4 sm:$0xff]  }
 0x269   : > { %v3567_v55 = vpop.f32.mrb[51].mxu1  ;;  %v6580_v22 = vadd.f32 %v3565_v28, %v3330_v7  ;;  %v8907_v43 = vadd.f32 %v6578_v49, %v8857_v15  ;;  %4521 = vmatprep.subr.bf16.mxu1 %v6859_v23  ;;  %v6871_v62 = vld [vmem:[%s9712_s4 + $0x164] ss:$8 sps:$4 sm:$0xff]   ;;  %v6869_v49 = vld [vmem:[%s9712_s4 + $0x160] ss:$8 sps:$4 sm:$0xff]  }
 0x26a   : > { %v8904_v50 = vadd.f32 %v6579_v36, %v8854_v37  ;;  %v6581_v4 = vadd.f32 %v3567_v55, %v3331_v0  ;;  %3894 = vmatprep.mubr.bf16.mxu1 %v3643_v3  ;;  %v6874_v11 = vld [vmem:[%s9712_s4 + $0x174] ss:$8 sps:$4 sm:$0xff]   ;;  %v6872_v28 = vld [vmem:[%s9712_s4 + $0x170] ss:$8 sps:$4 sm:$0xff]   ;;  %v6877_v36 = vld [vmem:[%s9712_s4 + $0x184] ss:$8 sps:$4 sm:$0xff]  }
 0x26b   : > { %v8910_v40 = vadd.f32 %v6580_v22, %v8857_v15  ;;  %3895 = vmatmul.mubr.bf16.gmra.mrb[60].mxu1 %v3642_v13  ;;  %v3632_v14 = vmax.f32 %v8907_v43, 0.0  ;;  %v6875_v3 = vld [vmem:[%s9712_s4 + $0x180] ss:$8 sps:$4 sm:$0xff]   ;;  %v6880_v55 = vld [vmem:[%s9712_s4 + $0x194] ss:$8 sps:$4 sm:$0xff]  }
 0x26c   : > { %v8913_v58 = vadd.f32 %v6581_v4, %v8854_v37  ;;  %v3633_v60 = vmax.f32 %v8904_v50, 0.0  ;;  %v6878_v22 = vld [vmem:[%s9712_s4 + $0x190] ss:$8 sps:$4 sm:$0xff]   ;;  %v6883_v13 = vld [vmem:[%s9712_s4 + $0x1a4] ss:$8 sps:$4 sm:$0xff]  }
 0x26d   : > { %v3634_v5 = vmax.f32 %v8910_v40, 0.0  ;;  %v6881_v4 = vld [vmem:[%s9712_s4 + $0x1a0] ss:$8 sps:$4 sm:$0xff]  }
 0x26e   : > { %v3571_v53 = vpop.f32.mrb[52].mxu1  ;;  %v3635_v16 = vmax.f32 %v8913_v58, 0.0 }
 0x26f   : > { %v3573_v26 = vpop.f32.mrb[53].mxu1  ;;  %v6582_v7 = vadd.f32 %v3571_v53, %v3332_v51  ;;  %v3644_v12 = vpack.c.bf16 %v3634_v5, %v3632_v14  ;;  %v6886_v5 = vld [vmem:[%s9712_s4 + $0x1b4] ss:$8 sps:$4 sm:$0xff]   ;;  %v6884_v53 = vld [vmem:[%s9712_s4 + $0x1b0] ss:$8 sps:$4 sm:$0xff]  }
 0x270   : > { %v3575_v0 = vpop.f32.mrb[54].mxu1  ;;  %v6583_v8 = vadd.f32 %v3573_v26, %v3333_v32  ;;  %v3645_v31 = vpack.c.bf16 %v3635_v16, %v3633_v60  ;;  %v6889_v60 = vld [vmem:[%s9712_s4 + $0x1c4] ss:$8 sps:$4 sm:$0xff]   ;;  %v6887_v16 = vld [vmem:[%s9712_s4 + $0x1c0] ss:$8 sps:$4 sm:$0xff]  }
 0x271   : > { %v3577_v39 = vpop.f32.mrb[55].mxu1  ;;  %v6584_v56 = vadd.f32 %v3575_v0, %v3334_v25  ;;  %v8923_v21 = vadd.f32 %v6582_v7, %v8857_v15  ;;  %v6857_v25 = vld [vmem:[%s9712_s4 + $0x120] ss:$8 sps:$4 sm:$0xff]  }
 0x272   : > { %v8920_v42 = vadd.f32 %v6583_v8, %v8854_v37  ;;  %v6585_v47 = vadd.f32 %v3577_v39, %v3335_v29  ;;  %3904 = vmatprep.mubr.bf16.mxu1 %v3645_v31  ;;  %4522 = vmatpush1.bf16.msra.mxu1 %v6857_v25  ;;  %v6860_v29 = vld [vmem:[%s9712_s4 + $0x130] ss:$8 sps:$4 sm:$0xff]   ;;  %v3680_v26 = vld [vmem:[%s9713_s5] sm:$0x3] }
 0x273   : > { %v8926_v24 = vadd.f32 %v6584_v56, %v8857_v15  ;;  %3905 = vmatmul.mubr.bf16.gmra.mrb[64].mxu1 %v3644_v12  ;;  %v3636_v1 = vmax.f32 %v8923_v21, 0.0  ;;  %v6845_v15 = vld [vmem:[%s9714_s6 + $0xe0] ss:$8 sps:$4 sm:$0xff]   ;;  %4523 = vmatprep.subr.bf16.mxu1 %v6862_v6  ;;  %v3685_v7 = vrot.slane %v3680_v26, %v8849_v20  ;;  %v3689_v14 = vrot.slane %v3680_v26, %v8846_v30 }
 0x274   : > { %v8929_v51 = vadd.f32 %v6585_v47, %v8854_v37  ;;  %v3637_v33 = vmax.f32 %v8920_v42, 0.0  ;;  %v6847_v37 = vld [vmem:[%s9714_s6 + $0xe4] ss:$8 sps:$4 sm:$0xff]  }
 0x275   : > { %v3638_v32 = vmax.f32 %v8926_v24, 0.0  ;;  %4169 = vmatprep.subr.bf16.mxu0 %v6847_v37 }
 0x276   : > { %v3639_v9 = vmax.f32 %v8929_v51, 0.0  ;;  %4170 = vmatpush1.bf16.msra.mxu0 %v6845_v15  ;;  %4524 = vmatpush1.bf16.msra.mxu1 %v6860_v29 }
 0x277   : > { %v3646_v35 = vpack.c.bf16 %v3638_v32, %v3636_v1  ;;  %4171 = vmatprep.subr.bf16.mxu0 %v6850_v59  ;;  %4525 = vmatprep.subr.bf16.mxu1 %v6865_v34 }
 0x278   : > { %v3647_v61 = vpack.c.bf16 %v3639_v9, %v3637_v33 }
 0x27a   : > { %3914 = vmatprep.mubr.bf16.mxu1 %v3647_v61  ;;  %4172 = vmatpush1.bf16.msra.mxu0 %v6848_v57 }
 0x27b   : > { %3915 = vmatmul.mubr.bf16.gmra.mrb[68].mxu1 %v3646_v35 }
 0x27c   : > { %4526 = vmatpush1.bf16.msra.mxu1 %v6863_v19 }
 0x27d   : > { %4527 = vmatprep.subr.bf16.mxu1 %v6868_v44 }
 0x280   : > { %4528 = vmatpush1.bf16.msra.mxu1 %v6866_v10 }
 0x281   : > { %4529 = vmatprep.subr.bf16.mxu1 %v6871_v62 }
 0x284   : > { %4530 = vmatpush1.bf16.msra.mxu1 %v6869_v49 }
 0x285   : > { %4531 = vmatprep.subr.bf16.mxu1 %v6874_v11 }
 0x288   : > { %4532 = vmatpush1.bf16.msra.mxu1 %v6872_v28 }
 0x289   : > { %4533 = vmatprep.subr.bf16.mxu1 %v6877_v36 }
 0x28c   : > { %4534 = vmatpush1.bf16.msra.mxu1 %v6875_v3 }
 0x28d   : > { %4535 = vmatprep.subr.bf16.mxu1 %v6880_v55 }
 0x290   : > { %4536 = vmatpush1.bf16.msra.mxu1 %v6878_v22 }
 0x291   : > { %4537 = vmatprep.subr.bf16.mxu1 %v6883_v13 }
 0x294   : > { %4538 = vmatpush1.bf16.msra.mxu1 %v6881_v4 }
 0x295   : > { %4539 = vmatprep.subr.bf16.mxu1 %v6886_v5 }
 0x298   : > { %4540 = vmatpush1.bf16.msra.mxu1 %v6884_v53 }
 0x299   : > { %4541 = vmatprep.subr.bf16.mxu1 %v6889_v60 }
 0x29c   : > { %4542 = vmatpush1.bf16.msra.mxu1 %v6887_v16 }
 0x336   : > { %v3886_v0 = vpop.f32.mrb[56].mxu1 }
 0x337   : > { %v3887_v8 = vadd.f32 %v3886_v0, %v3685_v7  ;;  %v3888_v31 = vpop.f32.mrb[57].mxu1 }
 0x338   : > { %v3889_v39 = vadd.f32 %v3888_v31, %v3689_v14  ;;  %v3890_v56 = vpop.f32.mrb[58].mxu1 }
 0x339   : > { %v3891_v12 = vadd.f32 %v3890_v56, %v3685_v7  ;;  %v3892_v47 = vpop.f32.mrb[59].mxu1  ;;  %v3925_v33 = vmax.f32 %v3887_v8, 0.0 }
 0x33a   : > { %v3893_v32 = vadd.f32 %v3892_v47, %v3689_v14  ;;  %v3926_v1 = vmax.f32 %v3889_v39, 0.0 }
 0x33b   : > { %v3927_v9 = vmax.f32 %v3891_v12, 0.0 }
 0x33c   : > { %v3928_v61 = vmax.f32 %v3893_v32, 0.0 }
 0x33d   : > { %v3941_v35 = vpack.c.bf16 %v3927_v9, %v3925_v33 }
 0x33e   : > { %v3942_v15 = vpack.c.bf16 %v3928_v61, %v3926_v1  ;;  %v3896_v37 = vpop.f32.mrb[60].mxu1 }
 0x33f   : > { %v3897_v59 = vadd.f32 %v3896_v37, %v3685_v7  ;;  %v3898_v57 = vpop.f32.mrb[61].mxu1  ;;  %v6898_v37 = vld [vmem:[%s9712_s4 + $0x1f4] ss:$8 sps:$4 sm:$0xff]  }
 0x340   : > { %v3899_v46 = vadd.f32 %v3898_v57, %v3689_v14  ;;  %v3900_v63 = vpop.f32.mrb[62].mxu1  ;;  %4173 = vmatprep.mubr.bf16.mxu0 %v3942_v15  ;;  %v6892_v15 = vld [vmem:[%s9712_s4 + $0x1d4] ss:$8 sps:$4 sm:$0xff]   ;;  %v6899_v57 = vld [vmem:[%s9714_s6 + $0x100] ss:$8 sps:$4 sm:$0xff]  }
 0x341   : > { %v3901_v17 = vadd.f32 %v3900_v63, %v3685_v7  ;;  %v3902_v48 = vpop.f32.mrb[63].mxu1  ;;  %4174 = vmatmul.mubr.bf16.vlgmr.msra.gmra.mrb[24].mxu0 %v3941_v35  ;;  %v3929_v25 = vmax.f32 %v3897_v59, 0.0  ;;  %v6890_v35 = vld [vmem:[%s9712_s4 + $0x1d0] ss:$8 sps:$4 sm:$0xff]   ;;  %4543 = vmatprep.subr.bf16.mxu1 %v6892_v15  ;;  %v6904_v63 = vld [vmem:[%s9714_s6 + $0x114] ss:$8 sps:$4 sm:$0xff]  }
 0x342   : > { %v3903_v23 = vadd.f32 %v3902_v48, %v3689_v14  ;;  %v3930_v29 = vmax.f32 %v3899_v46, 0.0  ;;  %4544 = vmatpush1.bf16.msra.mxu1 %v6890_v35  ;;  %v6896_v59 = vld [vmem:[%s9712_s4 + $0x1f0] ss:$8 sps:$4 sm:$0xff]   ;;  %v6901_v46 = vld [vmem:[%s9714_s6 + $0x104] ss:$8 sps:$4 sm:$0xff]  }
 0x343   : > { %v3931_v6 = vmax.f32 %v3901_v17, 0.0  ;;  %4807 = vmatprep.subr.bf16.mxu0 %v6901_v46  ;;  %v6902_v17 = vld [vmem:[%s9714_s6 + $0x110] ss:$8 sps:$4 sm:$0xff]   ;;  %v6907_v48 = vld [vmem:[%s9714_s6 + $0x124] ss:$8 sps:$4 sm:$0xff]  }
 0x344   : > { %v3932_v34 = vmax.f32 %v3903_v23, 0.0  ;;  %4808 = vmatpush1.bf16.msra.mxu0 %v6899_v57  ;;  %v6905_v23 = vld [vmem:[%s9714_s6 + $0x120] ss:$8 sps:$4 sm:$0xff]  }
 0x345   : > { %v3943_v19 = vpack.c.bf16 %v3931_v6, %v3929_v25  ;;  %4809 = vmatprep.subr.bf16.mxu0 %v6904_v63  ;;  %v6910_v25 = vld [vmem:[%s9714_s6 + $0x134] ss:$8 sps:$4 sm:$0xff]   ;;  %v6908_v6 = vld [vmem:[%s9714_s6 + $0x130] ss:$8 sps:$4 sm:$0xff]  }
 0x346   : > { %v3944_v44 = vpack.c.bf16 %v3932_v34, %v3930_v29  ;;  %v3906_v10 = vpop.f32.mrb[64].mxu1  ;;  %v6913_v29 = vld [vmem:[%s9714_s6 + $0x144] ss:$8 sps:$4 sm:$0xff]   ;;  %v6911_v34 = vld [vmem:[%s9714_s6 + $0x140] ss:$8 sps:$4 sm:$0xff]  }
 0x347   : > { %v3907_v62 = vadd.f32 %v3906_v10, %v3685_v7  ;;  %v3908_v49 = vpop.f32.mrb[65].mxu1  ;;  %v6919_v10 = vld [vmem:[%s9714_s6 + $0x164] ss:$8 sps:$4 sm:$0xff]  }
 0x348   : > { %v3909_v11 = vadd.f32 %v3908_v49, %v3689_v14  ;;  %v3910_v28 = vpop.f32.mrb[66].mxu1  ;;  %4183 = vmatprep.mubr.bf16.mxu0 %v3944_v44  ;;  %4810 = vmatpush1.bf16.msra.mxu0 %v6902_v17  ;;  %v6914_v44 = vld [vmem:[%s9714_s6 + $0x150] ss:$8 sps:$4 sm:$0xff]   ;;  %v6922_v49 = vld [vmem:[%s9714_s6 + $0x174] ss:$8 sps:$4 sm:$0xff]  }
 0x349   : > { %v3911_v36 = vadd.f32 %v3910_v28, %v3685_v7  ;;  %v3912_v3 = vpop.f32.mrb[67].mxu1  ;;  %4184 = vmatmul.mubr.bf16.gmra.mrb[28].mxu0 %v3943_v19  ;;  %v3933_v22 = vmax.f32 %v3907_v62, 0.0  ;;  %4811 = vmatprep.subr.bf16.mxu0 %v6907_v48  ;;  %v6916_v19 = vld [vmem:[%s9714_s6 + $0x154] ss:$8 sps:$4 sm:$0xff]   ;;  %v6917_v62 = vld [vmem:[%s9714_s6 + $0x160] ss:$8 sps:$4 sm:$0xff]  }
 0x34a   : > { %v3913_v55 = vadd.f32 %v3912_v3, %v3689_v14  ;;  %v3934_v4 = vmax.f32 %v3909_v11, 0.0  ;;  %v6920_v11 = vld [vmem:[%s9714_s6 + $0x170] ss:$8 sps:$4 sm:$0xff]   ;;  %v6925_v28 = vld [vmem:[%s9714_s6 + $0x184] ss:$8 sps:$4 sm:$0xff]  }
 0x34b   : > { %v3935_v13 = vmax.f32 %v3911_v36, 0.0  ;;  %v6923_v36 = vld [vmem:[%s9714_s6 + $0x180] ss:$8 sps:$4 sm:$0xff]   ;;  %v6928_v3 = vld [vmem:[%s9714_s6 + $0x194] ss:$8 sps:$4 sm:$0xff]  }
 0x34c   : > { %v3936_v5 = vmax.f32 %v3913_v55, 0.0  ;;  %4812 = vmatpush1.bf16.msra.mxu0 %v6905_v23  ;;  %v6926_v55 = vld [vmem:[%s9714_s6 + $0x190] ss:$8 sps:$4 sm:$0xff]  }
 0x34d   : > { %v3945_v53 = vpack.c.bf16 %v3935_v13, %v3933_v22  ;;  %4813 = vmatprep.subr.bf16.mxu0 %v6910_v25  ;;  %v6931_v22 = vld [vmem:[%s9714_s6 + $0x1a4] ss:$8 sps:$4 sm:$0xff]   ;;  %v6929_v13 = vld [vmem:[%s9714_s6 + $0x1a0] ss:$8 sps:$4 sm:$0xff]  }
 0x34e   : > { %v3946_v60 = vpack.c.bf16 %v3936_v5, %v3934_v4  ;;  %v3916_v16 = vpop.f32.mrb[68].mxu1  ;;  %v6934_v4 = vld [vmem:[%s9714_s6 + $0x1b4] ss:$8 sps:$4 sm:$0xff]   ;;  %v6932_v5 = vld [vmem:[%s9714_s6 + $0x1b0] ss:$8 sps:$4 sm:$0xff]  }
 0x34f   : > { %v3917_v26 = vadd.f32 %v3916_v16, %v3685_v7  ;;  %v3918_v0 = vpop.f32.mrb[69].mxu1  ;;  %v6940_v16 = vld [vmem:[%s9714_s6 + $0x1d4] ss:$8 sps:$4 sm:$0xff]  }
 0x350   : > { %v3919_v8 = vadd.f32 %v3918_v0, %v3689_v14  ;;  %v3920_v31 = vpop.f32.mrb[70].mxu1  ;;  %4193 = vmatprep.mubr.bf16.mxu0 %v3946_v60  ;;  %4814 = vmatpush1.bf16.msra.mxu0 %v6908_v6  ;;  %v6935_v60 = vld [vmem:[%s9714_s6 + $0x1c0] ss:$8 sps:$4 sm:$0xff]  }
 0x351   : > { %v3921_v39 = vadd.f32 %v3920_v31, %v3685_v7  ;;  %v3922_v56 = vpop.f32.mrb[71].mxu1  ;;  %4194 = vmatmul.mubr.bf16.gmra.mrb[32].mxu0 %v3945_v53  ;;  %v3937_v47 = vmax.f32 %v3917_v26, 0.0  ;;  %v6895_v7 = vld [vmem:[%s9712_s4 + $0x1e4] ss:$8 sps:$4 sm:$0xff]   ;;  %4815 = vmatprep.subr.bf16.mxu0 %v6913_v29  ;;  %v6938_v26 = vld [vmem:[%s9714_s6 + $0x1d0] ss:$8 sps:$4 sm:$0xff]  }
 0x352   : > { %v3923_v12 = vadd.f32 %v3922_v56, %v3689_v14  ;;  %v3938_v33 = vmax.f32 %v3919_v8, 0.0  ;;  %v6893_v14 = vld [vmem:[%s9712_s4 + $0x1e0] ss:$8 sps:$4 sm:$0xff]   ;;  %4545 = vmatprep.subr.bf16.mxu1 %v6895_v7  ;;  %v6937_v53 = vld [vmem:[%s9714_s6 + $0x1c4] ss:$8 sps:$4 sm:$0xff]  }
 0x353   : > { %v3939_v32 = vmax.f32 %v3921_v39, 0.0  ;;  %4546 = vmatpush1.bf16.msra.mxu1 %v6893_v14  ;;  %v4230_v0 = vld [vmem:[%s9715_s7] sm:$0x3]  ;;  %v6178_v31 = vld [vmem:[%s8843_s27 + $0x2] sm:$0x3] }
 0x354   : > { %v3940_v9 = vmax.f32 %v3923_v12, 0.0  ;;  %4547 = vmatprep.subr.bf16.mxu1 %v6898_v37  ;;  %4816 = vmatpush1.bf16.msra.mxu0 %v6911_v34  ;;  %v9136_v8 = vrot.slane %v4230_v0, %v8849_v20  ;;  %v9140_v56 = vrot.slane %v4230_v0, %v8846_v30 }
 0x355   : > { %v3947_v1 = vpack.c.bf16 %v3939_v32, %v3937_v47  ;;  %4817 = vmatprep.subr.bf16.mxu0 %v6916_v19 }
 0x356   : > { %v3948_v61 = vpack.c.bf16 %v3940_v9, %v3938_v33  ;;  %v9145_v33 = vrot.slane %v6178_v31, %v8846_v30 }
 0x357   : > { %4548 = vmatpush1.bf16.msra.mxu1 %v6896_v59 }
 0x358   : > { %4203 = vmatprep.mubr.bf16.mxu0 %v3948_v61  ;;  %4818 = vmatpush1.bf16.msra.mxu0 %v6914_v44  ;;  %v9149_v61 = vrot.slane %v6178_v31, %v8849_v20 }
 0x359   : > { %4204 = vmatmul.mubr.bf16.gmra.mrb[36].mxu0 %v3947_v1  ;;  %4819 = vmatprep.subr.bf16.mxu0 %v6919_v10 }
 0x35c   : > { %4820 = vmatpush1.bf16.msra.mxu0 %v6917_v62 }
 0x35d   : > { %4821 = vmatprep.subr.bf16.mxu0 %v6922_v49 }
 0x360   : > { %4822 = vmatpush1.bf16.msra.mxu0 %v6920_v11 }
 0x361   : > { %4823 = vmatprep.subr.bf16.mxu0 %v6925_v28 }
 0x364   : > { %4824 = vmatpush1.bf16.msra.mxu0 %v6923_v36 }
 0x365   : > { %4825 = vmatprep.subr.bf16.mxu0 %v6928_v3 }
 0x368   : > { %4826 = vmatpush1.bf16.msra.mxu0 %v6926_v55 }
 0x369   : > { %4827 = vmatprep.subr.bf16.mxu0 %v6931_v22 }
 0x36c   : > { %4828 = vmatpush1.bf16.msra.mxu0 %v6929_v13 }
 0x36d   : > { %4829 = vmatprep.subr.bf16.mxu0 %v6934_v4 }
 0x370   : > { %4830 = vmatpush1.bf16.msra.mxu0 %v6932_v5 }
 0x371   : > { %4831 = vmatprep.subr.bf16.mxu0 %v6937_v53 }
 0x374   : > { %4832 = vmatpush1.bf16.msra.mxu0 %v6935_v60 }
 0x375   : > { %4833 = vmatprep.subr.bf16.mxu0 %v6940_v16 }
 0x378   : > { %4834 = vmatpush1.bf16.msra.mxu0 %v6938_v26 }
 0x414   : > { %v4175_v39 = vpop.f32.mrb[24].mxu0 }
 0x415   : > { %v4214_v12 = vadd.f32 %v4175_v39, %v8867_v54  ;;  %v4177_v47 = vpop.f32.mrb[25].mxu0 }
 0x416   : > { %v4215_v32 = vadd.f32 %v4177_v47, %v8863_v52  ;;  %v4179_v9 = vpop.f32.mrb[26].mxu0 }
 0x417   : > { %v4242_v1 = vadd.f32 %v9136_v8, %v4214_v12  ;;  %v4216_v35 = vadd.f32 %v4179_v9, %v8870_v38  ;;  %v4181_v15 = vpop.f32.mrb[27].mxu0 }
 0x418   : > { %v4243_v7 = vadd.f32 %v9140_v56, %v4215_v32  ;;  %v4217_v14 = vadd.f32 %v4181_v15, %v8874_v27 }
 0x419   : > { %v4244_v54 = vadd.f32 %v9136_v8, %v4216_v35  ;;  %v9160_v59 = vadd.f32 %v9149_v61, %v4242_v1 }
 0x41a   : > { %v9156_v52 = vadd.f32 %v9145_v33, %v4243_v7  ;;  %v4245_v37 = vadd.f32 %v9140_v56, %v4217_v14 }
 0x41b   : > { %v9163_v57 = vadd.f32 %v9149_v61, %v4244_v54  ;;  %v4287_v29 = vmax.f32 %v9160_v59, 0.0 }
 0x41c   : > { %v9166_v38 = vadd.f32 %v9145_v33, %v4245_v37  ;;  %v4185_v46 = vpop.f32.mrb[28].mxu0  ;;  %v4288_v25 = vmax.f32 %v9156_v52, 0.0 }
 0x41d   : > { %v4289_v63 = vmax.f32 %v9163_v57, 0.0  ;;  %v4218_v27 = vadd.f32 %v4185_v46, %v8891_v2  ;;  %v4187_v17 = vpop.f32.mrb[29].mxu0 }
 0x41e   : > { %v4219_v48 = vadd.f32 %v4187_v17, %v8887_v45  ;;  %v4189_v23 = vpop.f32.mrb[30].mxu0  ;;  %v4290_v6 = vmax.f32 %v9166_v38, 0.0 }
 0x41f   : > { %v4246_v34 = vadd.f32 %v9136_v8, %v4218_v27  ;;  %v4220_v19 = vadd.f32 %v4189_v23, %v8894_v41  ;;  %v4191_v44 = vpop.f32.mrb[31].mxu0  ;;  %v4303_v49 = vpack.c.bf16 %v4289_v63, %v4287_v29 }
 0x420   : > { %v4247_v10 = vadd.f32 %v9140_v56, %v4219_v48  ;;  %v4221_v62 = vadd.f32 %v4191_v44, %v8897_v18  ;;  %v4304_v2 = vpack.c.bf16 %v4290_v6, %v4288_v25 }
 0x421   : > { %v4248_v45 = vadd.f32 %v9136_v8, %v4220_v19  ;;  %v9184_v36 = vadd.f32 %v9149_v61, %v4246_v34 }
 0x422   : > { %v9180_v11 = vadd.f32 %v9145_v33, %v4247_v10  ;;  %v4249_v28 = vadd.f32 %v9140_v56, %v4221_v62  ;;  %4549 = vmatprep.mubr.bf16.mxu1 %v4304_v2 }
 0x423   : > { %v9187_v41 = vadd.f32 %v9149_v61, %v4248_v45  ;;  %4550 = vmatmul.mubr.bf16.vlgmr.msra.gmra.mrb[72].mxu1 %v4303_v49  ;;  %v4291_v31 = vmax.f32 %v9184_v36, 0.0  ;;  %v6946_v45 = vld [vmem:[%s9714_s6 + $0x1f4] ss:$8 sps:$4 sm:$0xff]  }
 0x424   : > { %v9190_v3 = vadd.f32 %v9145_v33, %v4249_v28  ;;  %v4195_v18 = vpop.f32.mrb[32].mxu0  ;;  %v4292_v53 = vmax.f32 %v9180_v11, 0.0  ;;  %v6944_v28 = vld [vmem:[%s9714_s6 + $0x1f0] ss:$8 sps:$4 sm:$0xff]  }
 0x425   : > { %v4222_v55 = vadd.f32 %v4195_v18, %v8907_v43  ;;  %v4197_v22 = vpop.f32.mrb[33].mxu0  ;;  %v4293_v13 = vmax.f32 %v9187_v41, 0.0  ;;  %v6947_v18 = vld [vmem:[%s9712_s4 + $0x200] ss:$8 sps:$4 sm:$0xff]  }
 0x426   : > { %v4223_v4 = vadd.f32 %v4197_v22, %v8904_v50  ;;  %v4199_v5 = vpop.f32.mrb[34].mxu0  ;;  %v4294_v60 = vmax.f32 %v9190_v3, 0.0  ;;  %v6952_v22 = vld [vmem:[%s9712_s4 + $0x214] ss:$8 sps:$4 sm:$0xff]  }
 0x427   : > { %v4250_v16 = vadd.f32 %v9136_v8, %v4222_v55  ;;  %v4224_v26 = vadd.f32 %v4199_v5, %v8910_v40  ;;  %v4201_v0 = vpop.f32.mrb[35].mxu0  ;;  %v4305_v50 = vpack.c.bf16 %v4293_v13, %v4291_v31  ;;  %v6949_v55 = vld [vmem:[%s9712_s4 + $0x204] ss:$8 sps:$4 sm:$0xff]   ;;  %v6950_v13 = vld [vmem:[%s9712_s4 + $0x210] ss:$8 sps:$4 sm:$0xff]  }
 0x428   : > { %v4251_v39 = vadd.f32 %v9140_v56, %v4223_v4  ;;  %v4225_v43 = vadd.f32 %v4201_v0, %v8913_v58  ;;  %v4306_v12 = vpack.c.bf16 %v4294_v60, %v4292_v53  ;;  %5184 = vmatprep.subr.bf16.mxu1 %v6949_v55  ;;  %v6955_v4 = vld [vmem:[%s9712_s4 + $0x224] ss:$8 sps:$4 sm:$0xff]   ;;  %v6953_v5 = vld [vmem:[%s9712_s4 + $0x220] ss:$8 sps:$4 sm:$0xff]   ;;  %v6958_v53 = vld [vmem:[%s9712_s4 + $0x234] ss:$8 sps:$4 sm:$0xff]  }
 0x429   : > { %v4252_v47 = vadd.f32 %v9136_v8, %v4224_v26  ;;  %v9208_v1 = vadd.f32 %v9149_v61, %v4250_v16  ;;  %5185 = vmatpush1.bf16.msra.mxu1 %v6947_v18  ;;  %v6956_v60 = vld [vmem:[%s9712_s4 + $0x230] ss:$8 sps:$4 sm:$0xff]   ;;  %v6961_v16 = vld [vmem:[%s9712_s4 + $0x244] ss:$8 sps:$4 sm:$0xff]   ;;  %v6959_v26 = vld [vmem:[%s9712_s4 + $0x240] ss:$8 sps:$4 sm:$0xff]  }
 0x42a   : > { %v9204_v32 = vadd.f32 %v9145_v33, %v4251_v39  ;;  %v4253_v9 = vadd.f32 %v9140_v56, %v4225_v43  ;;  %4559 = vmatprep.mubr.bf16.mxu1 %v4306_v12  ;;  %5186 = vmatprep.subr.bf16.mxu1 %v6952_v22  ;;  %v6964_v0 = vld [vmem:[%s9712_s4 + $0x254] ss:$8 sps:$4 sm:$0xff]   ;;  %v6962_v31 = vld [vmem:[%s9712_s4 + $0x250] ss:$8 sps:$4 sm:$0xff]   ;;  %v6967_v39 = vld [vmem:[%s9712_s4 + $0x264] ss:$8 sps:$4 sm:$0xff]  }
 0x42b   : > { %v9211_v40 = vadd.f32 %v9149_v61, %v4252_v47  ;;  %4560 = vmatmul.mubr.bf16.gmra.mrb[76].mxu1 %v4305_v50  ;;  %v4295_v23 = vmax.f32 %v9208_v1, 0.0  ;;  %v6965_v43 = vld [vmem:[%s9712_s4 + $0x260] ss:$8 sps:$4 sm:$0xff]   ;;  %v6970_v12 = vld [vmem:[%s9712_s4 + $0x274] ss:$8 sps:$4 sm:$0xff]  }
 0x42c   : > { %v9214_v35 = vadd.f32 %v9145_v33, %v4253_v9  ;;  %v4205_v58 = vpop.f32.mrb[36].mxu0  ;;  %v4296_v46 = vmax.f32 %v9204_v32, 0.0  ;;  %v6968_v47 = vld [vmem:[%s9712_s4 + $0x270] ss:$8 sps:$4 sm:$0xff]   ;;  %v6973_v50 = vld [vmem:[%s9712_s4 + $0x284] ss:$8 sps:$4 sm:$0xff]  }
 0x42d   : > { %v4226_v15 = vadd.f32 %v4205_v58, %v8923_v21  ;;  %v4207_v7 = vpop.f32.mrb[37].mxu0  ;;  %v4297_v14 = vmax.f32 %v9211_v40, 0.0  ;;  %5187 = vmatpush1.bf16.msra.mxu1 %v6950_v13  ;;  %v6971_v9 = vld [vmem:[%s9712_s4 + $0x280] ss:$8 sps:$4 sm:$0xff]   ;;  %v6976_v58 = vld [vmem:[%s9712_s4 + $0x294] ss:$8 sps:$4 sm:$0xff]  }
 0x42e   : > { %v4227_v54 = vadd.f32 %v4207_v7, %v8920_v42  ;;  %v4209_v37 = vpop.f32.mrb[38].mxu0  ;;  %v4298_v63 = vmax.f32 %v9214_v35, 0.0  ;;  %5188 = vmatprep.subr.bf16.mxu1 %v6955_v4  ;;  %v6979_v7 = vld [vmem:[%s9712_s4 + $0x2a4] ss:$8 sps:$4 sm:$0xff]  }
 0x42f   : > { %v4254_v27 = vadd.f32 %v9136_v8, %v4226_v15  ;;  %v4228_v17 = vadd.f32 %v4209_v37, %v8926_v24  ;;  %v4211_v48 = vpop.f32.mrb[39].mxu0  ;;  %v4307_v42 = vpack.c.bf16 %v4297_v14, %v4295_v23  ;;  %v6974_v15 = vld [vmem:[%s9712_s4 + $0x290] ss:$8 sps:$4 sm:$0xff]   ;;  %v6977_v14 = vld [vmem:[%s9712_s4 + $0x2a0] ss:$8 sps:$4 sm:$0xff]  }
 0x430   : > { %v4255_v25 = vadd.f32 %v9140_v56, %v4227_v54  ;;  %v4229_v21 = vadd.f32 %v4211_v48, %v8929_v51  ;;  %v4308_v6 = vpack.c.bf16 %v4298_v63, %v4296_v46  ;;  %v6982_v54 = vld [vmem:[%s9712_s4 + $0x2b4] ss:$8 sps:$4 sm:$0xff]   ;;  %v6980_v37 = vld [vmem:[%s9712_s4 + $0x2b0] ss:$8 sps:$4 sm:$0xff]   ;;  %v6985_v46 = vld [vmem:[%s9712_s4 + $0x2c4] ss:$8 sps:$4 sm:$0xff]  }
 0x431   : > { %v4256_v29 = vadd.f32 %v9136_v8, %v4228_v17  ;;  %v9232_v44 = vadd.f32 %v9149_v61, %v4254_v27  ;;  %5189 = vmatpush1.bf16.msra.mxu1 %v6953_v5  ;;  %v6983_v63 = vld [vmem:[%s9712_s4 + $0x2c0] ss:$8 sps:$4 sm:$0xff]  }
 0x432   : > { %v9228_v34 = vadd.f32 %v9145_v33, %v4255_v25  ;;  %v4257_v19 = vadd.f32 %v9140_v56, %v4229_v21  ;;  %4569 = vmatprep.mubr.bf16.mxu1 %v4308_v6  ;;  %5190 = vmatprep.subr.bf16.mxu1 %v6958_v53  ;;  %v6211_v27 = vld [vmem:[%s9713_s5 + $0x2] sm:$0x3] }
 0x433   : > { %v9235_v24 = vadd.f32 %v9149_v61, %v4256_v29  ;;  %4570 = vmatmul.mubr.bf16.gmra.mrb[80].mxu1 %v4307_v42  ;;  %v4299_v2 = vmax.f32 %v9232_v44, 0.0  ;;  %v6941_v61 = vld [vmem:[%s9714_s6 + $0x1e0] ss:$8 sps:$4 sm:$0xff]   ;;  %v4350_v17 = vrot.slane %v6211_v27, %v8849_v20  ;;  %v4354_v48 = vrot.slane %v6211_v27, %v8846_v30 }
 0x434   : > { %v9238_v10 = vadd.f32 %v9145_v33, %v4257_v19  ;;  %v4300_v8 = vmax.f32 %v9228_v34, 0.0  ;;  %v6943_v33 = vld [vmem:[%s9714_s6 + $0x1e4] ss:$8 sps:$4 sm:$0xff]  }
 0x435   : > { %v4301_v51 = vmax.f32 %v9235_v24, 0.0  ;;  %4835 = vmatprep.subr.bf16.mxu0 %v6943_v33  ;;  %5191 = vmatpush1.bf16.msra.mxu1 %v6956_v60 }
 0x436   : > { %v4302_v62 = vmax.f32 %v9238_v10, 0.0  ;;  %4836 = vmatpush1.bf16.msra.mxu0 %v6941_v61  ;;  %5192 = vmatprep.subr.bf16.mxu1 %v6961_v16 }
 0x437   : > { %v4309_v49 = vpack.c.bf16 %v4301_v51, %v4299_v2  ;;  %4837 = vmatprep.subr.bf16.mxu0 %v6946_v45 }
 0x438   : > { %v4310_v56 = vpack.c.bf16 %v4302_v62, %v4300_v8 }
 0x439   : > { %5193 = vmatpush1.bf16.msra.mxu1 %v6959_v26 }
 0x43a   : > { %4579 = vmatprep.mubr.bf16.mxu1 %v4310_v56  ;;  %4838 = vmatpush1.bf16.msra.mxu0 %v6944_v28 }
 0x43b   : > { %4580 = vmatmul.mubr.bf16.gmra.mrb[84].mxu1 %v4309_v49  ;;  %5194 = vmatprep.subr.bf16.mxu1 %v6964_v0 }
 0x43d   : > { %5195 = vmatpush1.bf16.msra.mxu1 %v6962_v31 }
 0x43e   : > { %5196 = vmatprep.subr.bf16.mxu1 %v6967_v39 }
 0x441   : > { %5197 = vmatpush1.bf16.msra.mxu1 %v6965_v43 }
 0x442   : > { %5198 = vmatprep.subr.bf16.mxu1 %v6970_v12 }
 0x445   : > { %5199 = vmatpush1.bf16.msra.mxu1 %v6968_v47 }
 0x446   : > { %5200 = vmatprep.subr.bf16.mxu1 %v6973_v50 }
 0x449   : > { %5201 = vmatpush1.bf16.msra.mxu1 %v6971_v9 }
 0x44a   : > { %5202 = vmatprep.subr.bf16.mxu1 %v6976_v58 }
 0x44d   : > { %5203 = vmatpush1.bf16.msra.mxu1 %v6974_v15 }
 0x44e   : > { %5204 = vmatprep.subr.bf16.mxu1 %v6979_v7 }
 0x451   : > { %5205 = vmatpush1.bf16.msra.mxu1 %v6977_v14 }
 0x452   : > { %5206 = vmatprep.subr.bf16.mxu1 %v6982_v54 }
 0x455   : > { %5207 = vmatpush1.bf16.msra.mxu1 %v6980_v37 }
 0x456   : > { %5208 = vmatprep.subr.bf16.mxu1 %v6985_v46 }
 0x459   : > { %5209 = vmatpush1.bf16.msra.mxu1 %v6983_v63 }
 0x4f6   : > { %v4551_v23 = vpop.f32.mrb[72].mxu1 }
 0x4f7   : > { %v4552_v25 = vadd.f32 %v4551_v23, %v4350_v17  ;;  %v4553_v21 = vpop.f32.mrb[73].mxu1 }
 0x4f8   : > { %v4554_v6 = vadd.f32 %v4553_v21, %v4354_v48  ;;  %v4555_v29 = vpop.f32.mrb[74].mxu1 }
 0x4f9   : > { %v4556_v42 = vadd.f32 %v4555_v29, %v4350_v17  ;;  %v4557_v19 = vpop.f32.mrb[75].mxu1  ;;  %v4590_v8 = vmax.f32 %v4552_v25, 0.0 }
 0x4fa   : > { %v4558_v51 = vadd.f32 %v4557_v19, %v4354_v48  ;;  %v4591_v2 = vmax.f32 %v4554_v6, 0.0 }
 0x4fb   : > { %v4592_v62 = vmax.f32 %v4556_v42, 0.0 }
 0x4fc   : > { %v4593_v56 = vmax.f32 %v4558_v51, 0.0 }
 0x4fd   : > { %v4606_v49 = vpack.c.bf16 %v4592_v62, %v4590_v8 }
 0x4fe   : > { %v4607_v61 = vpack.c.bf16 %v4593_v56, %v4591_v2  ;;  %v4561_v33 = vpop.f32.mrb[76].mxu1 }
 0x4ff   : > { %v4562_v45 = vadd.f32 %v4561_v33, %v4350_v17  ;;  %v4563_v28 = vpop.f32.mrb[77].mxu1  ;;  %v6994_v33 = vld [vmem:[%s9712_s4 + $0x2f4] ss:$8 sps:$4 sm:$0xff]  }
 0x500   : > { %v4564_v18 = vadd.f32 %v4563_v28, %v4354_v48  ;;  %v4565_v55 = vpop.f32.mrb[78].mxu1  ;;  %4839 = vmatprep.mubr.bf16.mxu0 %v4607_v61  ;;  %v6988_v61 = vld [vmem:[%s9712_s4 + $0x2d4] ss:$8 sps:$4 sm:$0xff]   ;;  %v6995_v28 = vld [vmem:[%s9714_s6 + $0x200] ss:$8 sps:$4 sm:$0xff]  }
 0x501   : > { %v4566_v22 = vadd.f32 %v4565_v55, %v4350_v17  ;;  %v4567_v13 = vpop.f32.mrb[79].mxu1  ;;  %4840 = vmatmul.mubr.bf16.vlgmr.msra.gmra.mrb[40].mxu0 %v4606_v49  ;;  %v4594_v5 = vmax.f32 %v4562_v45, 0.0  ;;  %v6986_v49 = vld [vmem:[%s9712_s4 + $0x2d0] ss:$8 sps:$4 sm:$0xff]   ;;  %5210 = vmatprep.subr.bf16.mxu1 %v6988_v61  ;;  %v7000_v55 = vld [vmem:[%s9714_s6 + $0x214] ss:$8 sps:$4 sm:$0xff]  }
 0x502   : > { %v4568_v4 = vadd.f32 %v4567_v13, %v4354_v48  ;;  %v4595_v60 = vmax.f32 %v4564_v18, 0.0  ;;  %5211 = vmatpush1.bf16.msra.mxu1 %v6986_v49  ;;  %v6992_v45 = vld [vmem:[%s9712_s4 + $0x2f0] ss:$8 sps:$4 sm:$0xff]   ;;  %v6997_v18 = vld [vmem:[%s9714_s6 + $0x204] ss:$8 sps:$4 sm:$0xff]  }
 0x503   : > { %v4596_v53 = vmax.f32 %v4566_v22, 0.0  ;;  %5474 = vmatprep.subr.bf16.mxu0 %v6997_v18  ;;  %v6998_v22 = vld [vmem:[%s9714_s6 + $0x210] ss:$8 sps:$4 sm:$0xff]   ;;  %v7003_v13 = vld [vmem:[%s9714_s6 + $0x224] ss:$8 sps:$4 sm:$0xff]  }
 0x504   : > { %v4597_v16 = vmax.f32 %v4568_v4, 0.0  ;;  %5475 = vmatpush1.bf16.msra.mxu0 %v6995_v28  ;;  %v7001_v4 = vld [vmem:[%s9714_s6 + $0x220] ss:$8 sps:$4 sm:$0xff]  }
 0x505   : > { %v4608_v26 = vpack.c.bf16 %v4596_v53, %v4594_v5  ;;  %5476 = vmatprep.subr.bf16.mxu0 %v7000_v55  ;;  %v7006_v5 = vld [vmem:[%s9714_s6 + $0x234] ss:$8 sps:$4 sm:$0xff]   ;;  %v7004_v53 = vld [vmem:[%s9714_s6 + $0x230] ss:$8 sps:$4 sm:$0xff]  }
 0x506   : > { %v4609_v0 = vpack.c.bf16 %v4597_v16, %v4595_v60  ;;  %v4571_v31 = vpop.f32.mrb[80].mxu1  ;;  %v7009_v60 = vld [vmem:[%s9714_s6 + $0x244] ss:$8 sps:$4 sm:$0xff]   ;;  %v7007_v16 = vld [vmem:[%s9714_s6 + $0x240] ss:$8 sps:$4 sm:$0xff]  }
 0x507   : > { %v4572_v39 = vadd.f32 %v4571_v31, %v4350_v17  ;;  %v4573_v43 = vpop.f32.mrb[81].mxu1  ;;  %v7015_v31 = vld [vmem:[%s9714_s6 + $0x264] ss:$8 sps:$4 sm:$0xff]  }
 0x508   : > { %v4574_v12 = vadd.f32 %v4573_v43, %v4354_v48  ;;  %v4575_v47 = vpop.f32.mrb[82].mxu1  ;;  %4849 = vmatprep.mubr.bf16.mxu0 %v4609_v0  ;;  %5477 = vmatpush1.bf16.msra.mxu0 %v6998_v22  ;;  %v7010_v0 = vld [vmem:[%s9714_s6 + $0x250] ss:$8 sps:$4 sm:$0xff]   ;;  %v7018_v43 = vld [vmem:[%s9714_s6 + $0x274] ss:$8 sps:$4 sm:$0xff]  }
 0x509   : > { %v4576_v50 = vadd.f32 %v4575_v47, %v4350_v17  ;;  %v4577_v9 = vpop.f32.mrb[83].mxu1  ;;  %4850 = vmatmul.mubr.bf16.gmra.mrb[44].mxu0 %v4608_v26  ;;  %v4598_v15 = vmax.f32 %v4572_v39, 0.0  ;;  %5478 = vmatprep.subr.bf16.mxu0 %v7003_v13  ;;  %v7012_v26 = vld [vmem:[%s9714_s6 + $0x254] ss:$8 sps:$4 sm:$0xff]   ;;  %v7013_v39 = vld [vmem:[%s9714_s6 + $0x260] ss:$8 sps:$4 sm:$0xff]  }
 0x50a   : > { %v4578_v58 = vadd.f32 %v4577_v9, %v4354_v48  ;;  %v4599_v14 = vmax.f32 %v4574_v12, 0.0  ;;  %v7016_v12 = vld [vmem:[%s9714_s6 + $0x270] ss:$8 sps:$4 sm:$0xff]   ;;  %v7021_v47 = vld [vmem:[%s9714_s6 + $0x284] ss:$8 sps:$4 sm:$0xff]  }
 0x50b   : > { %v4600_v7 = vmax.f32 %v4576_v50, 0.0  ;;  %v7019_v50 = vld [vmem:[%s9714_s6 + $0x280] ss:$8 sps:$4 sm:$0xff]   ;;  %v7024_v9 = vld [vmem:[%s9714_s6 + $0x294] ss:$8 sps:$4 sm:$0xff]  }
 0x50c   : > { %v4601_v54 = vmax.f32 %v4578_v58, 0.0  ;;  %5479 = vmatpush1.bf16.msra.mxu0 %v7001_v4  ;;  %v7022_v58 = vld [vmem:[%s9714_s6 + $0x290] ss:$8 sps:$4 sm:$0xff]  }
 0x50d   : > { %v4610_v37 = vpack.c.bf16 %v4600_v7, %v4598_v15  ;;  %5480 = vmatprep.subr.bf16.mxu0 %v7006_v5  ;;  %v7027_v15 = vld [vmem:[%s9714_s6 + $0x2a4] ss:$8 sps:$4 sm:$0xff]   ;;  %v7025_v7 = vld [vmem:[%s9714_s6 + $0x2a0] ss:$8 sps:$4 sm:$0xff]  }
 0x50e   : > { %v4611_v46 = vpack.c.bf16 %v4601_v54, %v4599_v14  ;;  %v4581_v63 = vpop.f32.mrb[84].mxu1  ;;  %v7030_v14 = vld [vmem:[%s9714_s6 + $0x2b4] ss:$8 sps:$4 sm:$0xff]   ;;  %v7028_v54 = vld [vmem:[%s9714_s6 + $0x2b0] ss:$8 sps:$4 sm:$0xff]  }
 0x50f   : > { %v4582_v27 = vadd.f32 %v4581_v63, %v4350_v17  ;;  %v4583_v23 = vpop.f32.mrb[85].mxu1  ;;  %v7036_v63 = vld [vmem:[%s9714_s6 + $0x2d4] ss:$8 sps:$4 sm:$0xff]  }
 0x510   : > { %v4584_v25 = vadd.f32 %v4583_v23, %v4354_v48  ;;  %v4585_v21 = vpop.f32.mrb[86].mxu1  ;;  %4859 = vmatprep.mubr.bf16.mxu0 %v4611_v46  ;;  %5481 = vmatpush1.bf16.msra.mxu0 %v7004_v53  ;;  %v7031_v46 = vld [vmem:[%s9714_s6 + $0x2c0] ss:$8 sps:$4 sm:$0xff]  }
 0x511   : > { %v4586_v6 = vadd.f32 %v4585_v21, %v4350_v17  ;;  %v4587_v29 = vpop.f32.mrb[87].mxu1  ;;  %4860 = vmatmul.mubr.bf16.gmra.mrb[48].mxu0 %v4610_v37  ;;  %v4602_v19 = vmax.f32 %v4582_v27, 0.0  ;;  %v6991_v17 = vld [vmem:[%s9712_s4 + $0x2e4] ss:$8 sps:$4 sm:$0xff]   ;;  %5482 = vmatprep.subr.bf16.mxu0 %v7009_v60  ;;  %v7034_v27 = vld [vmem:[%s9714_s6 + $0x2d0] ss:$8 sps:$4 sm:$0xff]  }
 0x512   : > { %v4588_v42 = vadd.f32 %v4587_v29, %v4354_v48  ;;  %v4603_v8 = vmax.f32 %v4584_v25, 0.0  ;;  %v6989_v48 = vld [vmem:[%s9712_s4 + $0x2e0] ss:$8 sps:$4 sm:$0xff]   ;;  %5212 = vmatprep.subr.bf16.mxu1 %v6991_v17  ;;  %v7033_v37 = vld [vmem:[%s9714_s6 + $0x2c4] ss:$8 sps:$4 sm:$0xff]  }
 0x513   : > { %v4604_v51 = vmax.f32 %v4586_v6, 0.0  ;;  %5213 = vmatpush1.bf16.msra.mxu1 %v6989_v48  ;;  %v6308_v23 = vld [vmem:[%s9715_s7 + $0x2] sm:$0x3]  ;;  %v6309_v21 = vld [vmem:[%s8843_s27 + $0x4] sm:$0x3] }
 0x514   : > { %v4605_v62 = vmax.f32 %v4588_v42, 0.0  ;;  %5214 = vmatprep.subr.bf16.mxu1 %v6994_v33  ;;  %5483 = vmatpush1.bf16.msra.mxu0 %v7007_v16  ;;  %v9445_v25 = vrot.slane %v6308_v23, %v8849_v20  ;;  %v9449_v29 = vrot.slane %v6308_v23, %v8846_v30 }
 0x515   : > { %v4612_v2 = vpack.c.bf16 %v4604_v51, %v4602_v19  ;;  %5484 = vmatprep.subr.bf16.mxu0 %v7012_v26 }
 0x516   : > { %v4613_v56 = vpack.c.bf16 %v4605_v62, %v4603_v8  ;;  %v9454_v8 = vrot.slane %v6309_v21, %v8846_v30 }
 0x517   : > { %5215 = vmatpush1.bf16.msra.mxu1 %v6992_v45 }
 0x518   : > { %4869 = vmatprep.mubr.bf16.mxu0 %v4613_v56  ;;  %5485 = vmatpush1.bf16.msra.mxu0 %v7010_v0  ;;  %v9458_v56 = vrot.slane %v6309_v21, %v8849_v20 }
 0x519   : > { %4870 = vmatmul.mubr.bf16.gmra.mrb[52].mxu0 %v4612_v2  ;;  %5486 = vmatprep.subr.bf16.mxu0 %v7015_v31 }
 0x51c   : > { %5487 = vmatpush1.bf16.msra.mxu0 %v7013_v39 }
 0x51d   : > { %5488 = vmatprep.subr.bf16.mxu0 %v7018_v43 }
 0x520   : > { %5489 = vmatpush1.bf16.msra.mxu0 %v7016_v12 }
 0x521   : > { %5490 = vmatprep.subr.bf16.mxu0 %v7021_v47 }
 0x524   : > { %5491 = vmatpush1.bf16.msra.mxu0 %v7019_v50 }
 0x525   : > { %5492 = vmatprep.subr.bf16.mxu0 %v7024_v9 }
 0x528   : > { %5493 = vmatpush1.bf16.msra.mxu0 %v7022_v58 }
 0x529   : > { %5494 = vmatprep.subr.bf16.mxu0 %v7027_v15 }
 0x52c   : > { %5495 = vmatpush1.bf16.msra.mxu0 %v7025_v7 }
 0x52d   : > { %5496 = vmatprep.subr.bf16.mxu0 %v7030_v14 }
 0x530   : > { %5497 = vmatpush1.bf16.msra.mxu0 %v7028_v54 }
 0x531   : > { %5498 = vmatprep.subr.bf16.mxu0 %v7033_v37 }
 0x534   : > { %5499 = vmatpush1.bf16.msra.mxu0 %v7031_v46 }
 0x535   : > { %5500 = vmatprep.subr.bf16.mxu0 %v7036_v63 }
 0x538   : > { %5501 = vmatpush1.bf16.msra.mxu0 %v7034_v27 }
 0x5d4   : > { %v4841_v6 = vpop.f32.mrb[40].mxu0 }
 0x5d5   : > { %v4880_v42 = vadd.f32 %v4841_v6, %v9160_v59  ;;  %v4843_v19 = vpop.f32.mrb[41].mxu0 }
 0x5d6   : > { %v4881_v51 = vadd.f32 %v4843_v19, %v9156_v52  ;;  %v4845_v62 = vpop.f32.mrb[42].mxu0 }
 0x5d7   : > { %v4909_v2 = vadd.f32 %v9445_v25, %v4880_v42  ;;  %v4882_v49 = vadd.f32 %v4845_v62, %v9163_v57  ;;  %v4847_v61 = vpop.f32.mrb[43].mxu0 }
 0x5d8   : > { %v4910_v17 = vadd.f32 %v9449_v29, %v4881_v51  ;;  %v4883_v48 = vadd.f32 %v4847_v61, %v9166_v38 }
 0x5d9   : > { %v4911_v59 = vadd.f32 %v9445_v25, %v4882_v49  ;;  %v9469_v45 = vadd.f32 %v9458_v56, %v4909_v2 }
 0x5da   : > { %v9465_v52 = vadd.f32 %v9454_v8, %v4910_v17  ;;  %v4912_v33 = vadd.f32 %v9449_v29, %v4883_v48 }
 0x5db   : > { %v9472_v28 = vadd.f32 %v9458_v56, %v4911_v59  ;;  %v4954_v60 = vmax.f32 %v9469_v45, 0.0 }
 0x5dc   : > { %v9475_v57 = vadd.f32 %v9454_v8, %v4912_v33  ;;  %v4851_v18 = vpop.f32.mrb[44].mxu0  ;;  %v4955_v5 = vmax.f32 %v9465_v52, 0.0 }
 0x5dd   : > { %v4956_v55 = vmax.f32 %v9472_v28, 0.0  ;;  %v4884_v38 = vadd.f32 %v4851_v18, %v9184_v36  ;;  %v4853_v22 = vpop.f32.mrb[45].mxu0 }
 0x5de   : > { %v4885_v13 = vadd.f32 %v4853_v22, %v9180_v11  ;;  %v4855_v4 = vpop.f32.mrb[46].mxu0  ;;  %v4957_v53 = vmax.f32 %v9475_v57, 0.0 }
 0x5df   : > { %v4913_v16 = vadd.f32 %v9445_v25, %v4884_v38  ;;  %v4886_v26 = vadd.f32 %v4855_v4, %v9187_v41  ;;  %v4857_v0 = vpop.f32.mrb[47].mxu0  ;;  %v4970_v43 = vpack.c.bf16 %v4956_v55, %v4954_v60 }
 0x5e0   : > { %v4914_v31 = vadd.f32 %v9449_v29, %v4885_v13  ;;  %v4887_v39 = vadd.f32 %v4857_v0, %v9190_v3  ;;  %v4971_v36 = vpack.c.bf16 %v4957_v53, %v4955_v5 }
 0x5e1   : > { %v4915_v11 = vadd.f32 %v9445_v25, %v4886_v26  ;;  %v9493_v50 = vadd.f32 %v9458_v56, %v4913_v16 }
 0x5e2   : > { %v9489_v12 = vadd.f32 %v9454_v8, %v4914_v31  ;;  %v4916_v47 = vadd.f32 %v9449_v29, %v4887_v39  ;;  %5216 = vmatprep.mubr.bf16.mxu1 %v4971_v36 }
 0x5e3   : > { %v9496_v41 = vadd.f32 %v9458_v56, %v4915_v11  ;;  %5217 = vmatmul.mubr.bf16.vlgmr.msra.gmra.mrb[88].mxu1 %v4970_v43  ;;  %v4958_v21 = vmax.f32 %v9493_v50, 0.0  ;;  %v7042_v11 = vld [vmem:[%s9714_s6 + $0x2f4] ss:$8 sps:$4 sm:$0xff]  }
 0x5e4   : > { %v9499_v9 = vadd.f32 %v9454_v8, %v4916_v47  ;;  %v4861_v3 = vpop.f32.mrb[48].mxu0  ;;  %v4959_v37 = vmax.f32 %v9489_v12, 0.0  ;;  %v7040_v47 = vld [vmem:[%s9714_s6 + $0x2f0] ss:$8 sps:$4 sm:$0xff]  }
 0x5e5   : > { %v4888_v58 = vadd.f32 %v4861_v3, %v9208_v1  ;;  %v4863_v15 = vpop.f32.mrb[49].mxu0  ;;  %v4960_v7 = vmax.f32 %v9496_v41, 0.0  ;;  %v7043_v3 = vld [vmem:[%s9716_s8 + $0x40] sm:$0xff]  }
 0x5e6   : > { %v4889_v14 = vadd.f32 %v4863_v15, %v9204_v32  ;;  %v4865_v54 = vpop.f32.mrb[50].mxu0  ;;  %v4961_v46 = vmax.f32 %v9499_v9, 0.0  ;;  %v7045_v15 = vld [vmem:[%s9716_s8 + $0x48] sm:$0xff]   ;;  %6462 = vmatprep.subr.bf16.mxu1 %v7043_v3 }
 0x5e7   : > { %v4917_v63 = vadd.f32 %v9445_v25, %v4888_v58  ;;  %v4890_v27 = vadd.f32 %v4865_v54, %v9211_v40  ;;  %v4867_v23 = vpop.f32.mrb[51].mxu0  ;;  %v4972_v32 = vpack.c.bf16 %v4960_v7, %v4958_v21  ;;  %v7044_v58 = vld [vmem:[%s9716_s8] sm:$0xff]   ;;  %v7046_v7 = vld [vmem:[%s9716_s8 + $0x8] sm:$0xff]   ;;  %v7048_v54 = vld [vmem:[%s9716_s8 + $0x10] sm:$0xff]  }
 0x5e8   : > { %v4918_v6 = vadd.f32 %v9449_v29, %v4889_v14  ;;  %v4891_v1 = vadd.f32 %v4867_v23, %v9214_v35  ;;  %v4973_v42 = vpack.c.bf16 %v4961_v46, %v4959_v37  ;;  %6463 = vmatpush3.bf16.msra.mxu1 %v7044_v58  ;;  %v7047_v14 = vld [vmem:[%s9716_s8 + $0x50] sm:$0xff]   ;;  %v7049_v37 = vld [vmem:[%s9716_s8 + $0x58] sm:$0xff]   ;;  %v6342_v23 = vld [vmem:[%s9713_s5 + $0x4] sm:$0x3] }
 0x5e9   : > { %v4919_v19 = vadd.f32 %v9445_v25, %v4890_v27  ;;  %v9517_v2 = vadd.f32 %v9458_v56, %v4917_v63  ;;  %6464 = vmatprep.subr.bf16.mxu1 %v7045_v15  ;;  %v7050_v46 = vld [vmem:[%s9716_s8 + $0x18] sm:$0xff]   ;;  %v7051_v63 = vld [vmem:[%s9716_s8 + $0x60] sm:$0xff]   ;;  %v5017_v21 = vrot.slane %v6342_v23, %v8849_v20 }
 0x5ea   : > { %v9513_v51 = vadd.f32 %v9454_v8, %v4918_v6  ;;  %v4920_v62 = vadd.f32 %v9449_v29, %v4891_v1  ;;  %5226 = vmatprep.mubr.bf16.mxu1 %v4973_v42  ;;  %v7052_v27 = vld [vmem:[%s9716_s8 + $0x20] sm:$0xff]   ;;  %v5021_v6 = vrot.slane %v6342_v23, %v8846_v30 }
 0x5eb   : > { %v9520_v40 = vadd.f32 %v9458_v56, %v4919_v19  ;;  %5227 = vmatmul.mubr.bf16.gmra.mrb[92].mxu1 %v4972_v32  ;;  %v4962_v4 = vmax.f32 %v9517_v2, 0.0 }
 0x5ec   : > { %v9523_v49 = vadd.f32 %v9454_v8, %v4920_v62  ;;  %v4871_v35 = vpop.f32.mrb[52].mxu0  ;;  %v4963_v18 = vmax.f32 %v9513_v51, 0.0  ;;  %6465 = vmatpush3.bf16.msra.mxu1 %v7046_v7 }
 0x5ed   : > { %v4892_v61 = vadd.f32 %v4871_v35, %v9232_v44  ;;  %v4873_v17 = vpop.f32.mrb[53].mxu0  ;;  %v4964_v48 = vmax.f32 %v9520_v40, 0.0  ;;  %6466 = vmatprep.subr.bf16.mxu1 %v7047_v14 }
 0x5ee   : > { %v4893_v59 = vadd.f32 %v4873_v17, %v9228_v34  ;;  %v4875_v33 = vpop.f32.mrb[54].mxu0  ;;  %v4965_v55 = vmax.f32 %v9523_v49, 0.0 }
 0x5ef   : > { %v4921_v38 = vadd.f32 %v9445_v25, %v4892_v61  ;;  %v4894_v22 = vadd.f32 %v4875_v33, %v9235_v24  ;;  %v4877_v13 = vpop.f32.mrb[55].mxu0  ;;  %v4974_v34 = vpack.c.bf16 %v4964_v48, %v4962_v4 }
 0x5f0   : > { %v4922_v5 = vadd.f32 %v9449_v29, %v4893_v59  ;;  %v4895_v44 = vadd.f32 %v4877_v13, %v9238_v10  ;;  %v4975_v53 = vpack.c.bf16 %v4965_v55, %v4963_v18  ;;  %6467 = vmatpush3.bf16.msra.mxu1 %v7048_v54 }
 0x5f1   : > { %v4923_v60 = vadd.f32 %v9445_v25, %v4894_v22  ;;  %v9541_v0 = vadd.f32 %v9458_v56, %v4921_v38  ;;  %6468 = vmatprep.subr.bf16.mxu1 %v7049_v37 }
 0x5f2   : > { %v9537_v16 = vadd.f32 %v9454_v8, %v4922_v5  ;;  %v4924_v26 = vadd.f32 %v9449_v29, %v4895_v44  ;;  %5236 = vmatprep.mubr.bf16.mxu1 %v4975_v53 }
 0x5f3   : > { %v9544_v24 = vadd.f32 %v9458_v56, %v4923_v60  ;;  %5237 = vmatmul.mubr.bf16.gmra.mrb[96].mxu1 %v4974_v34  ;;  %v4966_v36 = vmax.f32 %v9541_v0, 0.0  ;;  %v7037_v56 = vld [vmem:[%s9714_s6 + $0x2e0] ss:$8 sps:$4 sm:$0xff]  }
 0x5f4   : > { %v9547_v31 = vadd.f32 %v9454_v8, %v4924_v26  ;;  %v4967_v25 = vmax.f32 %v9537_v16, 0.0  ;;  %v7039_v8 = vld [vmem:[%s9714_s6 + $0x2e4] ss:$8 sps:$4 sm:$0xff]   ;;  %6469 = vmatpush3.bf16.msra.mxu1 %v7050_v46 }
 0x5f5   : > { %v4968_v10 = vmax.f32 %v9544_v24, 0.0  ;;  %5502 = vmatprep.subr.bf16.mxu0 %v7039_v8  ;;  %6470 = vmatprep.subr.bf16.mxu1 %v7051_v63 }
 0x5f6   : > { %v4969_v39 = vmax.f32 %v9547_v31, 0.0  ;;  %5503 = vmatpush1.bf16.msra.mxu0 %v7037_v56 }
 0x5f7   : > { %v4976_v43 = vpack.c.bf16 %v4968_v10, %v4966_v36  ;;  %5504 = vmatprep.subr.bf16.mxu0 %v7042_v11 }
 0x5f8   : > { %v4977_v29 = vpack.c.bf16 %v4969_v39, %v4967_v25  ;;  %6471 = vmatpush3.bf16.msra.mxu1 %v7052_v27 }
 0x5fa   : > { %5246 = vmatprep.mubr.bf16.mxu1 %v4977_v29  ;;  %5505 = vmatpush1.bf16.msra.mxu0 %v7040_v47 }
 0x5fb   : > { %5247 = vmatmul.mubr.bf16.gmra.mrb[100].mxu1 %v4976_v43 }
 0x6b6   : > { %v5218_v1 = vpop.f32.mrb[88].mxu1 }
 0x6b7   : > { %v5219_v42 = vadd.f32 %v5218_v1, %v5017_v21  ;;  %v5220_v19 = vpop.f32.mrb[89].mxu1 }
 0x6b8   : > { %v5221_v32 = vadd.f32 %v5220_v19, %v5021_v6  ;;  %v5222_v62 = vpop.f32.mrb[90].mxu1 }
 0x6b9   : > { %v5223_v35 = vadd.f32 %v5222_v62, %v5017_v21  ;;  %v5224_v61 = vpop.f32.mrb[91].mxu1  ;;  %v5257_v48 = vmax.f32 %v5219_v42, 0.0 }
 0x6ba   : > { %v5225_v17 = vadd.f32 %v5224_v61, %v5021_v6  ;;  %v5258_v33 = vmax.f32 %v5221_v32, 0.0 }
 0x6bb   : > { %v5259_v59 = vmax.f32 %v5223_v35, 0.0 }
 0x6bc   : > { %v5260_v18 = vmax.f32 %v5225_v17, 0.0 }
 0x6bd   : > { %v5273_v55 = vpack.c.bf16 %v5259_v59, %v5257_v48 }
 0x6be   : > { %v5274_v38 = vpack.c.bf16 %v5260_v18, %v5258_v33  ;;  %v5228_v22 = vpop.f32.mrb[92].mxu1 }
 0x6bf   : > { %v5229_v13 = vadd.f32 %v5228_v22, %v5017_v21  ;;  %v5230_v4 = vpop.f32.mrb[93].mxu1  ;;  %v7057_v22 = vld [vmem:[%s9716_s8 + $0x78] sm:$0xff]  }
 0x6c0   : > { %v5231_v5 = vadd.f32 %v5230_v4, %v5021_v6  ;;  %v5232_v44 = vpop.f32.mrb[94].mxu1  ;;  %5506 = vmatprep.mubr.bf16.mxu0 %v5274_v38  ;;  %v7056_v38 = vld [vmem:[%s9716_s8 + $0x30] sm:$0xff]   ;;  %v6439_v4 = vld [vmem:[%s9715_s7 + $0x4] sm:$0x3] }
 0x6c1   : > { %v5233_v53 = vadd.f32 %v5232_v44, %v5017_v21  ;;  %v5234_v60 = vpop.f32.mrb[95].mxu1  ;;  %5507 = vmatmul.mubr.bf16.vlgmr.msra.gmra.mrb[56].mxu0 %v5273_v55  ;;  %v5261_v26 = vmax.f32 %v5229_v13, 0.0  ;;  %v7053_v55 = vld [vmem:[%s9716_s8 + $0x68] sm:$0xff]   ;;  %v7058_v13 = vld [vmem:[%s9716_s8 + $0x38] sm:$0xff]  }
 0x6c2   : > { %v5235_v34 = vadd.f32 %v5234_v60, %v5021_v6  ;;  %v5262_v25 = vmax.f32 %v5231_v5, 0.0  ;;  %6472 = vmatprep.subr.bf16.mxu1 %v7053_v55  ;;  %v9623_v5 = vrot.slane %v6439_v4, %v8849_v20 }
 0x6c3   : > { %v5263_v10 = vmax.f32 %v5233_v53, 0.0  ;;  %v9626_v53 = vrot.slane %v6439_v4, %v8846_v30 }
 0x6c4   : > { %v5264_v39 = vmax.f32 %v5235_v34, 0.0 }
 0x6c5   : > { %v5275_v36 = vpack.c.bf16 %v5263_v10, %v5261_v26 }
 0x6c6   : > { %v5276_v29 = vpack.c.bf16 %v5264_v39, %v5262_v25  ;;  %v5238_v43 = vpop.f32.mrb[96].mxu1 }
 0x6c7   : > { %v5239_v56 = vadd.f32 %v5238_v43, %v5017_v21  ;;  %v5240_v8 = vpop.f32.mrb[97].mxu1 }
 0x6c8   : > { %v5241_v11 = vadd.f32 %v5240_v8, %v5021_v6  ;;  %v5242_v47 = vpop.f32.mrb[98].mxu1  ;;  %5516 = vmatprep.mubr.bf16.mxu0 %v5276_v29 }
 0x6c9   : > { %v5243_v3 = vadd.f32 %v5242_v47, %v5017_v21  ;;  %v5244_v58 = vpop.f32.mrb[99].mxu1  ;;  %5517 = vmatmul.mubr.bf16.gmra.mrb[60].mxu0 %v5275_v36  ;;  %v5265_v7 = vmax.f32 %v5239_v56, 0.0 }
 0x6ca   : > { %v5245_v15 = vadd.f32 %v5244_v58, %v5021_v6  ;;  %v5266_v54 = vmax.f32 %v5241_v11, 0.0 }
 0x6cb   : > { %v5267_v14 = vmax.f32 %v5243_v3, 0.0 }
 0x6cc   : > { %v5268_v37 = vmax.f32 %v5245_v15, 0.0 }
 0x6cd   : > { %v5277_v46 = vpack.c.bf16 %v5267_v14, %v5265_v7 }
 0x6ce   : > { %v5278_v63 = vpack.c.bf16 %v5268_v37, %v5266_v54  ;;  %v5248_v27 = vpop.f32.mrb[100].mxu1 }
 0x6cf   : > { %v5249_v23 = vadd.f32 %v5248_v27, %v5017_v21  ;;  %v5250_v1 = vpop.f32.mrb[101].mxu1 }
 0x6d0   : > { %v5251_v42 = vadd.f32 %v5250_v1, %v5021_v6  ;;  %v5252_v19 = vpop.f32.mrb[102].mxu1  ;;  %5526 = vmatprep.mubr.bf16.mxu0 %v5278_v63 }
 0x6d1   : > { %v5253_v32 = vadd.f32 %v5252_v19, %v5017_v21  ;;  %v5254_v62 = vpop.f32.mrb[103].mxu1  ;;  %5527 = vmatmul.mubr.bf16.gmra.mrb[64].mxu0 %v5277_v46  ;;  %v5269_v61 = vmax.f32 %v5249_v23, 0.0  ;;  %v7054_v21 = vld [vmem:[%s9716_s8 + $0x28] sm:$0xff]  }
 0x6d2   : > { %v5255_v35 = vadd.f32 %v5254_v62, %v5021_v6  ;;  %v5270_v48 = vmax.f32 %v5251_v42, 0.0  ;;  %6473 = vmatpush3.bf16.msra.mxu1 %v7054_v21  ;;  %v7055_v6 = vld [vmem:[%s9716_s8 + $0x70] sm:$0xff]  }
 0x6d3   : > { %v5271_v17 = vmax.f32 %v5253_v32, 0.0  ;;  %6474 = vmatprep.subr.bf16.mxu1 %v7055_v6 }
 0x6d4   : > { %v5272_v59 = vmax.f32 %v5255_v35, 0.0 }
 0x6d5   : > { %v5279_v33 = vpack.c.bf16 %v5271_v17, %v5269_v61 }
 0x6d6   : > { %v5280_v18 = vpack.c.bf16 %v5272_v59, %v5270_v48  ;;  %6475 = vmatpush3.bf16.msra.mxu1 %v7056_v38 }
 0x6d7   : > { %6476 = vmatprep.subr.bf16.mxu1 %v7057_v22 }
 0x6d8   : > { %5536 = vmatprep.mubr.bf16.mxu0 %v5280_v18 }
 0x6d9   : > { %5537 = vmatmul.mubr.bf16.gmra.mrb[68].mxu0 %v5279_v33 }
 0x6da   : > { %6477 = vmatpush3.bf16.msra.mxu1 %v7058_v13 }
 0x794   : > { %v5508_v44 = vpop.f32.mrb[56].mxu0 }
 0x795   : > { %v5547_v60 = vadd.f32 %v5508_v44, %v9469_v45  ;;  %v5510_v34 = vpop.f32.mrb[57].mxu0 }
 0x796   : > { %v5548_v26 = vadd.f32 %v5510_v34, %v9465_v52  ;;  %v5512_v20 = vpop.f32.mrb[58].mxu0 }
 0x797   : > { %v5576_v10 = vadd.f32 %v9623_v5, %v5547_v60  ;;  %v5549_v30 = vadd.f32 %v5512_v20, %v9472_v28  ;;  %v5514_v25 = vpop.f32.mrb[59].mxu0 }
 0x798   : > { %v5577_v45 = vadd.f32 %v9626_v53, %v5548_v26  ;;  %v5550_v39 = vadd.f32 %v5514_v25, %v9475_v57 }
 0x799   : > { %5592 = vst [vmem:[%s9632_s21] sm:$0xff] %v5576_v10  ;;  %v5578_v36 = vadd.f32 %v9623_v5, %v5549_v30  ;;  %v5608_v43 = vmax.f32 %v5576_v10, 0.0 }
 0x79a   : > { %5593 = vst [vmem:[%s9632_s21 + $0x8] sm:$0xff] %v5577_v45  ;;  %v5579_v29 = vadd.f32 %v9626_v53, %v5550_v39  ;;  %v5609_v52 = vmax.f32 %v5577_v45, 0.0 }
 0x79b   : > { %5594 = vst [vmem:[%s9632_s21 + $0x10] sm:$0xff] %v5578_v36  ;;  %v5610_v56 = vmax.f32 %v5578_v36, 0.0 }
 0x79c   : > { %5595 = vst [vmem:[%s9632_s21 + $0x18] sm:$0xff] %v5579_v29  ;;  %v5611_v8 = vmax.f32 %v5579_v29, 0.0  ;;  %v5518_v11 = vpop.f32.mrb[60].mxu0 }
 0x79d   : > { %v5624_v28 = vpack.c.bf16 %v5610_v56, %v5608_v43  ;;  %v5551_v47 = vadd.f32 %v5518_v11, %v9493_v50  ;;  %v5520_v3 = vpop.f32.mrb[61].mxu0 }
 0x79e   : > { %v5552_v57 = vadd.f32 %v5520_v3, %v9489_v12  ;;  %v5522_v58 = vpop.f32.mrb[62].mxu0  ;;  %v5625_v15 = vpack.c.bf16 %v5611_v8, %v5609_v52 }
 0x79f   : > { %v5580_v7 = vadd.f32 %v9623_v5, %v5551_v47  ;;  %v5553_v14 = vadd.f32 %v5522_v58, %v9496_v41  ;;  %v5524_v54 = vpop.f32.mrb[63].mxu0 }
 0x7a0   : > { %v5581_v37 = vadd.f32 %v9626_v53, %v5552_v57  ;;  %v5554_v46 = vadd.f32 %v5524_v54, %v9499_v9  ;;  %5799 = vmatprep.mubr.bf16.mxu1 %v5625_v15 }
 0x7a1   : > { %5596 = vst [vmem:[%s9632_s21 + $0x20] sm:$0xff] %v5580_v7  ;;  %v5582_v50 = vadd.f32 %v9623_v5, %v5553_v14  ;;  %5800 = vmatmul.mubr.bf16.vlgmr.msra.gmra.mrb[104].mxu1 %v5624_v28  ;;  %v5612_v63 = vmax.f32 %v5580_v7, 0.0 }
 0x7a2   : > { %5597 = vst [vmem:[%s9632_s21 + $0x28] sm:$0xff] %v5581_v37  ;;  %v5583_v12 = vadd.f32 %v9626_v53, %v5554_v46  ;;  %v5613_v23 = vmax.f32 %v5581_v37, 0.0 }
 0x7a3   : > { %5598 = vst [vmem:[%s9632_s21 + $0x30] sm:$0xff] %v5582_v50  ;;  %v5614_v27 = vmax.f32 %v5582_v50, 0.0 }
 0x7a4   : > { %5599 = vst [vmem:[%s9632_s21 + $0x38] sm:$0xff] %v5583_v12  ;;  %v5615_v41 = vmax.f32 %v5583_v12, 0.0  ;;  %v5528_v1 = vpop.f32.mrb[64].mxu0 }
 0x7a5   : > { %v5555_v42 = vadd.f32 %v5528_v1, %v9517_v2  ;;  %v5530_v9 = vpop.f32.mrb[65].mxu0  ;;  %v5626_v19 = vpack.c.bf16 %v5614_v27, %v5612_v63 }
 0x7a6   : > { %v5556_v32 = vadd.f32 %v5530_v9, %v9513_v51  ;;  %v5532_v62 = vpop.f32.mrb[66].mxu0  ;;  %v5627_v35 = vpack.c.bf16 %v5615_v41, %v5613_v23 }
 0x7a7   : > { %v5584_v61 = vadd.f32 %v9623_v5, %v5555_v42  ;;  %v5557_v17 = vadd.f32 %v5532_v62, %v9520_v40  ;;  %v5534_v48 = vpop.f32.mrb[67].mxu0 }
 0x7a8   : > { %v5585_v59 = vadd.f32 %v9626_v53, %v5556_v32  ;;  %v5558_v33 = vadd.f32 %v5534_v48, %v9523_v49  ;;  %5807 = vmatprep.mubr.bf16.mxu1 %v5627_v35 }
 0x7a9   : > { %5600 = vst [vmem:[%s9632_s21 + $0x40] sm:$0xff] %v5584_v61  ;;  %v5586_v2 = vadd.f32 %v9623_v5, %v5557_v17  ;;  %5808 = vmatmul.mubr.bf16.gmra.mrb[108].mxu1 %v5626_v19  ;;  %v5616_v18 = vmax.f32 %v5584_v61, 0.0 }
 0x7aa   : > { %5601 = vst [vmem:[%s9632_s21 + $0x48] sm:$0xff] %v5585_v59  ;;  %v5587_v51 = vadd.f32 %v9626_v53, %v5558_v33  ;;  %v5617_v21 = vmax.f32 %v5585_v59, 0.0 }
 0x7ab   : > { %5602 = vst [vmem:[%s9632_s21 + $0x50] sm:$0xff] %v5586_v2  ;;  %v5618_v55 = vmax.f32 %v5586_v2, 0.0 }
 0x7ac   : > { %5603 = vst [vmem:[%s9632_s21 + $0x58] sm:$0xff] %v5587_v51  ;;  %v5619_v40 = vmax.f32 %v5587_v51, 0.0  ;;  %v5538_v6 = vpop.f32.mrb[68].mxu0 }
 0x7ad   : > { %v5559_v38 = vadd.f32 %v5538_v6, %v9541_v0  ;;  %v5540_v49 = vpop.f32.mrb[69].mxu0  ;;  %v5628_v22 = vpack.c.bf16 %v5618_v55, %v5616_v18 }
 0x7ae   : > { %v5560_v13 = vadd.f32 %v5540_v49, %v9537_v16  ;;  %v5542_v4 = vpop.f32.mrb[70].mxu0  ;;  %v5629_v44 = vpack.c.bf16 %v5619_v40, %v5617_v21 }
 0x7af   : > { %v5588_v60 = vadd.f32 %v9623_v5, %v5559_v38  ;;  %v5561_v34 = vadd.f32 %v5542_v4, %v9544_v24  ;;  %v5544_v26 = vpop.f32.mrb[71].mxu0 }
 0x7b0   : > { %v5589_v20 = vadd.f32 %v9626_v53, %v5560_v13  ;;  %v5562_v10 = vadd.f32 %v5544_v26, %v9547_v31  ;;  %5815 = vmatprep.mubr.bf16.mxu1 %v5629_v44 }
 0x7b1   : > { %5604 = vst [vmem:[%s9632_s21 + $0x60] sm:$0xff] %v5588_v60  ;;  %v5590_v0 = vadd.f32 %v9623_v5, %v5561_v34  ;;  %5816 = vmatmul.mubr.bf16.gmra.mrb[112].mxu1 %v5628_v22  ;;  %v5620_v30 = vmax.f32 %v5588_v60, 0.0  ;;  %v6440_v5 = vld [vmem:[%s9717_s9] ss:$0 sm:$0xff] }
 0x7b2   : > { %5605 = vst [vmem:[%s9632_s21 + $0x68] sm:$0xff] %v5589_v20  ;;  %v5591_v16 = vadd.f32 %v9626_v53, %v5562_v10  ;;  %v5621_v45 = vmax.f32 %v5589_v20, 0.0 }
 0x7b3   : > { %5606 = vst [vmem:[%s9632_s21 + $0x70] sm:$0xff] %v5590_v0  ;;  %v5622_v25 = vmax.f32 %v5590_v0, 0.0 }
 0x7b4   : > { %5607 = vst [vmem:[%s9632_s21 + $0x78] sm:$0xff] %v5591_v16  ;;  %v5623_v24 = vmax.f32 %v5591_v16, 0.0 }
 0x7b5   : > { %v5630_v39 = vpack.c.bf16 %v5622_v25, %v5620_v30 }
 0x7b6   : > { %v5631_v36 = vpack.c.bf16 %v5623_v24, %v5621_v45 }
 0x7b8   : > { %5823 = vmatprep.mubr.bf16.mxu1 %v5631_v36 }
 0x7b9   : > { %5824 = vmatmul.mubr.bf16.gmra.mrb[116].mxu1 %v5630_v39 }
 0x874   : > { %v6478_v31 = vpop.f32.mrb[104].mxu1 }
 0x875   : > { %v6479_v29 = vpop.f32.mrb[105].mxu1 }
 0x876   : > { %v6480_v43 = vadd.f32 %v6479_v29, %v6478_v31  ;;  %v6481_v56 = vpop.f32.mrb[106].mxu1 }
 0x877   : > { %v6482_v53 = vpop.f32.mrb[107].mxu1 }
 0x878   : > { %v5802_v52 = vadd.f32 %v6480_v43, %v6440_v5  ;;  %v6483_v8 = vadd.f32 %v6482_v53, %v6481_v56 }
 0x87a   : > { %5832 = vst [vmem:[%s9689_s28] sm:$0xff] %v5802_v52  ;;  %v5805_v11 = vadd.f32 %v6483_v8, %v6440_v5 }
 0x87c   : > { %5833 = vst [vmem:[%s9689_s28 + $0x8] sm:$0xff] %v5805_v11  ;;  %v6484_v28 = vpop.f32.mrb[108].mxu1 }
 0x87d   : > { %v6485_v47 = vpop.f32.mrb[109].mxu1 }
 0x87e   : > { %v6486_v3 = vadd.f32 %v6485_v47, %v6484_v28  ;;  %v6487_v57 = vpop.f32.mrb[110].mxu1 }
 0x87f   : > { %v6488_v58 = vpop.f32.mrb[111].mxu1 }
 0x880   : > { %v5810_v15 = vadd.f32 %v6486_v3, %v6440_v5  ;;  %v6489_v7 = vadd.f32 %v6488_v58, %v6487_v57 }
 0x882   : > { %5834 = vst [vmem:[%s9689_s28 + $0x10] sm:$0xff] %v5810_v15  ;;  %v5813_v14 = vadd.f32 %v6489_v7, %v6440_v5 }
 0x884   : > { %5835 = vst [vmem:[%s9689_s28 + $0x18] sm:$0xff] %v5813_v14  ;;  %v6490_v54 = vpop.f32.mrb[112].mxu1 }
 0x885   : > { %v6491_v37 = vpop.f32.mrb[113].mxu1 }
 0x886   : > { %v6492_v46 = vadd.f32 %v6491_v37, %v6490_v54  ;;  %v6493_v50 = vpop.f32.mrb[114].mxu1 }
 0x887   : > { %v6494_v12 = vpop.f32.mrb[115].mxu1 }
 0x888   : > { %v5818_v63 = vadd.f32 %v6492_v46, %v6440_v5  ;;  %v6495_v27 = vadd.f32 %v6494_v12, %v6493_v50 }
 0x88a   : > { %5836 = vst [vmem:[%s9689_s28 + $0x20] sm:$0xff] %v5818_v63  ;;  %v5821_v23 = vadd.f32 %v6495_v27, %v6440_v5 }
 0x88c   : > { %5837 = vst [vmem:[%s9689_s28 + $0x28] sm:$0xff] %v5821_v23  ;;  %v6496_v41 = vpop.f32.mrb[116].mxu1 }
 0x88d   : > { %v6497_v1 = vpop.f32.mrb[117].mxu1 }
 0x88e   : > { %v6498_v42 = vadd.f32 %v6497_v1, %v6496_v41  ;;  %v6499_v9 = vpop.f32.mrb[118].mxu1 }
 0x88f   : > { %v6500_v19 = vpop.f32.mrb[119].mxu1 }
 0x890   : > { %v5826_v32 = vadd.f32 %v6498_v42, %v6440_v5  ;;  %v6501_v62 = vadd.f32 %v6500_v19, %v6499_v9 }
 0x892   : > { %5838 = vst [vmem:[%s9689_s28 + $0x30] sm:$0xff] %v5826_v32  ;;  %v5829_v35 = vadd.f32 %v6501_v62, %v6440_v5 }
 0x894   : > { %5839 = vst [vmem:[%s9689_s28 + $0x38] sm:$0xff] %v5829_v35 }
 0x895 PF: > { %s22_s19 = sadd.s32 1, %s7117_s19   ;;  %s9837_s17 = smov %s7113_s18 }
 0x896   : > { %p19_p5 = scmp.ge.s32.totalorder %s22_s19, 4   ;;  %s9838_s18 = smov %s9840_s20 }
 0x898   :  { %21 = sbr.rel (!%p19_p5) target bundleno = 2 (0x2), region = 118 }

</bundles_post_ra>
